<compile_context>
chip_gen: v7x
topology: tpu7x:2x2x1
jax: 0.10.0
libtpu: 0.0.40
codegen_flags: <defaults>
</compile_context>

<pallas_src>
import jax
import jax.numpy as jnp
from jax import lax
from jax.experimental import pallas as pl
from jax.experimental.pallas import tpu as pltpu


def _round_up(a, m):
    return ((a + m - 1) // m) * m


def _tpu_generation():
    """Best-effort TPU generation (5 / 6 / 7); 0 if unknown."""
    try:
        kind = jax.devices()[0].device_kind.lower()
    except Exception:
        return 0
    for g in (7, 6, 5):
        if f"v{g}" in kind:
            return g
    return 0


def _hash_u32(seed_u32, start_row, salt, shape):
    """Counter-based murmur3-style hash -> uint32 per (global_row, lane).

    Pure integer VPU ops (no pltpu.prng_*), so it lowers on TPU and in
    interpret mode alike.  One avalanche serves two dropout layers (low /
    high 16-bit fields).
    """
    rows = (lax.broadcasted_iota(jnp.int32, shape, 0) + start_row).astype(jnp.uint32)
    cols = lax.broadcasted_iota(jnp.int32, shape, 1).astype(jnp.uint32)
    x = rows * jnp.uint32(0x9E3779B1)
    x = x + cols * jnp.uint32(0x85EBCA77)
    x = x + jnp.uint32(0xC2B2AE3D) * jnp.uint32(salt + 1)
    x = x ^ seed_u32
    # murmur3-style avalanche (wrapping uint32 arithmetic).
    x = x ^ (x >> jnp.uint32(16))
    x = x * jnp.uint32(0x7FEB352D)
    x = x ^ (x >> jnp.uint32(15))
    x = x * jnp.uint32(0x846CA68B)
    x = x ^ (x >> jnp.uint32(16))
    return x


def _make_mlp_kernel(net_depth, dropout_p, training, tile_rows, out_dim, ew_dtype):
    apply_dropout = bool(training) and dropout_p > 0.0
    inv_keep = 1.0 / (1.0 - dropout_p) if dropout_p < 1.0 else 0.0
    drop_thresh16 = int(round(dropout_p * 65536))   # 16-bit threshold, res 1/65536

    def kernel(seed_ref, x_ref, *refs):
        # refs layout: w0, b0, ..., w_{d-1}, b_{d-1}, w_out, b_out, o_ref
        o_ref = refs[-1]
        params = refs[:-1]

        start_row = pl.program_id(0) * tile_rows
        seed_u32 = seed_ref[0].astype(jnp.uint32) if apply_dropout else None

        h = x_ref[...]                              # [tile_rows, C], input dtype
        cur_bits = None
        for i in range(net_depth):
            w = params[2 * i][...]                  # bf16 [in, hidden]
            b = params[2 * i + 1][...]              # f32  [1, hidden]
            # bf16 MXU matmul, f32 accumulation.
            h = jnp.dot(h.astype(jnp.bfloat16), w,
                        preferred_element_type=jnp.float32) + b
            # ReLU; elementwise dtype is bf16 on v6e/v7x, f32 on v5e.
            h = jnp.maximum(h, 0.0).astype(ew_dtype)
            if apply_dropout:                       # F.dropout(p=0.2), training
                if i % 2 == 0:                      # one hash feeds two layers
                    cur_bits = _hash_u32(seed_u32, start_row, i // 2, h.shape)
                field = cur_bits if i % 2 == 0 else (cur_bits >> jnp.uint32(16))
                field = (field & jnp.uint32(0xFFFF)).astype(jnp.int32)
                keep = field >= drop_thresh16       # integer threshold compare
                h = jnp.where(keep, h * inv_keep, 0.0)

        w_out = params[2 * net_depth][...]
        b_out = params[2 * net_depth + 1][...]
        if out_dim == 1:
            # N=1 MXU matmul wastes 127/128 result lanes; use VPU broadcast
            # multiply + lane reduction (XLU slot is idle here). h*w_out
            # promotes to f32.
            y = jnp.sum(h * w_out, axis=-1, keepdims=True) + b_out
        else:
            y = jnp.dot(h.astype(jnp.bfloat16), w_out,
                        preferred_element_type=jnp.float32) + b_out

        # Softplus (beta=1, threshold=20, PyTorch defaults), numerically clean.
        o_ref[...] = jnp.where(y > 20.0, y,
                               jnp.log1p(jnp.exp(jnp.minimum(y, 20.0))))

    return kernel


def init_mlp_params(key, input_dim=384, hidden_dim=64, output_dim=1, net_depth=2):
    """Matches the module: kaiming_uniform_ (relu) weights, default nn.Linear
    uniform bias.  Weights stored as [in, out]; biases as [1, out]."""
    params = []
    dims = [input_dim] + [hidden_dim] * net_depth
    keys = jax.random.split(key, 2 * (net_depth + 1))
    ki = 0
    for i in range(net_depth):
        fan_in, fan_out = dims[i], dims[i + 1]
        w_bound = float(jnp.sqrt(6.0 / fan_in))      # kaiming_uniform, gain=sqrt(2)
        b_bound = float(1.0 / jnp.sqrt(fan_in))      # default Linear bias init
        params.append(jax.random.uniform(keys[ki], (fan_in, fan_out), jnp.float32,
                                         -w_bound, w_bound)); ki += 1
        params.append(jax.random.uniform(keys[ki], (1, fan_out), jnp.float32,
                                         -b_bound, b_bound)); ki += 1
    fan_in = hidden_dim
    w_bound = float(jnp.sqrt(6.0 / fan_in))
    b_bound = float(1.0 / jnp.sqrt(fan_in))
    params.append(jax.random.uniform(keys[ki], (fan_in, output_dim), jnp.float32,
                                     -w_bound, w_bound)); ki += 1
    params.append(jax.random.uniform(keys[ki], (1, output_dim), jnp.float32,
                                     -b_bound, b_bound)); ki += 1
    return params


def mlp_network_forward(x, params, *, net_depth=2, dropout_p=0.2,
                        training=True, seed=0, tile_rows=None):
    """Pallas implementation of MLPNetwork.forward.

    x: [B, H, W, C] or [H, W, C] float array (channels last).  Pass x in
       bf16 to halve the dominant HBM input read; no wrapper-side cast/pad
       copy is made either way.
    Returns [B, H, W] or [H, W] (float32).

    Dropout note: keep probability is 1 - 13107/65536 ~= 0.80000 rather than
    exactly 0.8, and the in-kernel hash PRNG cannot bit-match torch's RNG
    (statistics match F.dropout).
    """
    input_with_batch_dim = (x.ndim == 4)
    if not input_with_batch_dim:
        x = x[None]
    B, H, W, C = x.shape
    out_dim = params[-1].shape[-1]
    hidden_dim = params[0].shape[-1] if net_depth > 0 else C

    n = B * H * W
    # No wrapper-side pad / astype: that would materialize an extra HBM copy of
    # x before a memory-bound kernel.  The ragged last tile is handled by
    # Pallas partial-block masking; any bf16 cast happens on the VMEM tile.
    x2 = x.reshape(n, C)

    # Kernel-side parameter layout: hidden weights in bf16 (MXU-native,
    # halves weight bytes), biases as f32 rows; when out_dim == 1 the output
    # weight becomes a (1, hidden) f32 row for the VPU reduce.
    kparams = []
    for i in range(net_depth):
        kparams.append(params[2 * i].astype(jnp.bfloat16))
        kparams.append(params[2 * i + 1].astype(jnp.float32).reshape(1, -1))
    w_out, b_out = params[2 * net_depth], params[2 * net_depth + 1]
    if out_dim == 1:
        kparams.append(w_out.astype(jnp.float32).reshape(1, -1))
    else:
        kparams.append(w_out.astype(jnp.bfloat16))
    kparams.append(b_out.astype(jnp.float32).reshape(1, -1))

    # ---- generation-aware sizing (kernel is HBM-read-bound) -----------------
    gen = _tpu_generation()
    if gen == 7:
        vmem_cap = 48 << 20     # 64 MiB physical per TC; leave headroom
        min_steps = 8           # 2 TensorCores/chip -> need a shardable grid
    elif gen in (5, 6):
        vmem_cap = 100 << 20    # 128 MiB physical; scoped default is only 32 MiB
        min_steps = 2           # keep input/output pipelining alive
    else:
        vmem_cap = 32 << 20
        min_steps = 2
    # bf16 elementwise path on v6e/v7x only (v5e VPU/EUP have no bf16).
    ew_dtype = jnp.bfloat16 if gen >= 6 else jnp.float32

    x_item = jnp.dtype(x2.dtype).itemsize
    hid_pad = max(_round_up(max(hidden_dim, 1), 128), 128)   # lane padding
    out_pad = max(_round_up(max(out_dim, 1), 128), 128)
    param_bytes = sum(int(p.size) * jnp.dtype(p.dtype).itemsize for p in kparams)
    bytes_per_row = (2 * C * x_item                       # double-buffered x tile
                     + (2 * C if x_item > 2 else 0)       # in-kernel bf16 shadow of x
                     + 16 * hid_pad                       # live [tile,hidden] temporaries
                     + 2 * out_pad * 4)                   # double-buffered output tile
    fixed_bytes = param_bytes + (2 << 20)                 # weights + compiler scratch

    if tile_rows is None:
        # Big tiles amortize the ~0.35 us per-grid-step overhead.
        tile_rows = 4096 if gen == 7 else (8192 if gen in (5, 6) else 2048)
    # Shrink to fit the generation VMEM cap.
    fit_rows = max(8, (vmem_cap - fixed_bytes) // bytes_per_row)
    tile_rows = min(tile_rows, fit_rows)
    # Keep >= min_steps grid steps for realistic n (skip for tiny inputs).
    if n >= min_steps * 1024:
        tile_rows = min(tile_rows, _round_up(pl.cdiv(n, min_steps), 8))
    tile_rows = max(8, min(_round_up(tile_rows, 8), _round_up(n, 8)))
    grid = (pl.cdiv(n, tile_rows),)

    vmem_est = fixed_bytes + bytes_per_row * tile_rows
    vmem_limit = (min(_round_up(vmem_est, 1 << 20), vmem_cap)
                  if vmem_est > (32 << 20) else None)

    kernel = _make_mlp_kernel(net_depth, dropout_p, training, tile_rows,
                              out_dim, ew_dtype)

    # index_maps receive the scalar-prefetch (seed) ref as a trailing arg.
    x_spec = pl.BlockSpec((tile_rows, C), lambda i, seed_ref: (i, 0))
    param_specs = [pl.BlockSpec(p.shape, lambda i, seed_ref: (0, 0)) for p in kparams]
    out_spec = pl.BlockSpec((tile_rows, out_dim), lambda i, seed_ref: (i, 0))
    # TODO(synk): out_dim == 1 leaves the output store lane-sparse (1/128 lanes);
    # a lane-dense (num_tiles, tile_rows) slab would shave a bit more, but the
    # output bytes are <1% of the 384-wide input read, so it is left as-is.

    out = pl.pallas_call(
        kernel,
        out_shape=jax.ShapeDtypeStruct((n, out_dim), jnp.float32),
        grid_spec=pltpu.PrefetchScalarGridSpec(
            num_scalar_prefetch=1,
            grid=grid,
            in_specs=[x_spec] + param_specs,
            out_specs=out_spec,
        ),
        compiler_params=pltpu.CompilerParams(
            dimension_semantics=("parallel",),
            vmem_limit_bytes=vmem_limit,
        ),
    )(jnp.array([seed], dtype=jnp.int32), x2, *kparams)

    out = out[:, 0]
    if input_with_batch_dim:
        return out.reshape(B, H, W)
    return out.reshape(H, W)


if __name__ == "__main__":
    key = jax.random.PRNGKey(0)
    k_param, k_x = jax.random.split(key)

    input_dim, hidden_dim, output_dim, net_depth = 384, 64, 1, 2
    B, H, W = 2, 16, 16

    params = init_mlp_params(k_param, input_dim, hidden_dim, output_dim, net_depth)
    x = jax.random.normal(k_x, (B, H, W, input_dim), dtype=jnp.float32)

    def ref_forward(xr, params):
        h = xr.reshape(-1, xr.shape[-1]).astype(jnp.float32)
        for i in range(net_depth):
            h = jnp.maximum(h @ params[2 * i] + params[2 * i + 1], 0.0)
        y = h @ params[2 * net_depth] + params[2 * net_depth + 1]
        y = jnp.where(y > 20.0, y, jnp.log1p(jnp.exp(jnp.minimum(y, 20.0))))
        return y[:, 0].reshape(xr.shape[:-1])

    # 1) Deterministic check (dropout off) against a pure-JAX reference.
    y_eval = mlp_network_forward(x, params, net_depth=net_depth,
                                 dropout_p=0.2, training=False)
    y_eval = jax.block_until_ready(y_eval)
    y_ref = ref_forward(x, params)
    assert y_eval.shape == (B, H, W), y_eval.shape
    max_err = float(jnp.max(jnp.abs(y_eval - y_ref)))
    assert max_err < 1e-1, max_err     # bf16 matmul path, f32 accumulation

    # 1b) No-batch-dim path: [H, W, C] -> [H, W].
    y_nb = mlp_network_forward(x[0], params, net_depth=net_depth,
                               dropout_p=0.2, training=False)
    y_nb = jax.block_until_ready(y_nb)
    assert y_nb.shape == (H, W), y_nb.shape
    assert float(jnp.max(jnp.abs(y_nb - y_eval[0]))) < 1e-5

    # 1c) bf16 input path (halves the dominant HBM read), looser tolerance.
    y_bf16 = mlp_network_forward(x.astype(jnp.bfloat16), params,
                                 net_depth=net_depth, dropout_p=0.2,
                                 training=False)
    y_bf16 = jax.block_until_ready(y_bf16)
    assert y_bf16.shape == (B, H, W)
    assert float(jnp.max(jnp.abs(y_bf16 - y_ref))) < 2.5e-1

    # 2) Training-mode run (dropout active, matching F.dropout's default).
    y_train = mlp_network_forward(x, params, net_depth=net_depth,
                                  dropout_p=0.2, training=True, seed=0)
    y_train = jax.block_until_ready(y_train)
    assert y_train.shape == (B, H, W), y_train.shape
    assert bool(jnp.all(jnp.isfinite(y_train)))
    assert bool(jnp.all(y_train >= 0.0))   # softplus output is non-negative

    print("KERNEL_OK")
</pallas_src>

<mosaic_0001>
module attributes {stable_mosaic.version = 11 : i64} {
  func.func @kernel(%arg0: i32, %arg1: memref<1xi32, #tpu.memory_space<smem>>, %arg2: memref<512x384xf32, #tpu.memory_space<vmem>>, %arg3: memref<384x64xbf16, #tpu.memory_space<vmem>>, %arg4: memref<1x64xf32, #tpu.memory_space<vmem>>, %arg5: memref<64x64xbf16, #tpu.memory_space<vmem>>, %arg6: memref<1x64xf32, #tpu.memory_space<vmem>>, %arg7: memref<1x64xf32, #tpu.memory_space<vmem>>, %arg8: memref<1x1xf32, #tpu.memory_space<vmem>>, %arg9: memref<512x1xf32, #tpu.memory_space<vmem>>) attributes {dimension_semantics = [#tpu.dimension_semantics<parallel>], iteration_bounds = array<i64: 1>, scalar_prefetch = 1 : i64, scratch_operands = 0 : i64, tpu.core_type = #tpu.core_type<tc>, window_params = [{transform_indices = @transform_0, window_bounds = array<i64: 512, 384>}, {pipeline_mode = #tpu.pipeline_mode<synchronous>, transform_indices = @transform_1, window_bounds = array<i64: 384, 64>}, {pipeline_mode = #tpu.pipeline_mode<synchronous>, transform_indices = @transform_2, window_bounds = array<i64: 1, 64>}, {pipeline_mode = #tpu.pipeline_mode<synchronous>, transform_indices = @transform_3, window_bounds = array<i64: 64, 64>}, {pipeline_mode = #tpu.pipeline_mode<synchronous>, transform_indices = @transform_4, window_bounds = array<i64: 1, 64>}, {pipeline_mode = #tpu.pipeline_mode<synchronous>, transform_indices = @transform_5, window_bounds = array<i64: 1, 64>}, {pipeline_mode = #tpu.pipeline_mode<synchronous>, transform_indices = @transform_6, window_bounds = array<i64: 1, 1>}, {transform_indices = @transform_7, window_bounds = array<i64: 512, 1>}]} {
    %c0 = arith.constant 0 : index
    %c0_0 = arith.constant 0 : index
    %0 = vector.load %arg2[%c0, %c0_0] : memref<512x384xf32, #tpu.memory_space<vmem>>, vector<512x384xf32>
    %c0_1 = arith.constant 0 : index
    %c0_2 = arith.constant 0 : index
    %1 = vector.load %arg3[%c0_1, %c0_2] : memref<384x64xbf16, #tpu.memory_space<vmem>>, vector<384x64xbf16>
    %c0_3 = arith.constant 0 : index
    %c0_4 = arith.constant 0 : index
    %2 = vector.load %arg4[%c0_3, %c0_4] : memref<1x64xf32, #tpu.memory_space<vmem>>, vector<1x64xf32>
    %3 = arith.truncf %0 : vector<512x384xf32> to vector<512x384xbf16>
    %cst = arith.constant dense<0.000000e+00> : vector<512x64xf32>
    %4 = tpu.matmul %3, %1, %cst {dimension_numbers = #tpu.dot_dimension_numbers<[1], [0], [0], [1], [0, 0, 1, 1], [], []>} : vector<512x384xbf16>, vector<384x64xbf16>, vector<512x64xf32> -> vector<512x64xf32>
    %5 = vector.broadcast %2 : vector<1x64xf32> to vector<512x64xf32>
    %6 = arith.addf %4, %5 : vector<512x64xf32>
    %cst_5 = arith.constant 0.000000e+00 : f32
    %7 = vector.broadcast %cst_5 : f32 to vector<512x64xf32>
    %8 = arith.maximumf %6, %7 : vector<512x64xf32>
    %c0_6 = arith.constant 0 : index
    %c0_7 = arith.constant 0 : index
    %9 = vector.load %arg5[%c0_6, %c0_7] : memref<64x64xbf16, #tpu.memory_space<vmem>>, vector<64x64xbf16>
    %c0_8 = arith.constant 0 : index
    %c0_9 = arith.constant 0 : index
    %10 = vector.load %arg6[%c0_8, %c0_9] : memref<1x64xf32, #tpu.memory_space<vmem>>, vector<1x64xf32>
    %11 = arith.truncf %8 : vector<512x64xf32> to vector<512x64xbf16>
    %cst_10 = arith.constant dense<0.000000e+00> : vector<512x64xf32>
    %12 = tpu.matmul %11, %9, %cst_10 {dimension_numbers = #tpu.dot_dimension_numbers<[1], [0], [0], [1], [0, 0, 1, 1], [], []>} : vector<512x64xbf16>, vector<64x64xbf16>, vector<512x64xf32> -> vector<512x64xf32>
    %13 = vector.broadcast %10 : vector<1x64xf32> to vector<512x64xf32>
    %14 = arith.addf %12, %13 : vector<512x64xf32>
    %cst_11 = arith.constant 0.000000e+00 : f32
    %15 = vector.broadcast %cst_11 : f32 to vector<512x64xf32>
    %16 = arith.maximumf %14, %15 : vector<512x64xf32>
    %c0_12 = arith.constant 0 : index
    %c0_13 = arith.constant 0 : index
    %17 = vector.load %arg7[%c0_12, %c0_13] : memref<1x64xf32, #tpu.memory_space<vmem>>, vector<1x64xf32>
    %c0_14 = arith.constant 0 : index
    %c0_15 = arith.constant 0 : index
    %18 = vector.load %arg8[%c0_14, %c0_15] : memref<1x1xf32, #tpu.memory_space<vmem>>, vector<1x1xf32>
    %19 = vector.broadcast %17 : vector<1x64xf32> to vector<512x64xf32>
    %20 = arith.mulf %16, %19 : vector<512x64xf32>
    %cst_16 = arith.constant dense<0.000000e+00> : vector<512xf32>
    %21 = vector.multi_reduction <add>, %20, %cst_16 [1] : vector<512x64xf32> to vector<512xf32>
    %22 = vector.shape_cast %21 : vector<512xf32> to vector<512x1xf32>
    %23 = vector.broadcast %18 : vector<1x1xf32> to vector<512x1xf32>
    %24 = arith.addf %22, %23 : vector<512x1xf32>
    %cst_17 = arith.constant 2.000000e+01 : f32
    %25 = vector.broadcast %cst_17 : f32 to vector<512x1xf32>
    %26 = arith.cmpf ogt, %24, %25 : vector<512x1xf32>
    %cst_18 = arith.constant 2.000000e+01 : f32
    %27 = vector.broadcast %cst_18 : f32 to vector<512x1xf32>
    %28 = arith.minimumf %24, %27 : vector<512x1xf32>
    %29 = math.exp %28 : vector<512x1xf32>
    %30 = math.log1p %29 : vector<512x1xf32>
    %31 = arith.select %26, %24, %30 : vector<512x1xi1>, vector<512x1xf32>
    %c0_19 = arith.constant 0 : index
    %c0_20 = arith.constant 0 : index
    %32 = vector.load %arg9[%c0_19, %c0_20] : memref<512x1xf32, #tpu.memory_space<vmem>>, vector<512x1xf32>
    tpu.vector_store %arg9[%c0_19, %c0_20], %31 {strides = array<i32>} : memref<512x1xf32, #tpu.memory_space<vmem>>, vector<512x1xf32>,
    return
  }
  func.func @transform_0(%arg0: i32, %arg1: memref<1xi32, #tpu.memory_space<smem>>) -> (i32, i32) {
    %c0_i32 = arith.constant 0 : i32
    %c0_i32_0 = arith.constant 0 : i32
    return %arg0, %c0_i32 : i32, i32
  }
  func.func @transform_1(%arg0: i32, %arg1: memref<1xi32, #tpu.memory_space<smem>>) -> (i32, i32) {
    %c0_i32 = arith.constant 0 : i32
    %c0_i32_0 = arith.constant 0 : i32
    %c0_i32_1 = arith.constant 0 : i32
    return %c0_i32, %c0_i32_0 : i32, i32
  }
  func.func @transform_2(%arg0: i32, %arg1: memref<1xi32, #tpu.memory_space<smem>>) -> (i32, i32) {
    %c0_i32 = arith.constant 0 : i32
    %c0_i32_0 = arith.constant 0 : i32
    %c0_i32_1 = arith.constant 0 : i32
    return %c0_i32, %c0_i32_0 : i32, i32
  }
  func.func @transform_3(%arg0: i32, %arg1: memref<1xi32, #tpu.memory_space<smem>>) -> (i32, i32) {
    %c0_i32 = arith.constant 0 : i32
    %c0_i32_0 = arith.constant 0 : i32
    %c0_i32_1 = arith.constant 0 : i32
    return %c0_i32, %c0_i32_0 : i32, i32
  }
  func.func @transform_4(%arg0: i32, %arg1: memref<1xi32, #tpu.memory_space<smem>>) -> (i32, i32) {
    %c0_i32 = arith.constant 0 : i32
    %c0_i32_0 = arith.constant 0 : i32
    %c0_i32_1 = arith.constant 0 : i32
    return %c0_i32, %c0_i32_0 : i32, i32
  }
  func.func @transform_5(%arg0: i32, %arg1: memref<1xi32, #tpu.memory_space<smem>>) -> (i32, i32) {
    %c0_i32 = arith.constant 0 : i32
    %c0_i32_0 = arith.constant 0 : i32
    %c0_i32_1 = arith.constant 0 : i32
    return %c0_i32, %c0_i32_0 : i32, i32
  }
  func.func @transform_6(%arg0: i32, %arg1: memref<1xi32, #tpu.memory_space<smem>>) -> (i32, i32) {
    %c0_i32 = arith.constant 0 : i32
    %c0_i32_0 = arith.constant 0 : i32
    %c0_i32_1 = arith.constant 0 : i32
    return %c0_i32, %c0_i32_0 : i32, i32
  }
  func.func @transform_7(%arg0: i32, %arg1: memref<1xi32, #tpu.memory_space<smem>>) -> (i32, i32) {
    %c0_i32 = arith.constant 0 : i32
    %c0_i32_0 = arith.constant 0 : i32
    return %arg0, %c0_i32 : i32, i32
  }
}

</mosaic_0001>

<bundles_post_ra>
// kernel: tpu_custom_call.1
= control target key start
LH: loop header
LB: loop body
LE: loop exit
PB: predicated region body
PF: predicated region fallthrough
CT: control target
= control target key end

     0   :  { %s5451_s0 = inlined_call_operand.<no memory space> [shape: s32[1], index: 0, kind: input, shape index: {}]   ;;  %s5452_s1 = inlined_call_operand.hbm [shape: f32[512,384], index: 1, kind: input, shape index: {}]   ;;  %s5453_s2 = inlined_call_operand.vmem [shape: bf16[384,64], index: 2, kind: input, shape index: {}]   ;;  %s5454_s3 = inlined_call_operand.vmem [shape: f32[1,64], index: 3, kind: input, shape index: {}]   ;;  %s5455_s4 = inlined_call_operand.vmem [shape: bf16[64,64], index: 4, kind: input, shape index: {}]   ;;  %s5456_s5 = inlined_call_operand.vmem [shape: f32[1,64], index: 5, kind: input, shape index: {}]   ;;  %s5457_s6 = inlined_call_operand.vmem [shape: f32[1,64], index: 6, kind: input, shape index: {}]   ;;  %s5458_s7 = inlined_call_operand.<no memory space> [shape: f32[1,1], index: 7, kind: input, shape index: {}]   ;;  %s5459_s8 = inlined_call_operand.vmem [shape: f32[512,1], index: 8, kind: output, shape index: {}]  }
   0x1   :  { %v14_v0 = vstv %s5458_s7 }
   0x2   :  { %15 = vst [vmem:[#allocation4] sm:$0x1] %v14_v0 }
   0x3   :  { %16 = vsyncpa [#allocation6], 0  ;;  %s3603_s28 = smov [#allocation5]   ;;  %s3579_s10 = scalar_lea.hbm %s5452_s1, 24576 }
   0x4   :  { %s22_s29 = sshll.u32 %s3603_s28, 4  ;;  %p3580_p0 = scmp.ne.s32.totalorder %s5452_s1, %s3579_s10  ;;  %s23_s29 = int_to_ptr.vmem [resolvable:$true] %s22_s29 }
   0x5   :  { %p3583_p1 = scmp.lt.u32.totalorder %s3579_s10, %s5452_s1 }
   0x7   :  { %p3585_p2 = pnand %p3583_p1, %p3580_p0 }
   0x9   :  { %3588 = shalt.err (!%p3585_p2)
}
   0xa   :  { %s3589_s7 = scalar_lea.vmem %s23_s29, 24576  ;;  %p3594_p4 = scmp.lt.s32.totalorder %s23_s29, %s23_s29 }
   0xb   :  { %p3590_p3 = scmp.ne.s32.totalorder %s23_s29, %s3589_s7  ;;  %p3595_p5 = scmp.lt.s32.totalorder %s3589_s7, %s3589_s7 }
   0xd   :  { %p3596_p6 = por %p3595_p5, %p3594_p4 }
   0xf   :  { %p3597_p7 = pnand %p3596_p6, %p3590_p3 }
  0x11   :  { %3600 = shalt.err (!%p3597_p7)
}
  0x12   :  { %s3604_s15 = smov 384   ;;  %s3605_s16 = smov 24  }
  0x13   :  { %28 = dma.hbm_to_vmem [thread:$0]  %s5452_s1, 24576, %s23_s29, [#allocation6], %s3604_s15, %s3604_s15, %s3605_s16  }
  0x14   :  { %3601 = dma.done.wait [#allocation6], 24576  }
  0x15   :  { %3602 = vsyncadd [#allocation6], 4294942720  ;;  %v3606_v1 = vmov 0   ;;  %v3291_v2 = vld [vmem:[%s5453_s2] sm:$0xff]   ;;  %v3292_v3 = vld [vmem:[%s5453_s2 + $0x8] sm:$0xff]   ;;  %vm1245_vm0 = vcmask 523264  }
  0x16   :  { %532 = vmatprep.subr.bf16.mxu0 %v3606_v1  ;;  %v3293_v4 = vld [vmem:[%s5453_s2 + $0x10] sm:$0xff]   ;;  %v3300_v5 = vld [vmem:[%s5453_s2 + $0x80] sm:$0xff]   ;;  %v3294_v6 = vld [vmem:[%s5453_s2 + $0x18] sm:$0xff]   ;;  %vm2925_vm1 = vcmask 7168  }
  0x17   :  { %533 = vmatpush1.bf16.msra.mxu0 %v3291_v2  ;;  %3135 = vmatprep.subr.bf16.mxu1 %v3300_v5  ;;  %v3302_v7 = vld [vmem:[%s5453_s2 + $0x88] sm:$0xff]   ;;  %v3304_v8 = vld [vmem:[%s5453_s2 + $0x90] sm:$0xff]   ;;  %v3295_v9 = vld [vmem:[%s5453_s2 + $0x20] sm:$0xff]  }
  0x18   :  { %534 = vmatprep.subr.bf16.mxu0 %v3606_v1  ;;  %3136 = vmatpush3.bf16.msra.mxu1 %v3300_v5  ;;  %v3306_v10 = vld [vmem:[%s5453_s2 + $0x98] sm:$0xff]   ;;  %v3296_v11 = vld [vmem:[%s5453_s2 + $0x28] sm:$0xff]   ;;  %v3308_v12 = vld [vmem:[%s5453_s2 + $0xa0] sm:$0xff]  }
  0x19   :  { %3137 = vmatprep.subr.bf16.mxu1 %v3302_v7  ;;  %v3297_v13 = vld [vmem:[%s5453_s2 + $0x30] sm:$0xff]   ;;  %v49_v15 = vld [vmem:[#allocation5 + $0x20] sm:$0xff]  ;;  %v3298_v20 = vld [vmem:[%s5453_s2 + $0x38] sm:$0xff]  }
  0x1a   :  { %v46_v14 = vld [vmem:[#allocation5 + $0x8] sm:$0xff]  ;;  %v47_v18 = vld [vmem:[#allocation5 + $0x10] sm:$0xff]  ;;  %v3299_v23 = vld [vmem:[%s5453_s2 + $0x40] sm:$0xff]  }
  0x1b   :  { %535 = vmatpush1.bf16.msra.mxu0 %v3292_v3  ;;  %v3310_v16 = vld [vmem:[%s5453_s2 + $0xa8] sm:$0xff]   ;;  %v287_v17 = vpack.c.bf16 %v49_v15, %v46_v14  ;;  %v3312_v22 = vld [vmem:[%s5453_s2 + $0xb0] sm:$0xff]   ;;  %v3314_v24 = vld [vmem:[%s5453_s2 + $0xb8] sm:$0xff]  }
  0x1c   :  { %536 = vmatprep.subr.bf16.mxu0 %v3606_v1  ;;  %3138 = vmatpush3.bf16.msra.mxu1 %v3302_v7  ;;  %v50_v19 = vld [vmem:[#allocation5 + $0x28] sm:$0xff]  ;;  %v53_v26 = vld [vmem:[#allocation5 + $0x40] sm:$0xff]  ;;  %v56_v27 = vld [vmem:[#allocation5 + $0x58] sm:$0xff] }
  0x1d   :  { %3139 = vmatprep.subr.bf16.mxu1 %v3304_v8  ;;  %v288_v21 = vpack.c.bf16 %v50_v19, %v47_v18  ;;  %564 = vmatprep.mubr.bf16.mxu0 %v287_v17  ;;  %v3301_v25 = vld [vmem:[%s5453_s2 + $0x48] sm:$0xff]   ;;  %v59_v28 = vld [vmem:[#allocation5 + $0x70] sm:$0xff]  ;;  %v291_v31 = vpack.c.bf16 %v56_v27, %v53_v26  ;;  %v68_v35 = vld [vmem:[#allocation5 + $0xb8] sm:$0xff] }
  0x1e   :  { %v62_v29 = vld [vmem:[#allocation5 + $0x88] sm:$0xff]  ;;  %v3305_v33 = vld [vmem:[%s5453_s2 + $0x58] sm:$0xff]   ;;  %v65_v34 = vld [vmem:[#allocation5 + $0xa0] sm:$0xff] }
  0x1f   :  { %537 = vmatpush1.bf16.msra.mxu0 %v3293_v4  ;;  %3151 = vmatprep.mubr.bf16.mxu1 %v288_v21  ;;  %v3303_v30 = vld [vmem:[%s5453_s2 + $0x50] sm:$0xff]   ;;  %v294_v32 = vpack.c.bf16 %v62_v29, %v59_v28  ;;  %v3307_v38 = vld [vmem:[%s5453_s2 + $0x60] sm:$0xff]   ;;  %v297_v39 = vpack.c.bf16 %v68_v35, %v65_v34  ;;  %v3309_v41 = vld [vmem:[%s5453_s2 + $0x68] sm:$0xff]  }
  0x20   :  { %538 = vmatprep.subr.bf16.mxu0 %v3606_v1  ;;  %3140 = vmatpush3.bf16.msra.mxu1 %v3304_v8  ;;  %v71_v36 = vld [vmem:[#allocation5 + $0xd0] sm:$0xff]  ;;  %v74_v37 = vld [vmem:[#allocation5 + $0xe8] sm:$0xff]  ;;  %v77_v42 = vld [vmem:[#allocation5 + $0x100] sm:$0xff] }
  0x21   :  { %3141 = vmatprep.subr.bf16.mxu1 %v3306_v10  ;;  %v300_v40 = vpack.c.bf16 %v74_v37, %v71_v36  ;;  %v80_v43 = vld [vmem:[#allocation5 + $0x118] sm:$0xff]  ;;  %v83_v44 = vld [vmem:[#allocation5 + $0x130] sm:$0xff]  ;;  %v86_v45 = vld [vmem:[#allocation5 + $0x148] sm:$0xff] }
  0x22   :  { %v3311_v46 = vld [vmem:[%s5453_s2 + $0x70] sm:$0xff]   ;;  %v303_v47 = vpack.c.bf16 %v80_v43, %v77_v42  ;;  %v3313_v48 = vld [vmem:[%s5453_s2 + $0x78] sm:$0xff]   ;;  %v306_v49 = vpack.c.bf16 %v86_v45, %v83_v44  ;;  %v45_v50 = vld [vmem:[#allocation5] sm:$0xff] }
  0x23   :  { %539 = vmatpush1.bf16.msra.mxu0 %v3294_v6  ;;  %v48_v51 = vld [vmem:[#allocation5 + $0x18] sm:$0xff]  ;;  %v55_v53 = vld [vmem:[#allocation5 + $0x50] sm:$0xff]  ;;  %v89_v54 = vld [vmem:[#allocation5 + $0x160] sm:$0xff] }
  0x24   :  { %540 = vmatprep.subr.bf16.mxu0 %v3606_v1  ;;  %3142 = vmatpush3.bf16.msra.mxu1 %v3306_v10  ;;  %v52_v52 = vld [vmem:[#allocation5 + $0x38] sm:$0xff]  ;;  %v286_v56 = vpack.c.bf16 %v48_v51, %v45_v50  ;;  %v95_v57 = vld [vmem:[#allocation5 + $0x190] sm:$0xff]  ;;  %v98_v58 = vld [vmem:[#allocation5 + $0x1a8] sm:$0xff] }
  0x25   :  { %3143 = vmatprep.subr.bf16.mxu1 %v3308_v12  ;;  %v92_v55 = vld [vmem:[#allocation5 + $0x178] sm:$0xff]  ;;  %v290_v59 = vpack.c.bf16 %v55_v53, %v52_v52  ;;  %v312_v61 = vpack.c.bf16 %v98_v58, %v95_v57  ;;  %v51_v62 = vld [vmem:[#allocation5 + $0x30] sm:$0xff]  ;;  %v54_v63 = vld [vmem:[#allocation5 + $0x48] sm:$0xff] }
  0x26   :  { %v309_v60 = vpack.c.bf16 %v92_v55, %v89_v54  ;;  %v58_v0 = vld [vmem:[#allocation5 + $0x68] sm:$0xff]  ;;  %v61_v2 = vld [vmem:[#allocation5 + $0x80] sm:$0xff]  ;;  %v104_v3 = vld [vmem:[#allocation5 + $0x1d8] sm:$0xff]  ;;  %v289_v4 = vpack.c.bf16 %v54_v63, %v51_v62 }
  0x27   :  { %541 = vmatpush1.bf16.msra.mxu0 %v3295_v9  ;;  %v107_v5 = vld [vmem:[#allocation5 + $0x1f0] sm:$0xff]  ;;  %v110_v6 = vld [vmem:[#allocation5 + $0x208] sm:$0xff]  ;;  %v293_v7 = vpack.c.bf16 %v61_v2, %v58_v0  ;;  %v57_v10 = vld [vmem:[#allocation5 + $0x60] sm:$0xff] }
  0x28   :  { %542 = vmatprep.subr.bf16.mxu0 %v3606_v1  ;;  %3144 = vmatpush3.bf16.msra.mxu1 %v3308_v12  ;;  %v318_v9 = vpack.c.bf16 %v110_v6, %v107_v5  ;;  %v64_v12 = vld [vmem:[#allocation5 + $0x98] sm:$0xff]  ;;  %v113_v14 = vld [vmem:[#allocation5 + $0x220] sm:$0xff]  ;;  %v119_v17 = vld [vmem:[#allocation5 + $0x250] sm:$0xff] }
  0x29   :  { %3145 = vmatprep.subr.bf16.mxu1 %v3310_v16  ;;  %v116_v15 = vld [vmem:[#allocation5 + $0x238] sm:$0xff]  ;;  %v122_v18 = vld [vmem:[#allocation5 + $0x268] sm:$0xff]  ;;  %v125_v26 = vld [vmem:[#allocation5 + $0x280] sm:$0xff] }
  0x2a   :  { %v324_v21 = vpack.c.bf16 %v122_v18, %v119_v17  ;;  %v128_v27 = vld [vmem:[#allocation5 + $0x298] sm:$0xff]  ;;  %v131_v29 = vld [vmem:[#allocation5 + $0x2b0] sm:$0xff]  ;;  %v69_v34 = vld [vmem:[#allocation5 + $0xc0] sm:$0xff] }
  0x2b   :  { %543 = vmatpush1.bf16.msra.mxu0 %v3296_v11  ;;  %v60_v11 = vld [vmem:[#allocation5 + $0x78] sm:$0xff]  ;;  %v79_v37 = vld [vmem:[#allocation5 + $0x110] sm:$0xff]  ;;  %v146_v42 = vld [vmem:[#allocation5 + $0x328] sm:$0xff] }
  0x2c   :  { %544 = vmatprep.subr.bf16.mxu0 %v3606_v1  ;;  %3146 = vmatpush3.bf16.msra.mxu1 %v3310_v16  ;;  %v292_v16 = vpack.c.bf16 %v60_v11, %v57_v10  ;;  %v72_v35 = vld [vmem:[#allocation5 + $0xd8] sm:$0xff]  ;;  %v149_v50 = vld [vmem:[#allocation5 + $0x340] sm:$0xff]  ;;  %v155_v53 = vld [vmem:[#allocation5 + $0x370] sm:$0xff] }
  0x2d   :  { %3147 = vmatprep.subr.bf16.mxu1 %v3312_v22  ;;  %v76_v36 = vld [vmem:[#allocation5 + $0xf8] sm:$0xff]  ;;  %v158_v54 = vld [vmem:[#allocation5 + $0x388] sm:$0xff]  ;;  %v81_v58 = vld [vmem:[#allocation5 + $0x120] sm:$0xff] }
  0x2e   :  { %v302_v43 = vpack.c.bf16 %v79_v37, %v76_v36  ;;  %v152_v51 = vld [vmem:[#allocation5 + $0x358] sm:$0xff]  ;;  %v342_v57 = vpack.c.bf16 %v158_v54, %v155_v53  ;;  %v161_v62 = vld [vmem:[#allocation5 + $0x3a0] sm:$0xff]  ;;  %v167_v2 = vld [vmem:[#allocation5 + $0x3d0] sm:$0xff] }
  0x2f   :  { %545 = vmatpush1.bf16.msra.mxu0 %v3297_v13  ;;  %v67_v13 = vld [vmem:[#allocation5 + $0xb0] sm:$0xff]  ;;  %v164_v63 = vld [vmem:[#allocation5 + $0x3b8] sm:$0xff]  ;;  %v173_v10 = vld [vmem:[#allocation5 + $0x400] sm:$0xff] }
  0x30   :  { %546 = vmatprep.subr.bf16.mxu0 %v3606_v1  ;;  %3148 = vmatpush3.bf16.msra.mxu1 %v3312_v22  ;;  %v296_v19 = vpack.c.bf16 %v67_v13, %v64_v12  ;;  %v63_v22 = vld [vmem:[#allocation5 + $0x90] sm:$0xff]  ;;  %v176_v11 = vld [vmem:[#allocation5 + $0x418] sm:$0xff]  ;;  %v93_v18 = vld [vmem:[#allocation5 + $0x180] sm:$0xff] }
  0x31   :  { %3149 = vmatprep.subr.bf16.mxu1 %v3314_v24  ;;  %v87_v6 = vld [vmem:[#allocation5 + $0x150] sm:$0xff]  ;;  %v218_v54 = vld [vmem:[#allocation5 + $0x568] sm:$0xff] }
  0x32   :  { %v179_v13 = vld [vmem:[#allocation5 + $0x430] sm:$0xff] }
  0x33   :  { %547 = vmatpush1.bf16.msra.mxu0 %v3298_v20  ;;  %v321_v20 = vpack.c.bf16 %v116_v15, %v113_v14  ;;  %v182_v14 = vld [vmem:[#allocation5 + $0x448] sm:$0xff]  ;;  %v215_v53 = vld [vmem:[#allocation5 + $0x550] sm:$0xff] }
  0x34   :  { %548 = vmatprep.subr.bf16.mxu0 %v3606_v1  ;;  %3150 = vmatpush3.bf16.msra.mxu1 %v3314_v24  ;;  %v70_v24 = vld [vmem:[#allocation5 + $0xc8] sm:$0xff]  ;;  %v354_v17 = vpack.c.bf16 %v182_v14, %v179_v13  ;;  %v3318_v14 = vld [vmem:[%s5455_s4 + $0x18] sm:$0xff]  }
  0x37   :  { %549 = vmatpush1.bf16.msra.mxu0 %v3299_v23  ;;  %3152 = vmatmul.mubr.bf16.vlgmr.msra.gmra.mrb[0].mxu1 %v291_v31  ;;  %v66_v23 = vld [vmem:[#allocation5 + $0xa8] sm:$0xff] }
  0x38   :  { %550 = vmatprep.subr.bf16.mxu0 %v3606_v1  ;;  %3155 = vmatprep.mubr.bf16.mxu1 %v294_v32  ;;  %v295_v28 = vpack.c.bf16 %v66_v23, %v63_v22  ;;  %v327_v32 = vpack.c.bf16 %v128_v27, %v125_v26  ;;  %v185_v22 = vld [vmem:[#allocation5 + $0x460] sm:$0xff]  ;;  %v188_v23 = vld [vmem:[#allocation5 + $0x478] sm:$0xff]  ;;  %v191_v26 = vld [vmem:[#allocation5 + $0x490] sm:$0xff] }
  0x39   :  { %v194_v27 = vld [vmem:[#allocation5 + $0x4a8] sm:$0xff] }
  0x3b   :  { %551 = vmatpush1.bf16.msra.mxu0 %v3301_v25  ;;  %v73_v25 = vld [vmem:[#allocation5 + $0xe0] sm:$0xff] }
  0x3c   :  { %552 = vmatprep.subr.bf16.mxu0 %v3606_v1  ;;  %v299_v31 = vpack.c.bf16 %v73_v25, %v70_v24 }
  0x3f   :  { %553 = vmatpush1.bf16.msra.mxu0 %v3303_v30  ;;  %3156 = vmatmul.mubr.bf16.gmra.mrb[4].mxu1 %v297_v39  ;;  %v134_v30 = vld [vmem:[#allocation5 + $0x2c8] sm:$0xff]  ;;  %v140_v39 = vld [vmem:[#allocation5 + $0x2f8] sm:$0xff] }
  0x40   :  { %554 = vmatprep.subr.bf16.mxu0 %v3606_v1  ;;  %3159 = vmatprep.mubr.bf16.mxu1 %v300_v40  ;;  %v298_v40 = vpack.c.bf16 %v72_v35, %v69_v34  ;;  %v197_v34 = vld [vmem:[#allocation5 + $0x4c0] sm:$0xff]  ;;  %v200_v35 = vld [vmem:[#allocation5 + $0x4d8] sm:$0xff] }
  0x43   :  { %555 = vmatpush1.bf16.msra.mxu0 %v3305_v33  ;;  %v330_v33 = vpack.c.bf16 %v134_v30, %v131_v29  ;;  %v360_v29 = vpack.c.bf16 %v194_v27, %v191_v26  ;;  %v99_v30 = vld [vmem:[#allocation5 + $0x1b0] sm:$0xff] }
  0x44   :  { %556 = vmatprep.subr.bf16.mxu0 %v3606_v1  ;;  %v135_v27 = vld [vmem:[#allocation5 + $0x2d0] sm:$0xff] }
  0x47   :  { %557 = vmatpush1.bf16.msra.mxu0 %v3307_v38  ;;  %3160 = vmatmul.mubr.bf16.gmra.mrb[8].mxu1 %v303_v47  ;;  %v137_v38 = vld [vmem:[#allocation5 + $0x2e0] sm:$0xff]  ;;  %v78_v47 = vld [vmem:[#allocation5 + $0x108] sm:$0xff] }
  0x48   :  { %558 = vmatprep.subr.bf16.mxu0 %v3606_v1  ;;  %3163 = vmatprep.mubr.bf16.mxu1 %v306_v49  ;;  %v333_v44 = vpack.c.bf16 %v140_v39, %v137_v38  ;;  %v85_v49 = vld [vmem:[#allocation5 + $0x140] sm:$0xff]  ;;  %v363_v38 = vpack.c.bf16 %v200_v35, %v197_v34  ;;  %v203_v39 = vld [vmem:[#allocation5 + $0x4f0] sm:$0xff]  ;;  %v144_v34 = vld [vmem:[#allocation5 + $0x318] sm:$0xff] }
  0x49   :  { %v148_v35 = vld [vmem:[#allocation5 + $0x338] sm:$0xff] }
  0x4b   :  { %559 = vmatpush1.bf16.msra.mxu0 %v3309_v41  ;;  %v143_v41 = vld [vmem:[#allocation5 + $0x310] sm:$0xff] }
  0x4c   :  { %560 = vmatprep.subr.bf16.mxu0 %v3606_v1  ;;  %v336_v45 = vpack.c.bf16 %v146_v42, %v143_v41  ;;  %v105_v41 = vld [vmem:[#allocation5 + $0x1e0] sm:$0xff]  ;;  %v108_v42 = vld [vmem:[#allocation5 + $0x1f8] sm:$0xff] }
  0x4f   :  { %561 = vmatpush1.bf16.msra.mxu0 %v3311_v46  ;;  %3164 = vmatmul.mubr.bf16.gmra.mrb[12].mxu1 %v309_v60  ;;  %v75_v46 = vld [vmem:[#allocation5 + $0xf0] sm:$0xff]  ;;  %v88_v60 = vld [vmem:[#allocation5 + $0x158] sm:$0xff] }
  0x50   :  { %562 = vmatprep.subr.bf16.mxu0 %v3606_v1  ;;  %3167 = vmatprep.mubr.bf16.mxu1 %v312_v61  ;;  %v101_v1 = vld [vmem:[#allocation5 + $0x1c0] sm:$0xff]  ;;  %v301_v52 = vpack.c.bf16 %v78_v47, %v75_v46  ;;  %v91_v61 = vld [vmem:[#allocation5 + $0x170] sm:$0xff]  ;;  %v212_v47 = vld [vmem:[#allocation5 + $0x538] sm:$0xff] }
  0x51   :  { %v315_v8 = vpack.c.bf16 %v104_v3, %v101_v1  ;;  %v170_v1 = vld [vmem:[#allocation5 + $0x3e8] sm:$0xff]  ;;  %v308_v3 = vpack.c.bf16 %v91_v61, %v88_v60  ;;  %v209_v46 = vld [vmem:[#allocation5 + $0x520] sm:$0xff] }
  0x52   :  { %v348_v5 = vpack.c.bf16 %v170_v1, %v167_v2  ;;  %v3315_v61 = vld [vmem:[%s5455_s4] sm:$0xff]   ;;  %v3316_v2 = vld [vmem:[%s5455_s4 + $0x8] sm:$0xff]  }
  0x53   :  { %563 = vmatpush1.bf16.msra.mxu0 %v3313_v48  ;;  %v82_v48 = vld [vmem:[#allocation5 + $0x128] sm:$0xff]  ;;  %3215 = vmatprep.subr.bf16.mxu1 %v3315_v61  ;;  %v120_v1 = vld [vmem:[#allocation5 + $0x258] sm:$0xff] }
  0x54   :  { %v305_v55 = vpack.c.bf16 %v85_v49, %v82_v48  ;;  %v316_v48 = vpack.c.bf16 %v108_v42, %v105_v41  ;;  %3216 = vmatpush3.bf16.msra.mxu1 %v3315_v61  ;;  %v154_v41 = vld [vmem:[#allocation5 + $0x368] sm:$0xff]  ;;  %v157_v42 = vld [vmem:[#allocation5 + $0x380] sm:$0xff] }
  0x55   :  { %3217 = vmatprep.subr.bf16.mxu1 %v3316_v2 }
  0x56   :  { %565 = vmatmul.mubr.bf16.vlgmr.msra.gmra.mrb[0].mxu0 %v286_v56  ;;  %v339_v56 = vpack.c.bf16 %v152_v51, %v149_v50  ;;  %v369_v50 = vpack.c.bf16 %v212_v47, %v209_v46  ;;  %v111_v51 = vld [vmem:[#allocation5 + $0x210] sm:$0xff]  ;;  %v156_v46 = vld [vmem:[#allocation5 + $0x378] sm:$0xff] }
  0x57   :  { %572 = vmatprep.mubr.bf16.mxu0 %v290_v59  ;;  %3168 = vmatmul.mubr.bf16.gmra.mrb[16].mxu1 %v315_v8  ;;  %v84_v59 = vld [vmem:[#allocation5 + $0x138] sm:$0xff]  ;;  %v94_v8 = vld [vmem:[#allocation5 + $0x188] sm:$0xff] }
  0x58   :  { %3171 = vmatprep.mubr.bf16.mxu1 %v318_v9  ;;  %v304_v0 = vpack.c.bf16 %v84_v59, %v81_v58  ;;  %v97_v9 = vld [vmem:[#allocation5 + $0x1a0] sm:$0xff]  ;;  %v224_v59 = vld [vmem:[#allocation5 + $0x598] sm:$0xff]  ;;  %3218 = vmatpush3.bf16.msra.mxu1 %v3316_v2  ;;  %v178_v2 = vld [vmem:[#allocation5 + $0x428] sm:$0xff] }
  0x59   :  { %v311_v15 = vpack.c.bf16 %v97_v9, %v94_v8  ;;  %v221_v58 = vld [vmem:[#allocation5 + $0x580] sm:$0xff]  ;;  %v236_v9 = vld [vmem:[#allocation5 + $0x5f8] sm:$0xff] }
  0x5a   :  { %v233_v8 = vld [vmem:[#allocation5 + $0x5e0] sm:$0xff]  ;;  %v160_v47 = vld [vmem:[#allocation5 + $0x398] sm:$0xff] }
  0x5b   :  { %v381_v13 = vpack.c.bf16 %v236_v9, %v233_v8  ;;  %v187_v8 = vld [vmem:[#allocation5 + $0x470] sm:$0xff] }
  0x5e   :  { %573 = vmatmul.mubr.bf16.gmra.mrb[4].mxu0 %v289_v4  ;;  %v345_v4 = vpack.c.bf16 %v164_v63, %v161_v62  ;;  %v375_v63 = vpack.c.bf16 %v224_v59, %v221_v58  ;;  %v168_v58 = vld [vmem:[#allocation5 + $0x3d8] sm:$0xff] }
  0x5f   :  { %580 = vmatprep.mubr.bf16.mxu0 %v293_v7  ;;  %3172 = vmatmul.mubr.bf16.gmra.mrb[20].mxu1 %v321_v20  ;;  %v90_v7 = vld [vmem:[#allocation5 + $0x168] sm:$0xff]  ;;  %v100_v20 = vld [vmem:[#allocation5 + $0x1b8] sm:$0xff] }
  0x60   :  { %3175 = vmatprep.mubr.bf16.mxu1 %v324_v21  ;;  %v307_v12 = vpack.c.bf16 %v90_v7, %v87_v6  ;;  %v103_v21 = vld [vmem:[#allocation5 + $0x1d0] sm:$0xff]  ;;  %v172_v59 = vld [vmem:[#allocation5 + $0x3f8] sm:$0xff] }
  0x61   :  { %v314_v25 = vpack.c.bf16 %v103_v21, %v100_v20  ;;  %v127_v6 = vld [vmem:[#allocation5 + $0x290] sm:$0xff]  ;;  %v129_v21 = vld [vmem:[#allocation5 + $0x2a0] sm:$0xff] }
  0x66   :  { %581 = vmatmul.mubr.bf16.gmra.mrb[8].mxu0 %v292_v16  ;;  %v351_v16 = vpack.c.bf16 %v176_v11, %v173_v10  ;;  %v3317_v11 = vld [vmem:[%s5455_s4 + $0x10] sm:$0xff]  }
  0x67   :  { %588 = vmatprep.mubr.bf16.mxu0 %v296_v19  ;;  %3176 = vmatmul.mubr.bf16.gmra.mrb[24].mxu1 %v327_v32  ;;  %v96_v19 = vld [vmem:[#allocation5 + $0x198] sm:$0xff]  ;;  %v106_v32 = vld [vmem:[#allocation5 + $0x1e8] sm:$0xff] }
  0x68   :  { %3179 = vmatprep.mubr.bf16.mxu1 %v330_v33  ;;  %v310_v24 = vpack.c.bf16 %v96_v19, %v93_v18  ;;  %v109_v33 = vld [vmem:[#allocation5 + $0x200] sm:$0xff]  ;;  %3219 = vmatprep.subr.bf16.mxu1 %v3317_v11 }
  0x69   :  { %v317_v37 = vpack.c.bf16 %v109_v33, %v106_v32  ;;  %3220 = vmatpush3.bf16.msra.mxu1 %v3317_v11  ;;  %v133_v18 = vld [vmem:[#allocation5 + $0x2c0] sm:$0xff]  ;;  %v183_v11 = vld [vmem:[#allocation5 + $0x450] sm:$0xff] }
  0x6a   :  { %3221 = vmatprep.subr.bf16.mxu1 %v3318_v14  ;;  %v141_v33 = vld [vmem:[#allocation5 + $0x300] sm:$0xff] }
  0x6d   :  { %3222 = vmatpush3.bf16.msra.mxu1 %v3318_v14  ;;  %v193_v14 = vld [vmem:[#allocation5 + $0x4a0] sm:$0xff] }
  0x6e   :  { %589 = vmatmul.mubr.bf16.gmra.mrb[12].mxu0 %v295_v28  ;;  %v357_v28 = vpack.c.bf16 %v188_v23, %v185_v22  ;;  %v132_v22 = vld [vmem:[#allocation5 + $0x2b8] sm:$0xff] }
  0x6f   :  { %596 = vmatprep.mubr.bf16.mxu0 %v299_v31  ;;  %3180 = vmatmul.mubr.bf16.gmra.mrb[28].mxu1 %v333_v44  ;;  %v102_v31 = vld [vmem:[#allocation5 + $0x1c8] sm:$0xff]  ;;  %v112_v44 = vld [vmem:[#allocation5 + $0x218] sm:$0xff] }
  0x70   :  { %3183 = vmatprep.mubr.bf16.mxu1 %v336_v45  ;;  %v313_v36 = vpack.c.bf16 %v102_v31, %v99_v30  ;;  %v115_v45 = vld [vmem:[#allocation5 + $0x230] sm:$0xff]  ;;  %v136_v23 = vld [vmem:[#allocation5 + $0x2d8] sm:$0xff]  ;;  %v145_v30 = vld [vmem:[#allocation5 + $0x320] sm:$0xff] }
  0x71   :  { %v320_v49 = vpack.c.bf16 %v115_v45, %v112_v44  ;;  %v341_v44 = vpack.c.bf16 %v157_v42, %v154_v41  ;;  %v153_v45 = vld [vmem:[#allocation5 + $0x360] sm:$0xff] }
  0x76   :  { %597 = vmatmul.mubr.bf16.gmra.mrb[16].mxu0 %v298_v40  ;;  %v206_v40 = vld [vmem:[#allocation5 + $0x508] sm:$0xff] }
  0x77   :  { %604 = vmatprep.mubr.bf16.mxu0 %v302_v43  ;;  %3184 = vmatmul.mubr.bf16.gmra.mrb[32].mxu1 %v339_v56  ;;  %v366_v43 = vpack.c.bf16 %v206_v40, %v203_v39  ;;  %v121_v56 = vld [vmem:[#allocation5 + $0x260] sm:$0xff]  ;;  %v147_v39 = vld [vmem:[#allocation5 + $0x330] sm:$0xff]  ;;  %v150_v40 = vld [vmem:[#allocation5 + $0x348] sm:$0xff] }
  0x78   :  { %3187 = vmatprep.mubr.bf16.mxu1 %v342_v57  ;;  %v372_v57 = vpack.c.bf16 %v218_v54, %v215_v53  ;;  %v166_v53 = vld [vmem:[#allocation5 + $0x3c8] sm:$0xff]  ;;  %v169_v54 = vld [vmem:[#allocation5 + $0x3e0] sm:$0xff] }
  0x7e   :  { %605 = vmatmul.mubr.bf16.gmra.mrb[20].mxu0 %v301_v52  ;;  %v114_v52 = vld [vmem:[#allocation5 + $0x228] sm:$0xff] }
  0x7f   :  { %612 = vmatprep.mubr.bf16.mxu0 %v305_v55  ;;  %3188 = vmatmul.mubr.bf16.gmra.mrb[36].mxu1 %v345_v4  ;;  %v118_v55 = vld [vmem:[#allocation5 + $0x248] sm:$0xff]  ;;  %v319_v60 = vpack.c.bf16 %v114_v52, %v111_v51  ;;  %v159_v51 = vld [vmem:[#allocation5 + $0x390] sm:$0xff] }
  0x80   :  { %3191 = vmatprep.mubr.bf16.mxu1 %v348_v5  ;;  %v323_v62 = vpack.c.bf16 %v121_v56, %v118_v55  ;;  %v230_v4 = vld [vmem:[#allocation5 + $0x5c8] sm:$0xff]  ;;  %v124_v5 = vld [vmem:[#allocation5 + $0x278] sm:$0xff]  ;;  %v347_v56 = vpack.c.bf16 %v169_v54, %v166_v53 }
  0x81   :  { %v162_v52 = vld [vmem:[#allocation5 + $0x3a8] sm:$0xff] }
  0x82   :  { %v343_v55 = vpack.c.bf16 %v162_v52, %v159_v51  ;;  %v217_v51 = vld [vmem:[#allocation5 + $0x560] sm:$0xff] }
  0x86   :  { %613 = vmatmul.mubr.bf16.gmra.mrb[24].mxu0 %v304_v0  ;;  %v117_v0 = vld [vmem:[#allocation5 + $0x240] sm:$0xff] }
  0x87   :  { %620 = vmatprep.mubr.bf16.mxu0 %v308_v3  ;;  %3192 = vmatmul.mubr.bf16.gmra.mrb[40].mxu1 %v351_v16  ;;  %v227_v3 = vld [vmem:[#allocation5 + $0x5b0] sm:$0xff]  ;;  %v322_v10 = vpack.c.bf16 %v120_v1, %v117_v0  ;;  %v126_v16 = vld [vmem:[#allocation5 + $0x288] sm:$0xff]  ;;  %v181_v1 = vld [vmem:[#allocation5 + $0x440] sm:$0xff] }
  0x88   :  { %3195 = vmatprep.mubr.bf16.mxu1 %v354_v17  ;;  %v378_v7 = vpack.c.bf16 %v230_v4, %v227_v3  ;;  %v130_v17 = vld [vmem:[#allocation5 + $0x2a8] sm:$0xff]  ;;  %v353_v4 = vpack.c.bf16 %v181_v1, %v178_v2  ;;  %v213_v1 = vld [vmem:[#allocation5 + $0x540] sm:$0xff] }
  0x89   :  { %v329_v20 = vpack.c.bf16 %v133_v18, %v130_v17  ;;  %v174_v0 = vld [vmem:[#allocation5 + $0x408] sm:$0xff]  ;;  %v189_v17 = vld [vmem:[#allocation5 + $0x480] sm:$0xff]  ;;  %v192_v18 = vld [vmem:[#allocation5 + $0x498] sm:$0xff] }
  0x8e   :  { %621 = vmatmul.mubr.bf16.gmra.mrb[28].mxu0 %v307_v12  ;;  %v326_v12 = vpack.c.bf16 %v127_v6, %v124_v5  ;;  %v177_v5 = vld [vmem:[#allocation5 + $0x420] sm:$0xff]  ;;  %v180_v6 = vld [vmem:[#allocation5 + $0x438] sm:$0xff] }
  0x8f   :  { %628 = vmatprep.mubr.bf16.mxu0 %v311_v15  ;;  %3196 = vmatmul.mubr.bf16.gmra.mrb[44].mxu1 %v357_v28  ;;  %v123_v15 = vld [vmem:[#allocation5 + $0x270] sm:$0xff]  ;;  %v138_v28 = vld [vmem:[#allocation5 + $0x2e8] sm:$0xff]  ;;  %v352_v9 = vpack.c.bf16 %v180_v6, %v177_v5  ;;  %v220_v6 = vld [vmem:[#allocation5 + $0x578] sm:$0xff] }
  0x90   :  { %3199 = vmatprep.mubr.bf16.mxu1 %v360_v29  ;;  %v325_v19 = vpack.c.bf16 %v126_v16, %v123_v15  ;;  %v142_v29 = vld [vmem:[#allocation5 + $0x308] sm:$0xff]  ;;  %v331_v31 = vpack.c.bf16 %v138_v28, %v135_v27  ;;  %v195_v27 = vld [vmem:[#allocation5 + $0x4b0] sm:$0xff] }
  0x91   :  { %v335_v32 = vpack.c.bf16 %v145_v30, %v142_v29  ;;  %v198_v28 = vld [vmem:[#allocation5 + $0x4c8] sm:$0xff]  ;;  %v205_v30 = vld [vmem:[#allocation5 + $0x500] sm:$0xff] }
  0x92   :  { %v202_v29 = vld [vmem:[#allocation5 + $0x4e8] sm:$0xff] }
  0x96   :  { %629 = vmatmul.mubr.bf16.gmra.mrb[32].mxu0 %v310_v24  ;;  %v139_v24 = vld [vmem:[#allocation5 + $0x2f0] sm:$0xff] }
  0x97   :  { %636 = vmatprep.mubr.bf16.mxu0 %v314_v25  ;;  %3200 = vmatmul.mubr.bf16.gmra.mrb[48].mxu1 %v363_v38  ;;  %v328_v25 = vpack.c.bf16 %v132_v22, %v129_v21  ;;  %v332_v26 = vpack.c.bf16 %v139_v24, %v136_v23  ;;  %v358_v21 = vpack.c.bf16 %v192_v18, %v189_v17 }
  0x98   :  { %3203 = vmatprep.mubr.bf16.mxu1 %v366_v43  ;;  %v337_v43 = vpack.c.bf16 %v150_v40, %v147_v39  ;;  %v208_v39 = vld [vmem:[#allocation5 + $0x518] sm:$0xff]  ;;  %v211_v40 = vld [vmem:[#allocation5 + $0x530] sm:$0xff] }
  0x99   :  { %v368_v42 = vpack.c.bf16 %v211_v40, %v208_v39 }
  0x9e   :  { %637 = vmatmul.mubr.bf16.gmra.mrb[36].mxu0 %v313_v36  ;;  %v151_v36 = vld [vmem:[#allocation5 + $0x350] sm:$0xff] }
  0x9f   :  { %644 = vmatprep.mubr.bf16.mxu0 %v317_v37  ;;  %3204 = vmatmul.mubr.bf16.gmra.mrb[52].mxu1 %v369_v50  ;;  %v334_v37 = vpack.c.bf16 %v144_v34, %v141_v33  ;;  %v338_v38 = vpack.c.bf16 %v151_v36, %v148_v35 }
  0xa0   :  { %3207 = vmatprep.mubr.bf16.mxu1 %v372_v57  ;;  %v165_v57 = vld [vmem:[#allocation5 + $0x3c0] sm:$0xff] }
  0xa1   :  { %v346_v61 = vpack.c.bf16 %v168_v58, %v165_v57 }
  0xa6   :  { %645 = vmatmul.mubr.bf16.gmra.mrb[40].mxu0 %v316_v48  ;;  %v163_v48 = vld [vmem:[#allocation5 + $0x3b0] sm:$0xff] }
  0xa7   :  { %652 = vmatprep.mubr.bf16.mxu0 %v320_v49  ;;  %3208 = vmatmul.mubr.bf16.gmra.mrb[56].mxu1 %v375_v63  ;;  %v340_v49 = vpack.c.bf16 %v156_v46, %v153_v45  ;;  %v344_v50 = vpack.c.bf16 %v163_v48, %v160_v47  ;;  %v171_v63 = vld [vmem:[#allocation5 + $0x3f0] sm:$0xff]  ;;  %v3790_v47 = vld [vmem:[%s5454_s3] ss:$0 sm:$0xff] }
  0xa8   :  { %3211 = vmatprep.mubr.bf16.mxu1 %v378_v7  ;;  %v349_v3 = vpack.c.bf16 %v174_v0, %v171_v63  ;;  %v184_v7 = vld [vmem:[#allocation5 + $0x458] sm:$0xff]  ;;  %v207_v48 = vld [vmem:[#allocation5 + $0x510] sm:$0xff] }
  0xae   :  { %653 = vmatmul.mubr.bf16.gmra.mrb[44].mxu0 %v319_v60  ;;  %v175_v60 = vld [vmem:[#allocation5 + $0x410] sm:$0xff] }
  0xaf   :  { %660 = vmatprep.mubr.bf16.mxu0 %v323_v62  ;;  %3212 = vmatmul.mubr.bf16.gmra.mrb[60].mxu1 %v381_v13  ;;  %v350_v62 = vpack.c.bf16 %v175_v60, %v172_v59  ;;  %v190_v13 = vld [vmem:[#allocation5 + $0x488] sm:$0xff] }
  0xb0   :  { %v359_v16 = vpack.c.bf16 %v193_v14, %v190_v13 }
  0xb6   :  { %661 = vmatmul.mubr.bf16.gmra.mrb[48].mxu0 %v322_v10  ;;  %v356_v10 = vpack.c.bf16 %v187_v8, %v184_v7  ;;  %v223_v7 = vld [vmem:[#allocation5 + $0x590] sm:$0xff] }
  0xb7   :  { %668 = vmatprep.mubr.bf16.mxu0 %v326_v12  ;;  %v186_v12 = vld [vmem:[#allocation5 + $0x468] sm:$0xff]  ;;  %v374_v14 = vpack.c.bf16 %v223_v7, %v220_v6 }
  0xb8   :  { %v355_v15 = vpack.c.bf16 %v186_v12, %v183_v11 }
  0xbe   :  { %669 = vmatmul.mubr.bf16.gmra.mrb[52].mxu0 %v325_v19  ;;  %v196_v19 = vld [vmem:[#allocation5 + $0x4b8] sm:$0xff] }
  0xbf   :  { %676 = vmatprep.mubr.bf16.mxu0 %v329_v20  ;;  %v199_v20 = vld [vmem:[#allocation5 + $0x4d0] sm:$0xff] }
  0xc0   :  { %v362_v22 = vpack.c.bf16 %v199_v20, %v196_v19 }
  0xc6   :  { %677 = vmatmul.mubr.bf16.gmra.mrb[56].mxu0 %v328_v25 }
  0xc7   :  { %684 = vmatprep.mubr.bf16.mxu0 %v332_v26 }
  0xce   :  { %685 = vmatmul.mubr.bf16.gmra.mrb[60].mxu0 %v331_v31  ;;  %v361_v31 = vpack.c.bf16 %v198_v28, %v195_v27 }
  0xcf   :  { %692 = vmatprep.mubr.bf16.mxu0 %v335_v32  ;;  %v365_v32 = vpack.c.bf16 %v205_v30, %v202_v29  ;;  %v229_v29 = vld [vmem:[#allocation5 + $0x5c0] sm:$0xff] }
  0xd6   :  { %693 = vmatmul.mubr.bf16.gmra.mrb[64].mxu0 %v334_v37  ;;  %v201_v37 = vld [vmem:[#allocation5 + $0x4e0] sm:$0xff] }
  0xd7   :  { %700 = vmatprep.mubr.bf16.mxu0 %v338_v38  ;;  %v204_v38 = vld [vmem:[#allocation5 + $0x4f8] sm:$0xff] }
  0xd8   :  { %v364_v41 = vpack.c.bf16 %v204_v38, %v201_v37 }
  0xde   :  { %701 = vmatmul.mubr.bf16.gmra.mrb[68].mxu0 %v337_v43 }
  0xdf   :  { %708 = vmatprep.mubr.bf16.mxu0 %v341_v44 }
  0xe6   :  { %709 = vmatmul.mubr.bf16.gmra.mrb[72].mxu0 %v340_v49  ;;  %v210_v49 = vld [vmem:[#allocation5 + $0x528] sm:$0xff] }
  0xe7   :  { %716 = vmatprep.mubr.bf16.mxu0 %v344_v50  ;;  %v214_v50 = vld [vmem:[#allocation5 + $0x548] sm:$0xff] }
  0xe8   :  { %v371_v57 = vpack.c.bf16 %v217_v51, %v214_v50 }
  0xee   :  { %717 = vmatmul.mubr.bf16.gmra.mrb[76].mxu0 %v343_v55  ;;  %v367_v55 = vpack.c.bf16 %v210_v49, %v207_v48 }
  0xef   :  { %724 = vmatprep.mubr.bf16.mxu0 %v347_v56 }
  0xf6   :  { %725 = vmatmul.mubr.bf16.gmra.mrb[80].mxu0 %v346_v61 }
  0xf7   :  { %732 = vmatprep.mubr.bf16.mxu0 %v350_v62 }
  0xfe   :  { %733 = vmatmul.mubr.bf16.gmra.mrb[84].mxu0 %v349_v3  ;;  %v216_v3 = vld [vmem:[#allocation5 + $0x558] sm:$0xff] }
  0xff   :  { %740 = vmatprep.mubr.bf16.mxu0 %v353_v4  ;;  %v370_v12 = vpack.c.bf16 %v216_v3, %v213_v1 }
 0x106   :  { %741 = vmatmul.mubr.bf16.gmra.mrb[88].mxu0 %v352_v9 }
 0x107   :  { %748 = vmatprep.mubr.bf16.mxu0 %v356_v10 }
 0x10a   :  { %v3767_v23 = vpop.f32.mrb[0].mxu1 }
 0x10b   :  { %v855_v24 = vpop.f32.mrb[1].mxu1 }
 0x10c   :  { %v3769_v25 = vpop.f32.mrb[2].mxu1 }
 0x10d   :  { %v858_v26 = vpop.f32.mrb[3].mxu1 }
 0x10e   :  { %749 = vmatmul.mubr.bf16.gmra.mrb[92].mxu0 %v355_v15 }
 0x10f   :  { %756 = vmatprep.mubr.bf16.mxu0 %v359_v16 }
 0x112   :  { %v3771_v33 = vpop.f32.mrb[4].mxu1 }
 0x113   :  { %v3773_v34 = vpop.f32.mrb[5].mxu1 }
 0x114   :  { %v3775_v35 = vpop.f32.mrb[6].mxu1 }
 0x115   :  { %v3777_v36 = vpop.f32.mrb[7].mxu1 }
 0x116   :  { %757 = vmatmul.mubr.bf16.gmra.mrb[96].mxu0 %v358_v21 }
 0x117   :  { %764 = vmatprep.mubr.bf16.mxu0 %v362_v22 }
 0x11a   :  { %v3779_v43 = vpop.f32.mrb[8].mxu1 }
 0x11b   :  { %v3781_v44 = vpop.f32.mrb[9].mxu1 }
 0x11c   :  { %v3783_v45 = vpop.f32.mrb[10].mxu1 }
 0x11d   :  { %v3785_v46 = vpop.f32.mrb[11].mxu1 }
 0x11e   :  { %765 = vmatmul.mubr.bf16.gmra.mrb[100].mxu0 %v361_v31 }
 0x11f   :  { %772 = vmatprep.mubr.bf16.mxu0 %v365_v32 }
 0x122   :  { %v3793_v58 = vpop.f32.mrb[12].mxu1 }
 0x123   :  { %v3796_v62 = vpop.f32.mrb[13].mxu1 }
 0x124   :  { %v3798_v63 = vpop.f32.mrb[14].mxu1 }
 0x125   :  { %v3800_v2 = vpop.f32.mrb[15].mxu1 }
 0x126   :  { %773 = vmatmul.mubr.bf16.gmra.mrb[104].mxu0 %v364_v41 }
 0x127   :  { %780 = vmatprep.mubr.bf16.mxu0 %v368_v42 }
 0x129   :  { %v566_v52 = vpop.f32.mrb[0].mxu0 }
 0x12a   :  { %v567_v53 = vadd.f32 %v3790_v47, %v566_v52  ;;  %v568_v54 = vpop.f32.mrb[1].mxu0  ;;  %v3803_v15 = vpop.f32.mrb[16].mxu1 }
 0x12b   :  { %v569_v56 = vpop.f32.mrb[2].mxu0  ;;  %v3808_v19 = vpop.f32.mrb[17].mxu1  ;;  %v228_v54 = vld [vmem:[#allocation5 + $0x5b8] sm:$0xff] }
 0x12c   :  { %v570_v59 = vadd.f32 %v3790_v47, %v569_v56  ;;  %v856_v60 = vadd.f32 %v855_v24, %v567_v53  ;;  %v571_v61 = vpop.f32.mrb[3].mxu0  ;;  %v3810_v20 = vpop.f32.mrb[18].mxu1  ;;  %v219_v24 = vld [vmem:[#allocation5 + $0x570] sm:$0xff]  ;;  %v225_v53 = vld [vmem:[#allocation5 + $0x5a0] sm:$0xff] }
 0x12d   :  { %v3813_v22 = vpop.f32.mrb[19].mxu1  ;;  %v376_v1 = vpack.c.bf16 %v228_v54, %v225_v53 }
 0x12e   :  { %v859_v0 = vadd.f32 %v858_v26, %v570_v59  ;;  %781 = vmatmul.mubr.bf16.gmra.mrb[108].mxu0 %v367_v55  ;;  %v1110_v4 = vmax.f32 %v856_v60, 0.0  ;;  %v222_v26 = vld [vmem:[#allocation5 + $0x588] sm:$0xff]  ;;  %v235_v59 = vld [vmem:[#allocation5 + $0x5f0] sm:$0xff] }
 0x12f   :  { %788 = vmatprep.mubr.bf16.mxu0 %v371_v57  ;;  %v373_v38 = vpack.c.bf16 %v222_v26, %v219_v24  ;;  %v232_v57 = vld [vmem:[#allocation5 + $0x5d8] sm:$0xff] }
 0x130   :  { %v1111_v5 = vmax.f32 %v859_v0, 0.0 }
 0x131   :  { %v574_v8 = vpop.f32.mrb[4].mxu0 }
 0x132   :  { %v1183_v9 = vpack.c.bf16 %v1111_v5, %v1110_v4  ;;  %v575_v10 = vadd.f32 %v3790_v47, %v574_v8  ;;  %v576_v11 = vpop.f32.mrb[5].mxu0  ;;  %v3816_v41 = vpop.f32.mrb[20].mxu1  ;;  %v380_v4 = vpack.c.bf16 %v235_v59, %v232_v57 }
 0x133   :  { %v577_v13 = vpop.f32.mrb[6].mxu0  ;;  %v3821_v49 = vpop.f32.mrb[21].mxu1 }
 0x134   :  { %v864_v16 = vadd.f32 %v3767_v23, %v575_v10  ;;  %v578_v17 = vadd.f32 %v3790_v47, %v577_v13  ;;  %v579_v18 = vpop.f32.mrb[7].mxu0  ;;  %3223 = vmatprep.mubr.msk.bf16.mxu1 %vm1245_vm0, %v1183_v9  ;;  %v226_v23 = vld [vmem:[#allocation5 + $0x5a8] sm:$0xff]  ;;  %v3823_v50 = vpop.f32.mrb[22].mxu1 }
 0x135   :  { %v377_v40 = vpack.c.bf16 %v229_v29, %v226_v23  ;;  %v3826_v52 = vpop.f32.mrb[23].mxu1  ;;  %v234_v13 = vld [vmem:[#allocation5 + $0x5e8] sm:$0xff] }
 0x136   :  { %v867_v21 = vadd.f32 %v3769_v25, %v578_v17  ;;  %789 = vmatmul.mubr.bf16.gmra.mrb[112].mxu0 %v370_v12  ;;  %v1112_v27 = vmax.f32 %v864_v16, 0.0  ;;  %v231_v12 = vld [vmem:[#allocation5 + $0x5d0] sm:$0xff] }
 0x137   :  { %796 = vmatprep.mubr.bf16.mxu0 %v374_v14  ;;  %v379_v24 = vpack.c.bf16 %v234_v13, %v231_v12 }
 0x138   :  { %v1113_v28 = vmax.f32 %v867_v21, 0.0 }
 0x139   :  { %v582_v30 = vpop.f32.mrb[8].mxu0 }
 0x13a   :  { %v1184_v31 = vpack.c.bf16 %v1113_v28, %v1112_v27  ;;  %v583_v32 = vadd.f32 %v3790_v47, %v582_v30  ;;  %v584_v37 = vpop.f32.mrb[9].mxu0  ;;  %v3829_v5 = vpop.f32.mrb[24].mxu1 }
 0x13b   :  { %v585_v39 = vpop.f32.mrb[10].mxu0  ;;  %v3834_v8 = vpop.f32.mrb[25].mxu1 }
 0x13c   :  { %v586_v25 = vadd.f32 %v3790_v47, %v585_v39  ;;  %v872_v42 = vadd.f32 %v3773_v34, %v583_v32  ;;  %v587_v48 = vpop.f32.mrb[11].mxu0  ;;  %3224 = vmatmul.mubr.msk.bf16.vlgmr.msra.gmra.mrb[64].mxu1 %vm1245_vm0, %v1184_v31  ;;  %v3836_v9 = vpop.f32.mrb[26].mxu1 }
 0x13d   :  { %v3839_v11 = vpop.f32.mrb[27].mxu1 }
 0x13e   :  { %v875_v51 = vadd.f32 %v3777_v36, %v586_v25  ;;  %797 = vmatmul.mubr.bf16.gmra.mrb[116].mxu0 %v373_v38  ;;  %v1114_v55 = vmax.f32 %v872_v42, 0.0 }
 0x13f   :  { %804 = vmatprep.mubr.bf16.mxu0 %v377_v40 }
 0x140   :  { %v1115_v56 = vmax.f32 %v875_v51, 0.0 }
 0x141   :  { %v590_v34 = vpop.f32.mrb[12].mxu0 }
 0x142   :  { %v1185_v60 = vpack.c.bf16 %v1115_v56, %v1114_v55  ;;  %v591_v61 = vadd.f32 %v3790_v47, %v590_v34  ;;  %v592_v0 = vpop.f32.mrb[13].mxu0  ;;  %v3842_v27 = vpop.f32.mrb[28].mxu1 }
 0x143   :  { %v593_v3 = vpop.f32.mrb[14].mxu0  ;;  %v3847_v29 = vpop.f32.mrb[29].mxu1 }
 0x144   :  { %v880_v36 = vadd.f32 %v3771_v33, %v591_v61  ;;  %v594_v6 = vadd.f32 %v3790_v47, %v593_v3  ;;  %v595_v7 = vpop.f32.mrb[15].mxu0  ;;  %3227 = vmatprep.mubr.msk.bf16.mxu1 %vm1245_vm0, %v1185_v60  ;;  %v3849_v30 = vpop.f32.mrb[30].mxu1 }
 0x145   :  { %v3852_v32 = vpop.f32.mrb[31].mxu1 }
 0x146   :  { %v883_v10 = vadd.f32 %v3775_v35, %v594_v6  ;;  %805 = vmatmul.mubr.bf16.gmra.mrb[120].mxu0 %v376_v1  ;;  %v1116_v14 = vmax.f32 %v880_v36, 0.0 }
 0x147   :  { %812 = vmatprep.mubr.bf16.mxu0 %v380_v4 }
 0x148   :  { %v1117_v16 = vmax.f32 %v883_v10, 0.0 }
 0x149   :  { %v598_v33 = vpop.f32.mrb[16].mxu0 }
 0x14a   :  { %v1186_v17 = vpack.c.bf16 %v1117_v16, %v1116_v14  ;;  %v599_v18 = vadd.f32 %v3790_v47, %v598_v33  ;;  %v600_v21 = vpop.f32.mrb[17].mxu0  ;;  %v3855_v48 = vpop.f32.mrb[32].mxu1 }
 0x14b   :  { %v601_v26 = vpop.f32.mrb[18].mxu0 }
 0x14c   :  { %v602_v28 = vadd.f32 %v3790_v47, %v601_v26  ;;  %v888_v35 = vadd.f32 %v3781_v44, %v599_v18  ;;  %v603_v23 = vpop.f32.mrb[19].mxu0  ;;  %3228 = vmatmul.mubr.msk.bf16.gmra.mrb[68].mxu1 %vm1245_vm0, %v1186_v17 }
 0x14e   :  { %v891_v31 = vadd.f32 %v3785_v46, %v602_v28  ;;  %813 = vmatmul.mubr.bf16.gmra.mrb[124].mxu0 %v379_v24  ;;  %v1118_v37 = vmax.f32 %v888_v35, 0.0  ;;  %v3860_v46 = vpop.f32.mrb[33].mxu1 }
 0x14f   :  { %v3862_v55 = vpop.f32.mrb[34].mxu1 }
 0x150   :  { %v1119_v38 = vmax.f32 %v891_v31, 0.0  ;;  %v3865_v57 = vpop.f32.mrb[35].mxu1 }
 0x151   :  { %v606_v39 = vpop.f32.mrb[20].mxu0 }
 0x152   :  { %v1187_v40 = vpack.c.bf16 %v1119_v38, %v1118_v37  ;;  %v607_v25 = vadd.f32 %v3790_v47, %v606_v39  ;;  %v608_v42 = vpop.f32.mrb[21].mxu0  ;;  %v3868_v3 = vpop.f32.mrb[36].mxu1 }
 0x153   :  { %v609_v44 = vpop.f32.mrb[22].mxu0 }
 0x154   :  { %v896_v51 = vadd.f32 %v3779_v43, %v607_v25  ;;  %v610_v53 = vadd.f32 %v3790_v47, %v609_v44  ;;  %v611_v54 = vpop.f32.mrb[23].mxu0  ;;  %3231 = vmatprep.mubr.msk.bf16.mxu1 %vm1245_vm0, %v1187_v40 }
 0x156   :  { %v899_v56 = vadd.f32 %v3783_v45, %v610_v53  ;;  %v1120_v59 = vmax.f32 %v896_v51, 0.0  ;;  %v3873_v45 = vpop.f32.mrb[37].mxu1 }
 0x157   :  { %v3875_v7 = vpop.f32.mrb[38].mxu1 }
 0x158   :  { %v1121_v34 = vmax.f32 %v899_v56, 0.0  ;;  %v3878_v12 = vpop.f32.mrb[39].mxu1 }
 0x159   :  { %v614_v60 = vpop.f32.mrb[24].mxu0 }
 0x15a   :  { %v1188_v61 = vpack.c.bf16 %v1121_v34, %v1120_v59  ;;  %v615_v0 = vadd.f32 %v3790_v47, %v614_v60  ;;  %v616_v43 = vpop.f32.mrb[25].mxu0 }
 0x15b   :  { %v617_v1 = vpop.f32.mrb[26].mxu0 }
 0x15c   :  { %v618_v4 = vadd.f32 %v3790_v47, %v617_v1  ;;  %v904_v36 = vadd.f32 %v3796_v62, %v615_v0  ;;  %v619_v6 = vpop.f32.mrb[27].mxu0  ;;  %3232 = vmatmul.mubr.msk.bf16.gmra.mrb[72].mxu1 %vm1245_vm0, %v1188_v61  ;;  %v3881_v62 = vpop.f32.mrb[40].mxu1 }
 0x15e   :  { %v907_v10 = vadd.f32 %v3800_v2, %v618_v4  ;;  %v1122_v13 = vmax.f32 %v904_v36, 0.0  ;;  %v3886_v2 = vpop.f32.mrb[41].mxu1 }
 0x15f   :  { %v3888_v35 = vpop.f32.mrb[42].mxu1 }
 0x160   :  { %v1123_v14 = vmax.f32 %v907_v10, 0.0  ;;  %v3891_v31 = vpop.f32.mrb[43].mxu1 }
 0x161   :  { %v622_v16 = vpop.f32.mrb[28].mxu0 }
 0x162   :  { %v1189_v33 = vpack.c.bf16 %v1123_v14, %v1122_v13  ;;  %v623_v17 = vadd.f32 %v3790_v47, %v622_v16  ;;  %v624_v18 = vpop.f32.mrb[29].mxu0  ;;  %v3894_v44 = vpop.f32.mrb[44].mxu1 }
 0x163   :  { %v625_v21 = vpop.f32.mrb[30].mxu0 }
 0x164   :  { %v912_v24 = vadd.f32 %v3793_v58, %v623_v17  ;;  %v626_v26 = vadd.f32 %v3790_v47, %v625_v21  ;;  %v627_v28 = vpop.f32.mrb[31].mxu0  ;;  %3235 = vmatprep.mubr.msk.bf16.mxu1 %vm1245_vm0, %v1189_v33 }
 0x166   :  { %v915_v23 = vadd.f32 %v3798_v63, %v626_v26  ;;  %v1124_v37 = vmax.f32 %v912_v24, 0.0  ;;  %v3899_v63 = vpop.f32.mrb[45].mxu1 }
 0x167   :  { %v3901_v56 = vpop.f32.mrb[46].mxu1 }
 0x168   :  { %v1125_v38 = vmax.f32 %v915_v23, 0.0  ;;  %v3904_v34 = vpop.f32.mrb[47].mxu1 }
 0x169   :  { %v630_v39 = vpop.f32.mrb[32].mxu0 }
 0x16a   :  { %v1190_v40 = vpack.c.bf16 %v1125_v38, %v1124_v37  ;;  %v631_v25 = vadd.f32 %v3790_v47, %v630_v39  ;;  %v632_v58 = vpop.f32.mrb[33].mxu0 }
 0x16b   :  { %v633_v42 = vpop.f32.mrb[34].mxu0 }
 0x16c   :  { %v634_v51 = vadd.f32 %v3790_v47, %v633_v42  ;;  %v920_v53 = vadd.f32 %v3808_v19, %v631_v25  ;;  %v635_v54 = vpop.f32.mrb[35].mxu0  ;;  %3236 = vmatmul.mubr.msk.bf16.gmra.mrb[76].mxu1 %vm1245_vm0, %v1190_v40  ;;  %v3907_v19 = vpop.f32.mrb[48].mxu1 }
 0x16e   :  { %v923_v59 = vadd.f32 %v3813_v22, %v634_v51  ;;  %v1126_v60 = vmax.f32 %v920_v53, 0.0  ;;  %v3912_v22 = vpop.f32.mrb[49].mxu1 }
 0x16f   :  { %v3914_v14 = vpop.f32.mrb[50].mxu1 }
 0x170   :  { %v1127_v61 = vmax.f32 %v923_v59, 0.0  ;;  %v3917_v33 = vpop.f32.mrb[51].mxu1 }
 0x171   :  { %v638_v0 = vpop.f32.mrb[36].mxu0 }
 0x172   :  { %v1191_v43 = vpack.c.bf16 %v1127_v61, %v1126_v60  ;;  %v639_v1 = vadd.f32 %v3790_v47, %v638_v0  ;;  %v640_v4 = vpop.f32.mrb[37].mxu0  ;;  %v3920_v23 = vpop.f32.mrb[52].mxu1 }
 0x173   :  { %v641_v36 = vpop.f32.mrb[38].mxu0 }
 0x174   :  { %v928_v6 = vadd.f32 %v3803_v15, %v639_v1  ;;  %v642_v10 = vadd.f32 %v3790_v47, %v641_v36  ;;  %v643_v13 = vpop.f32.mrb[39].mxu0  ;;  %3239 = vmatprep.mubr.msk.bf16.mxu1 %vm1245_vm0, %v1191_v43 }
 0x176   :  { %v931_v16 = vadd.f32 %v3810_v20, %v642_v10  ;;  %v1128_v17 = vmax.f32 %v928_v6, 0.0  ;;  %v3925_v20 = vpop.f32.mrb[53].mxu1 }
 0x177   :  { %v3927_v40 = vpop.f32.mrb[54].mxu1 }
 0x178   :  { %v1129_v18 = vmax.f32 %v931_v16, 0.0  ;;  %v3930_v58 = vpop.f32.mrb[55].mxu1 }
 0x179   :  { %v646_v21 = vpop.f32.mrb[40].mxu0 }
 0x17a   :  { %v1192_v24 = vpack.c.bf16 %v1129_v18, %v1128_v17  ;;  %v647_v26 = vadd.f32 %v3790_v47, %v646_v21  ;;  %v648_v15 = vpop.f32.mrb[41].mxu0 }
 0x17b   :  { %v649_v28 = vpop.f32.mrb[42].mxu0 }
 0x17c   :  { %v650_v37 = vadd.f32 %v3790_v47, %v649_v28  ;;  %v936_v38 = vadd.f32 %v3821_v49, %v647_v26  ;;  %v651_v39 = vpop.f32.mrb[43].mxu0  ;;  %3240 = vmatmul.mubr.msk.bf16.gmra.mrb[80].mxu1 %vm1245_vm0, %v1192_v24 }
 0x17e   :  { %v939_v25 = vadd.f32 %v3826_v52, %v650_v37  ;;  %v1130_v42 = vmax.f32 %v936_v38, 0.0  ;;  %v3937_v52 = vpop.f32.mrb[56].mxu1 }
 0x17f   :  { %v3939_v6 = vpop.f32.mrb[57].mxu1 }
 0x180   :  { %v1131_v51 = vmax.f32 %v939_v25, 0.0  ;;  %v3941_v13 = vpop.f32.mrb[58].mxu1 }
 0x181   :  { %v654_v53 = vpop.f32.mrb[44].mxu0  ;;  %v3944_v18 = vpop.f32.mrb[59].mxu1 }
 0x182   :  { %v1193_v54 = vpack.c.bf16 %v1131_v51, %v1130_v42  ;;  %v655_v59 = vadd.f32 %v3790_v47, %v654_v53  ;;  %v656_v60 = vpop.f32.mrb[45].mxu0  ;;  %v3946_v24 = vpop.f32.mrb[60].mxu1 }
 0x183   :  { %v657_v61 = vpop.f32.mrb[46].mxu0  ;;  %v3951_v28 = vpop.f32.mrb[61].mxu1 }
 0x184   :  { %v944_v49 = vadd.f32 %v3816_v41, %v655_v59  ;;  %v658_v0 = vadd.f32 %v3790_v47, %v657_v61  ;;  %v659_v43 = vpop.f32.mrb[47].mxu0  ;;  %3243 = vmatprep.mubr.msk.bf16.mxu1 %vm1245_vm0, %v1193_v54  ;;  %v3953_v37 = vpop.f32.mrb[62].mxu1 }
 0x185   :  { %v3956_v39 = vpop.f32.mrb[63].mxu1 }
 0x186   :  { %v947_v1 = vadd.f32 %v3823_v50, %v658_v0  ;;  %v1132_v4 = vmax.f32 %v944_v49, 0.0 }
 0x188   :  { %v1133_v36 = vmax.f32 %v947_v1, 0.0 }
 0x189   :  { %v662_v10 = vpop.f32.mrb[48].mxu0 }
 0x18a   :  { %v1194_v16 = vpack.c.bf16 %v1133_v36, %v1132_v4  ;;  %v663_v17 = vadd.f32 %v3790_v47, %v662_v10  ;;  %v664_v41 = vpop.f32.mrb[49].mxu0 }
 0x18b   :  { %v665_v21 = vpop.f32.mrb[50].mxu0 }
 0x18c   :  { %v666_v50 = vadd.f32 %v3790_v47, %v665_v21  ;;  %v952_v26 = vadd.f32 %v3834_v8, %v663_v17  ;;  %v667_v15 = vpop.f32.mrb[51].mxu0  ;;  %3244 = vmatmul.mubr.msk.bf16.gmra.mrb[84].mxu1 %vm1245_vm0, %v1194_v16 }
 0x18e   :  { %v955_v38 = vadd.f32 %v3839_v11, %v666_v50  ;;  %v1134_v25 = vmax.f32 %v952_v26, 0.0 }
 0x190   :  { %v1135_v42 = vmax.f32 %v955_v38, 0.0 }
 0x191   :  { %v670_v51 = vpop.f32.mrb[52].mxu0 }
 0x192   :  { %v1195_v53 = vpack.c.bf16 %v1135_v42, %v1134_v25  ;;  %v671_v54 = vadd.f32 %v3790_v47, %v670_v51  ;;  %v672_v59 = vpop.f32.mrb[53].mxu0 }
 0x193   :  { %v673_v60 = vpop.f32.mrb[54].mxu0 }
 0x194   :  { %v960_v8 = vadd.f32 %v3829_v5, %v671_v54  ;;  %v674_v61 = vadd.f32 %v3790_v47, %v673_v60  ;;  %v675_v49 = vpop.f32.mrb[55].mxu0  ;;  %3247 = vmatprep.mubr.msk.bf16.mxu1 %vm1245_vm0, %v1195_v53 }
 0x196   :  { %v963_v0 = vadd.f32 %v3836_v9, %v674_v61  ;;  %v1136_v11 = vmax.f32 %v960_v8, 0.0 }
 0x198   :  { %v1137_v43 = vmax.f32 %v963_v0, 0.0 }
 0x199   :  { %v678_v1 = vpop.f32.mrb[56].mxu0 }
 0x19a   :  { %v1196_v4 = vpack.c.bf16 %v1137_v43, %v1136_v11  ;;  %v679_v36 = vadd.f32 %v3790_v47, %v678_v1  ;;  %v680_v10 = vpop.f32.mrb[57].mxu0 }
 0x19b   :  { %v681_v16 = vpop.f32.mrb[58].mxu0 }
 0x19c   :  { %v682_v17 = vadd.f32 %v3790_v47, %v681_v16  ;;  %v968_v41 = vadd.f32 %v3847_v29, %v679_v36  ;;  %v683_v5 = vpop.f32.mrb[59].mxu0  ;;  %3248 = vmatmul.mubr.msk.bf16.gmra.mrb[88].mxu1 %vm1245_vm0, %v1196_v4 }
 0x19e   :  { %v971_v21 = vadd.f32 %v3852_v32, %v682_v17  ;;  %v1138_v50 = vmax.f32 %v968_v41, 0.0 }
 0x1a0   :  { %v1139_v26 = vmax.f32 %v971_v21, 0.0 }
 0x1a1   :  { %v686_v9 = vpop.f32.mrb[60].mxu0 }
 0x1a2   :  { %v1197_v15 = vpack.c.bf16 %v1139_v26, %v1138_v50  ;;  %v687_v38 = vadd.f32 %v3790_v47, %v686_v9  ;;  %v688_v25 = vpop.f32.mrb[61].mxu0 }
 0x1a3   :  { %v689_v42 = vpop.f32.mrb[62].mxu0 }
 0x1a4   :  { %v976_v51 = vadd.f32 %v3842_v27, %v687_v38  ;;  %v690_v53 = vadd.f32 %v3790_v47, %v689_v42  ;;  %v691_v54 = vpop.f32.mrb[63].mxu0  ;;  %3251 = vmatprep.mubr.msk.bf16.mxu1 %vm1245_vm0, %v1197_v15 }
 0x1a6   :  { %v979_v29 = vadd.f32 %v3849_v30, %v690_v53  ;;  %v1140_v59 = vmax.f32 %v976_v51, 0.0 }
 0x1a8   :  { %v1141_v60 = vmax.f32 %v979_v29, 0.0 }
 0x1a9   :  { %v694_v32 = vpop.f32.mrb[64].mxu0 }
 0x1aa   :  { %v1198_v8 = vpack.c.bf16 %v1141_v60, %v1140_v59  ;;  %v695_v61 = vadd.f32 %v3790_v47, %v694_v32  ;;  %v696_v49 = vpop.f32.mrb[65].mxu0 }
 0x1ab   :  { %v697_v0 = vpop.f32.mrb[66].mxu0 }
 0x1ac   :  { %v698_v11 = vadd.f32 %v3790_v47, %v697_v0  ;;  %v984_v43 = vadd.f32 %v3860_v46, %v695_v61  ;;  %v699_v27 = vpop.f32.mrb[67].mxu0  ;;  %3252 = vmatmul.mubr.msk.bf16.gmra.mrb[92].mxu1 %vm1245_vm0, %v1198_v8 }
 0x1ae   :  { %v987_v1 = vadd.f32 %v3865_v57, %v698_v11  ;;  %v1142_v4 = vmax.f32 %v984_v43, 0.0 }
 0x1b0   :  { %v1143_v36 = vmax.f32 %v987_v1, 0.0 }
 0x1b1   :  { %v702_v30 = vpop.f32.mrb[68].mxu0 }
 0x1b2   :  { %v1199_v10 = vpack.c.bf16 %v1143_v36, %v1142_v4  ;;  %v703_v16 = vadd.f32 %v3790_v47, %v702_v30  ;;  %v704_v17 = vpop.f32.mrb[69].mxu0 }
 0x1b3   :  { %v705_v41 = vpop.f32.mrb[70].mxu0 }
 0x1b4   :  { %v992_v5 = vadd.f32 %v3855_v48, %v703_v16  ;;  %v706_v21 = vadd.f32 %v3790_v47, %v705_v41  ;;  %v707_v50 = vpop.f32.mrb[71].mxu0  ;;  %3255 = vmatprep.mubr.msk.bf16.mxu1 %vm1245_vm0, %v1199_v10 }
 0x1b6   :  { %v995_v46 = vadd.f32 %v3862_v55, %v706_v21  ;;  %v1144_v26 = vmax.f32 %v992_v5, 0.0 }
 0x1b8   :  { %v1145_v9 = vmax.f32 %v995_v46, 0.0 }
 0x1b9   :  { %v710_v57 = vpop.f32.mrb[72].mxu0 }
 0x1ba   :  { %v1200_v15 = vpack.c.bf16 %v1145_v9, %v1144_v26  ;;  %v711_v38 = vadd.f32 %v3790_v47, %v710_v57  ;;  %v712_v25 = vpop.f32.mrb[73].mxu0 }
 0x1bb   :  { %v713_v42 = vpop.f32.mrb[74].mxu0 }
 0x1bc   :  { %v714_v51 = vadd.f32 %v3790_v47, %v713_v42  ;;  %v1000_v53 = vadd.f32 %v3873_v45, %v711_v38  ;;  %v715_v48 = vpop.f32.mrb[75].mxu0  ;;  %3256 = vmatmul.mubr.msk.bf16.gmra.mrb[96].mxu1 %vm1245_vm0, %v1200_v15 }
 0x1be   :  { %v1003_v54 = vadd.f32 %v3878_v12, %v714_v51  ;;  %v1146_v29 = vmax.f32 %v1000_v53, 0.0 }
 0x1c0   :  { %v1147_v59 = vmax.f32 %v1003_v54, 0.0 }
 0x1c1   :  { %v718_v55 = vpop.f32.mrb[76].mxu0 }
 0x1c2   :  { %v1201_v60 = vpack.c.bf16 %v1147_v59, %v1146_v29  ;;  %v719_v32 = vadd.f32 %v3790_v47, %v718_v55  ;;  %v720_v8 = vpop.f32.mrb[77].mxu0 }
 0x1c3   :  { %v721_v61 = vpop.f32.mrb[78].mxu0 }
 0x1c4   :  { %v1008_v49 = vadd.f32 %v3868_v3, %v719_v32  ;;  %v722_v0 = vadd.f32 %v3790_v47, %v721_v61  ;;  %v723_v11 = vpop.f32.mrb[79].mxu0  ;;  %3259 = vmatprep.mubr.msk.bf16.mxu1 %vm1245_vm0, %v1201_v60 }
 0x1c6   :  { %v1011_v45 = vadd.f32 %v3875_v7, %v722_v0  ;;  %v1148_v43 = vmax.f32 %v1008_v49, 0.0 }
 0x1c8   :  { %v1149_v27 = vmax.f32 %v1011_v45, 0.0 }
 0x1c9   :  { %v726_v12 = vpop.f32.mrb[80].mxu0 }
 0x1ca   :  { %v1202_v1 = vpack.c.bf16 %v1149_v27, %v1148_v43  ;;  %v727_v4 = vadd.f32 %v3790_v47, %v726_v12  ;;  %v728_v36 = vpop.f32.mrb[81].mxu0 }
 0x1cb   :  { %v729_v30 = vpop.f32.mrb[82].mxu0 }
 0x1cc   :  { %v730_v10 = vadd.f32 %v3790_v47, %v729_v30  ;;  %v1016_v16 = vadd.f32 %v3886_v2, %v727_v4  ;;  %v731_v3 = vpop.f32.mrb[83].mxu0  ;;  %3260 = vmatmul.mubr.msk.bf16.gmra.mrb[100].mxu1 %vm1245_vm0, %v1202_v1 }
 0x1ce   :  { %v1019_v17 = vadd.f32 %v3891_v31, %v730_v10  ;;  %v1150_v41 = vmax.f32 %v1016_v16, 0.0 }
 0x1d0   :  { %v1151_v5 = vmax.f32 %v1019_v17, 0.0 }
 0x1d1   :  { %v734_v7 = vpop.f32.mrb[84].mxu0 }
 0x1d2   :  { %v1203_v21 = vpack.c.bf16 %v1151_v5, %v1150_v41  ;;  %v735_v50 = vadd.f32 %v3790_v47, %v734_v7  ;;  %v736_v46 = vpop.f32.mrb[85].mxu0 }
 0x1d3   :  { %v737_v26 = vpop.f32.mrb[86].mxu0 }
 0x1d4   :  { %v1024_v9 = vadd.f32 %v3881_v62, %v735_v50  ;;  %v738_v57 = vadd.f32 %v3790_v47, %v737_v26  ;;  %v739_v15 = vpop.f32.mrb[87].mxu0  ;;  %3263 = vmatprep.mubr.msk.bf16.mxu1 %vm1245_vm0, %v1203_v21 }
 0x1d6   :  { %v1027_v2 = vadd.f32 %v3888_v35, %v738_v57  ;;  %v1152_v38 = vmax.f32 %v1024_v9, 0.0 }
 0x1d8   :  { %v1153_v25 = vmax.f32 %v1027_v2, 0.0 }
 0x1d9   :  { %v742_v31 = vpop.f32.mrb[88].mxu0 }
 0x1da   :  { %v1204_v42 = vpack.c.bf16 %v1153_v25, %v1152_v38  ;;  %v743_v51 = vadd.f32 %v3790_v47, %v742_v31  ;;  %v744_v53 = vpop.f32.mrb[89].mxu0 }
 0x1db   :  { %v745_v48 = vpop.f32.mrb[90].mxu0 }
 0x1dc   :  { %v746_v54 = vadd.f32 %v3790_v47, %v745_v48  ;;  %v1032_v29 = vadd.f32 %v3899_v63, %v743_v51  ;;  %v747_v62 = vpop.f32.mrb[91].mxu0  ;;  %3264 = vmatmul.mubr.msk.bf16.gmra.mrb[104].mxu1 %vm1245_vm0, %v1204_v42 }
 0x1de   :  { %v1035_v59 = vadd.f32 %v3904_v34, %v746_v54  ;;  %v1154_v55 = vmax.f32 %v1032_v29, 0.0 }
 0x1e0   :  { %v1155_v60 = vmax.f32 %v1035_v59, 0.0 }
 0x1e1   :  { %v750_v35 = vpop.f32.mrb[92].mxu0 }
 0x1e2   :  { %v1205_v32 = vpack.c.bf16 %v1155_v60, %v1154_v55  ;;  %v751_v8 = vadd.f32 %v3790_v47, %v750_v35  ;;  %v752_v61 = vpop.f32.mrb[93].mxu0 }
 0x1e3   :  { %v753_v49 = vpop.f32.mrb[94].mxu0 }
 0x1e4   :  { %v1040_v0 = vadd.f32 %v3894_v44, %v751_v8  ;;  %v754_v11 = vadd.f32 %v3790_v47, %v753_v49  ;;  %v755_v45 = vpop.f32.mrb[95].mxu0  ;;  %3267 = vmatprep.mubr.msk.bf16.mxu1 %vm1245_vm0, %v1205_v32 }
 0x1e6   :  { %v1043_v63 = vadd.f32 %v3901_v56, %v754_v11  ;;  %v1156_v43 = vmax.f32 %v1040_v0, 0.0 }
 0x1e8   :  { %v1157_v27 = vmax.f32 %v1043_v63, 0.0 }
 0x1e9   :  { %v758_v34 = vpop.f32.mrb[96].mxu0 }
 0x1ea   :  { %v1206_v12 = vpack.c.bf16 %v1157_v27, %v1156_v43  ;;  %v759_v1 = vadd.f32 %v3790_v47, %v758_v34  ;;  %v760_v4 = vpop.f32.mrb[97].mxu0  ;;  %v4040_v43 = vld [vmem:[%s5456_s5] ss:$0 sm:$0xff] }
 0x1eb   :  { %v761_v36 = vpop.f32.mrb[98].mxu0 }
 0x1ec   :  { %v762_v30 = vadd.f32 %v3790_v47, %v761_v36  ;;  %v1048_v10 = vadd.f32 %v3912_v22, %v759_v1  ;;  %v763_v44 = vpop.f32.mrb[99].mxu0  ;;  %3268 = vmatmul.mubr.msk.bf16.gmra.mrb[108].mxu1 %vm1245_vm0, %v1206_v12 }
 0x1ee   :  { %v1051_v16 = vadd.f32 %v3917_v33, %v762_v30  ;;  %v1158_v3 = vmax.f32 %v1048_v10, 0.0  ;;  %v4048_v10 = vld [vmem:[%s5457_s6] ss:$0 sm:$0xff] }
 0x1f0   :  { %v1159_v17 = vmax.f32 %v1051_v16, 0.0 }
 0x1f1   :  { %v766_v56 = vpop.f32.mrb[100].mxu0 }
 0x1f2   :  { %v1207_v41 = vpack.c.bf16 %v1159_v17, %v1158_v3  ;;  %v767_v5 = vadd.f32 %v3790_v47, %v766_v56  ;;  %v768_v7 = vpop.f32.mrb[101].mxu0 }
 0x1f3   :  { %v769_v21 = vpop.f32.mrb[102].mxu0 }
 0x1f4   :  { %v1056_v50 = vadd.f32 %v3907_v19, %v767_v5  ;;  %v770_v46 = vadd.f32 %v3790_v47, %v769_v21  ;;  %v771_v26 = vpop.f32.mrb[103].mxu0  ;;  %3271 = vmatprep.mubr.msk.bf16.mxu1 %vm1245_vm0, %v1207_v41 }
 0x1f6   :  { %v1059_v22 = vadd.f32 %v3914_v14, %v770_v46  ;;  %v1160_v9 = vmax.f32 %v1056_v50, 0.0 }
 0x1f8   :  { %v1161_v57 = vmax.f32 %v1059_v22, 0.0 }
 0x1f9   :  { %v774_v33 = vpop.f32.mrb[104].mxu0 }
 0x1fa   :  { %v1208_v15 = vpack.c.bf16 %v1161_v57, %v1160_v9  ;;  %v775_v2 = vadd.f32 %v3790_v47, %v774_v33  ;;  %v776_v38 = vpop.f32.mrb[105].mxu0 }
 0x1fb   :  { %v777_v25 = vpop.f32.mrb[106].mxu0 }
 0x1fc   :  { %v778_v31 = vadd.f32 %v3790_v47, %v777_v25  ;;  %v1064_v42 = vadd.f32 %v3925_v20, %v775_v2  ;;  %v779_v19 = vpop.f32.mrb[107].mxu0  ;;  %3272 = vmatmul.mubr.msk.bf16.gmra.mrb[112].mxu1 %vm1245_vm0, %v1208_v15 }
 0x1fe   :  { %v1067_v51 = vadd.f32 %v3930_v58, %v778_v31  ;;  %v1162_v53 = vmax.f32 %v1064_v42, 0.0 }
 0x200   :  { %v1163_v48 = vmax.f32 %v1067_v51, 0.0 }
 0x201   :  { %v782_v14 = vpop.f32.mrb[108].mxu0 }
 0x202   :  { %v1209_v54 = vpack.c.bf16 %v1163_v48, %v1162_v53  ;;  %v783_v29 = vadd.f32 %v3790_v47, %v782_v14  ;;  %v784_v62 = vpop.f32.mrb[109].mxu0 }
 0x203   :  { %v785_v59 = vpop.f32.mrb[110].mxu0 }
 0x204   :  { %v1072_v55 = vadd.f32 %v3920_v23, %v783_v29  ;;  %v786_v60 = vadd.f32 %v3790_v47, %v785_v59  ;;  %v787_v35 = vpop.f32.mrb[111].mxu0  ;;  %3275 = vmatprep.mubr.msk.bf16.mxu1 %vm1245_vm0, %v1209_v54 }
 0x206   :  { %v1075_v20 = vadd.f32 %v3927_v40, %v786_v60  ;;  %v1164_v32 = vmax.f32 %v1072_v55, 0.0 }
 0x208   :  { %v1165_v8 = vmax.f32 %v1075_v20, 0.0 }
 0x209   :  { %v790_v58 = vpop.f32.mrb[112].mxu0 }
 0x20a   :  { %v1210_v61 = vpack.c.bf16 %v1165_v8, %v1164_v32  ;;  %v791_v49 = vadd.f32 %v3790_v47, %v790_v58  ;;  %v792_v0 = vpop.f32.mrb[113].mxu0 }
 0x20b   :  { %v793_v11 = vpop.f32.mrb[114].mxu0 }
 0x20c   :  { %v1080_v45 = vadd.f32 %v3939_v6, %v791_v49  ;;  %v794_v63 = vadd.f32 %v3790_v47, %v793_v11  ;;  %v795_v23 = vpop.f32.mrb[115].mxu0  ;;  %3276 = vmatmul.mubr.msk.bf16.gmra.mrb[116].mxu1 %vm1245_vm0, %v1210_v61 }
 0x20e   :  { %v1083_v40 = vadd.f32 %v3944_v18, %v794_v63  ;;  %v1166_v34 = vmax.f32 %v1080_v45, 0.0 }
 0x20f   :  { %v3225_v27 = vpop.f32.mrb[64].mxu1 }
 0x210   :  { %v1167_v12 = vmax.f32 %v1083_v40, 0.0  ;;  %v1385_v1 = vadd.f32 %v3225_v27, %v4040_v43  ;;  %v1376_v4 = vpop.f32.mrb[65].mxu1 }
 0x211   :  { %v1377_v6 = vadd.f32 %v4040_v43, %v1376_v4  ;;  %v798_v36 = vpop.f32.mrb[116].mxu0  ;;  %v3226_v30 = vpop.f32.mrb[66].mxu1 }
 0x212   :  { %v1211_v44 = vpack.c.bf16 %v1167_v12, %v1166_v34  ;;  %v1633_v16 = vmax.f32 %v1385_v1, 0.0  ;;  %v799_v3 = vadd.f32 %v3790_v47, %v798_v36  ;;  %v1388_v18 = vadd.f32 %v3226_v30, %v4040_v43  ;;  %v800_v17 = vpop.f32.mrb[117].mxu0  ;;  %v1379_v56 = vpop.f32.mrb[67].mxu1 }
 0x213   :  { %v1631_v41 = vmax.f32 %v1377_v6, 0.0  ;;  %v1380_v5 = vadd.f32 %v4040_v43, %v1379_v56  ;;  %v801_v7 = vpop.f32.mrb[118].mxu0 }
 0x214   :  { %v1088_v21 = vadd.f32 %v3937_v52, %v799_v3  ;;  %v1634_v50 = vmax.f32 %v1388_v18, 0.0  ;;  %v802_v46 = vadd.f32 %v3790_v47, %v801_v7  ;;  %v803_v26 = vpop.f32.mrb[119].mxu0  ;;  %3279 = vmatprep.mubr.msk.bf16.mxu1 %vm1245_vm0, %v1211_v44  ;;  %v1705_v22 = vmul.f32 %v4048_v10, %v1633_v16 }
 0x215   :  { %v1632_v9 = vmax.f32 %v1380_v5, 0.0  ;;  %v1703_v57 = vmul.f32 %v4048_v10, %v1631_v41 }
 0x216   :  { %v1091_v33 = vadd.f32 %v3941_v13, %v802_v46  ;;  %v1773_v15 = vsel %vm1245_vm0, %v1705_v22, 0.0  ;;  %v1706_v2 = vmul.f32 %v4048_v10, %v1634_v50  ;;  %v1168_v25 = vmax.f32 %v1088_v21, 0.0 }
 0x217   :  { %1774 = vadd.xlane.f32.xlu1 %v1773_v15  ;;  %v1767_v52 = vsel %vm1245_vm0, %v1703_v57, 0.0  ;;  %v1704_v38 = vmul.f32 %v4048_v10, %v1632_v9 }
 0x218   :  { %v1169_v31 = vmax.f32 %v1091_v33, 0.0  ;;  %1768 = vadd.xlane.f32.xlu0 %v1767_v52  ;;  %v1776_v48 = vsel %vm1245_vm0, %v1706_v2, 0.0 }
 0x219   :  { %v806_v42 = vpop.f32.mrb[120].mxu0  ;;  %v1770_v14 = vsel %vm1245_vm0, %v1704_v38, 0.0 }
 0x21a   :  { %v1212_v19 = vpack.c.bf16 %v1169_v31, %v1168_v25  ;;  %v807_v51 = vadd.f32 %v3790_v47, %v806_v42  ;;  %v808_v53 = vpop.f32.mrb[121].mxu0 }
 0x21b   :  { %v809_v13 = vpop.f32.mrb[122].mxu0  ;;  %1777 = vadd.xlane.f32.xlu1 %v1776_v48 }
 0x21c   :  { %v1096_v54 = vadd.f32 %v3951_v28, %v807_v51  ;;  %v810_v29 = vadd.f32 %v3790_v47, %v809_v13  ;;  %v811_v62 = vpop.f32.mrb[123].mxu0  ;;  %3280 = vmatmul.mubr.msk.bf16.gmra.mrb[120].mxu1 %vm1245_vm0, %v1212_v19  ;;  %1771 = vadd.xlane.f32.xlu0 %v1770_v14 }
 0x21e   :  { %v1099_v59 = vadd.f32 %v3956_v39, %v810_v29  ;;  %v1170_v60 = vmax.f32 %v1096_v54, 0.0 }
 0x21f   :  { %v3229_v55 = vpop.f32.mrb[68].mxu1 }
 0x220   :  { %v1171_v35 = vmax.f32 %v1099_v59, 0.0  ;;  %v1401_v20 = vadd.f32 %v3229_v55, %v4040_v43  ;;  %v1392_v32 = vpop.f32.mrb[69].mxu1 }
 0x221   :  { %v1393_v8 = vadd.f32 %v4040_v43, %v1392_v32  ;;  %v814_v58 = vpop.f32.mrb[124].mxu0  ;;  %v3230_v61 = vpop.f32.mrb[70].mxu1 }
 0x222   :  { %v1213_v49 = vpack.c.bf16 %v1171_v35, %v1170_v60  ;;  %v1637_v28 = vmax.f32 %v1401_v20, 0.0  ;;  %v815_v0 = vadd.f32 %v3790_v47, %v814_v58  ;;  %v1404_v11 = vadd.f32 %v3230_v61, %v4040_v43  ;;  %v816_v45 = vpop.f32.mrb[125].mxu0  ;;  %v1395_v63 = vpop.f32.mrb[71].mxu1 }
 0x223   :  { %v1635_v23 = vmax.f32 %v1393_v8, 0.0  ;;  %v1396_v39 = vadd.f32 %v4040_v43, %v1395_v63  ;;  %v817_v40 = vpop.f32.mrb[126].mxu0 }
 0x224   :  { %v1104_v27 = vadd.f32 %v3946_v24, %v815_v0  ;;  %v1638_v34 = vmax.f32 %v1404_v11, 0.0  ;;  %v818_v12 = vadd.f32 %v3790_v47, %v817_v40  ;;  %v819_v1 = vpop.f32.mrb[127].mxu0  ;;  %3283 = vmatprep.mubr.msk.bf16.mxu1 %vm1245_vm0, %v1213_v49  ;;  %v1709_v4 = vmul.f32 %v4048_v10, %v1637_v28 }
 0x225   :  { %v1636_v6 = vmax.f32 %v1396_v39, 0.0  ;;  %v1707_v16 = vmul.f32 %v4048_v10, %v1635_v23 }
 0x226   :  { %v1107_v36 = vadd.f32 %v3953_v37, %v818_v12  ;;  %v1785_v30 = vsel %vm1245_vm0, %v1709_v4, 0.0  ;;  %v1710_v44 = vmul.f32 %v4048_v10, %v1638_v34  ;;  %v1172_v3 = vmax.f32 %v1104_v27, 0.0 }
 0x227   :  { %1786 = vadd.xlane.f32.xlu0 %v1785_v30  ;;  %v1708_v47 = vmul.f32 %v4048_v10, %v1636_v6  ;;  %v1779_v56 = vsel %vm1245_vm0, %v1707_v16, 0.0 }
 0x228   :  { %v1173_v24 = vmax.f32 %v1107_v36, 0.0  ;;  %v1788_v18 = vsel %vm1245_vm0, %v1710_v44, 0.0 }
 0x229   :  { %1789 = vadd.xlane.f32.xlu1 %v1788_v18  ;;  %v1782_v37 = vsel %vm1245_vm0, %v1708_v47, 0.0 }
 0x22a   :  { %v1214_v17 = vpack.c.bf16 %v1173_v24, %v1172_v3 }
 0x22b   :  { %1780 = vadd.xlane.f32.xlu0 %v1779_v56 }
 0x22c   :  { %3284 = vmatmul.mubr.msk.bf16.gmra.mrb[124].mxu1 %vm1245_vm0, %v1214_v17 }
 0x22d   :  { %1783 = vadd.xlane.f32.xlu1 %v1782_v37 }
 0x22f   :  { %v3233_v41 = vpop.f32.mrb[72].mxu1 }
 0x230   :  { %v1417_v5 = vadd.f32 %v3233_v41, %v4040_v43  ;;  %v1408_v7 = vpop.f32.mrb[73].mxu1 }
 0x231   :  { %v1409_v21 = vadd.f32 %v4040_v43, %v1408_v7  ;;  %v3234_v50 = vpop.f32.mrb[74].mxu1 }
 0x232   :  { %v1641_v46 = vmax.f32 %v1417_v5, 0.0  ;;  %v1420_v26 = vadd.f32 %v3234_v50, %v4040_v43  ;;  %v1411_v22 = vpop.f32.mrb[75].mxu1 }
 0x233   :  { %v1639_v9 = vmax.f32 %v1409_v21, 0.0  ;;  %v1412_v57 = vadd.f32 %v4040_v43, %v1411_v22 }
 0x234   :  { %v1642_v33 = vmax.f32 %v1420_v26, 0.0  ;;  %v1713_v15 = vmul.f32 %v4048_v10, %v1641_v46 }
 0x235   :  { %v1640_v2 = vmax.f32 %v1412_v57, 0.0  ;;  %v1711_v25 = vmul.f32 %v4048_v10, %v1639_v9 }
 0x236   :  { %v1797_v52 = vsel %vm1245_vm0, %v1713_v15, 0.0  ;;  %v1714_v38 = vmul.f32 %v4048_v10, %v1642_v33 }
 0x237   :  { %1798 = vadd.xlane.f32.xlu0 %v1797_v52  ;;  %v1712_v42 = vmul.f32 %v4048_v10, %v1640_v2  ;;  %v1791_v19 = vsel %vm1245_vm0, %v1711_v25, 0.0 }
 0x238   :  { %v1800_v31 = vsel %vm1245_vm0, %v1714_v38, 0.0 }
 0x239   :  { %1801 = vadd.xlane.f32.xlu1 %v1800_v31  ;;  %v1794_v51 = vsel %vm1245_vm0, %v1712_v42, 0.0 }
 0x23b   :  { %1792 = vadd.xlane.f32.xlu0 %v1791_v19 }
 0x23d   :  { %1795 = vadd.xlane.f32.xlu1 %v1794_v51 }
 0x23f   :  { %v3237_v53 = vpop.f32.mrb[76].mxu1 }
 0x240   :  { %v1433_v48 = vadd.f32 %v3237_v53, %v4040_v43  ;;  %v1424_v13 = vpop.f32.mrb[77].mxu1 }
 0x241   :  { %v1425_v14 = vadd.f32 %v4040_v43, %v1424_v13  ;;  %v3238_v54 = vpop.f32.mrb[78].mxu1 }
 0x242   :  { %v1645_v29 = vmax.f32 %v1433_v48, 0.0  ;;  %v1436_v62 = vadd.f32 %v3238_v54, %v4040_v43  ;;  %v1427_v59 = vpop.f32.mrb[79].mxu1 }
 0x243   :  { %v1643_v55 = vmax.f32 %v1425_v14, 0.0  ;;  %v1428_v60 = vadd.f32 %v4040_v43, %v1427_v59 }
 0x244   :  { %v1646_v35 = vmax.f32 %v1436_v62, 0.0  ;;  %v1717_v20 = vmul.f32 %v4048_v10, %v1645_v29 }
 0x245   :  { %v1644_v32 = vmax.f32 %v1428_v60, 0.0  ;;  %v1715_v61 = vmul.f32 %v4048_v10, %v1643_v55 }
 0x246   :  { %v1809_v8 = vsel %vm1245_vm0, %v1717_v20, 0.0  ;;  %v1718_v58 = vmul.f32 %v4048_v10, %v1646_v35 }
 0x247   :  { %1810 = vadd.xlane.f32.xlu0 %v1809_v8  ;;  %v1716_v28 = vmul.f32 %v4048_v10, %v1644_v32  ;;  %v1803_v0 = vsel %vm1245_vm0, %v1715_v61, 0.0 }
 0x248   :  { %v1812_v49 = vsel %vm1245_vm0, %v1718_v58, 0.0 }
 0x249   :  { %1813 = vadd.xlane.f32.xlu1 %v1812_v49  ;;  %v1806_v11 = vsel %vm1245_vm0, %v1716_v28, 0.0 }
 0x24b   :  { %1804 = vadd.xlane.f32.xlu0 %v1803_v0 }
 0x24d   :  { %1807 = vadd.xlane.f32.xlu1 %v1806_v11 }
 0x24f   :  { %v3241_v45 = vpop.f32.mrb[80].mxu1 }
 0x250   :  { %v1449_v63 = vadd.f32 %v3241_v45, %v4040_v43  ;;  %v1440_v23 = vpop.f32.mrb[81].mxu1 }
 0x251   :  { %v1441_v39 = vadd.f32 %v4040_v43, %v1440_v23  ;;  %v3242_v40 = vpop.f32.mrb[82].mxu1 }
 0x252   :  { %v1649_v27 = vmax.f32 %v1449_v63, 0.0  ;;  %v1452_v34 = vadd.f32 %v3242_v40, %v4040_v43  ;;  %v1443_v12 = vpop.f32.mrb[83].mxu1 }
 0x253   :  { %v1647_v1 = vmax.f32 %v1441_v39, 0.0  ;;  %v1444_v4 = vadd.f32 %v4040_v43, %v1443_v12 }
 0x254   :  { %v1650_v6 = vmax.f32 %v1452_v34, 0.0  ;;  %v1721_v36 = vmul.f32 %v4048_v10, %v1649_v27 }
 0x255   :  { %v1648_v30 = vmax.f32 %v1444_v4, 0.0  ;;  %v1719_v3 = vmul.f32 %v4048_v10, %v1647_v1 }
 0x256   :  { %v1821_v44 = vsel %vm1245_vm0, %v1721_v36, 0.0  ;;  %v1722_v16 = vmul.f32 %v4048_v10, %v1650_v6 }
 0x257   :  { %1822 = vadd.xlane.f32.xlu0 %v1821_v44  ;;  %v1720_v18 = vmul.f32 %v4048_v10, %v1648_v30  ;;  %v1815_v47 = vsel %vm1245_vm0, %v1719_v3, 0.0 }
 0x258   :  { %v1824_v24 = vsel %vm1245_vm0, %v1722_v16, 0.0 }
 0x259   :  { %1825 = vadd.xlane.f32.xlu1 %v1824_v24  ;;  %v1818_v17 = vsel %vm1245_vm0, %v1720_v18, 0.0 }
 0x25b   :  { %1816 = vadd.xlane.f32.xlu0 %v1815_v47 }
 0x25d   :  { %1819 = vadd.xlane.f32.xlu1 %v1818_v17 }
 0x25f   :  { %v3245_v56 = vpop.f32.mrb[84].mxu1 }
 0x260   :  { %v1465_v37 = vadd.f32 %v3245_v56, %v4040_v43  ;;  %v1456_v41 = vpop.f32.mrb[85].mxu1 }
 0x261   :  { %v1457_v5 = vadd.f32 %v4040_v43, %v1456_v41  ;;  %v3246_v7 = vpop.f32.mrb[86].mxu1 }
 0x262   :  { %v1653_v21 = vmax.f32 %v1465_v37, 0.0  ;;  %v1468_v50 = vadd.f32 %v3246_v7, %v4040_v43  ;;  %v1459_v46 = vpop.f32.mrb[87].mxu1 }
 0x263   :  { %v1651_v26 = vmax.f32 %v1457_v5, 0.0  ;;  %v1460_v22 = vadd.f32 %v4040_v43, %v1459_v46 }
 0x264   :  { %v1654_v9 = vmax.f32 %v1468_v50, 0.0  ;;  %v1725_v57 = vmul.f32 %v4048_v10, %v1653_v21 }
 0x265   :  { %v1652_v33 = vmax.f32 %v1460_v22, 0.0  ;;  %v1723_v52 = vmul.f32 %v4048_v10, %v1651_v26 }
 0x266   :  { %v1833_v15 = vsel %vm1245_vm0, %v1725_v57, 0.0  ;;  %v1726_v2 = vmul.f32 %v4048_v10, %v1654_v9 }
 0x267   :  { %1834 = vadd.xlane.f32.xlu0 %v1833_v15  ;;  %v1724_v25 = vmul.f32 %v4048_v10, %v1652_v33  ;;  %v1827_v31 = vsel %vm1245_vm0, %v1723_v52, 0.0 }
 0x268   :  { %v1836_v38 = vsel %vm1245_vm0, %v1726_v2, 0.0 }
 0x269   :  { %1837 = vadd.xlane.f32.xlu1 %v1836_v38  ;;  %v1830_v42 = vsel %vm1245_vm0, %v1724_v25, 0.0 }
 0x26b   :  { %1828 = vadd.xlane.f32.xlu0 %v1827_v31 }
 0x26d   :  { %1831 = vadd.xlane.f32.xlu1 %v1830_v42 }
 0x26f   :  { %v3249_v19 = vpop.f32.mrb[88].mxu1 }
 0x270   :  { %v1481_v51 = vadd.f32 %v3249_v19, %v4040_v43  ;;  %v1472_v53 = vpop.f32.mrb[89].mxu1 }
 0x271   :  { %v1473_v48 = vadd.f32 %v4040_v43, %v1472_v53  ;;  %v3250_v13 = vpop.f32.mrb[90].mxu1 }
 0x272   :  { %v1657_v14 = vmax.f32 %v1481_v51, 0.0  ;;  %v1484_v54 = vadd.f32 %v3250_v13, %v4040_v43  ;;  %v1475_v29 = vpop.f32.mrb[91].mxu1 }
 0x273   :  { %v1655_v62 = vmax.f32 %v1473_v48, 0.0  ;;  %v1476_v59 = vadd.f32 %v4040_v43, %v1475_v29 }
 0x274   :  { %v1658_v55 = vmax.f32 %v1484_v54, 0.0  ;;  %v1729_v60 = vmul.f32 %v4048_v10, %v1657_v14  ;;  %v4175_v54 = vld [vmem:[#allocation4] ss:$0 sm:$0xff] }
 0x275   :  { %v1656_v35 = vmax.f32 %v1476_v59, 0.0  ;;  %v1727_v8 = vmul.f32 %v4048_v10, %v1655_v62 }
 0x276   :  { %v1845_v20 = vsel %vm1245_vm0, %v1729_v60, 0.0  ;;  %v1730_v32 = vmul.f32 %v4048_v10, %v1658_v55 }
 0x277   :  { %1846 = vadd.xlane.f32.xlu0 %v1845_v20  ;;  %v1728_v61 = vmul.f32 %v4048_v10, %v1656_v35  ;;  %v1839_v49 = vsel %vm1245_vm0, %v1727_v8, 0.0 }
 0x278   :  { %v1848_v58 = vsel %vm1245_vm0, %v1730_v32, 0.0 }
 0x279   :  { %1849 = vadd.xlane.f32.xlu1 %v1848_v58  ;;  %v1842_v28 = vsel %vm1245_vm0, %v1728_v61, 0.0 }
 0x27b   :  { %1840 = vadd.xlane.f32.xlu0 %v1839_v49 }
 0x27d   :  { %1843 = vadd.xlane.f32.xlu1 %v1842_v28 }
 0x27f   :  { %v3253_v0 = vpop.f32.mrb[92].mxu1 }
 0x280   :  { %v1497_v11 = vadd.f32 %v3253_v0, %v4040_v43  ;;  %v1488_v45 = vpop.f32.mrb[93].mxu1 }
 0x281   :  { %v1489_v63 = vadd.f32 %v4040_v43, %v1488_v45  ;;  %v3254_v23 = vpop.f32.mrb[94].mxu1 }
 0x282   :  { %v1661_v39 = vmax.f32 %v1497_v11, 0.0  ;;  %v1500_v40 = vadd.f32 %v3254_v23, %v4040_v43  ;;  %v1491_v27 = vpop.f32.mrb[95].mxu1 }
 0x283   :  { %v1659_v34 = vmax.f32 %v1489_v63, 0.0  ;;  %v1492_v12 = vadd.f32 %v4040_v43, %v1491_v27 }
 0x284   :  { %v1662_v1 = vmax.f32 %v1500_v40, 0.0  ;;  %v1733_v4 = vmul.f32 %v4048_v10, %v1661_v39 }
 0x285   :  { %v1660_v6 = vmax.f32 %v1492_v12, 0.0  ;;  %v1731_v44 = vmul.f32 %v4048_v10, %v1659_v34 }
 0x286   :  { %v1857_v36 = vsel %vm1245_vm0, %v1733_v4, 0.0  ;;  %v1734_v30 = vmul.f32 %v4048_v10, %v1662_v1 }
 0x287   :  { %1858 = vadd.xlane.f32.xlu0 %v1857_v36  ;;  %v1732_v3 = vmul.f32 %v4048_v10, %v1660_v6  ;;  %v1851_v24 = vsel %vm1245_vm0, %v1731_v44, 0.0 }
 0x288   :  { %v1860_v16 = vsel %vm1245_vm0, %v1734_v30, 0.0 }
 0x289   :  { %1861 = vadd.xlane.f32.xlu1 %v1860_v16  ;;  %v1854_v18 = vsel %vm1245_vm0, %v1732_v3, 0.0 }
 0x28b   :  { %1852 = vadd.xlane.f32.xlu0 %v1851_v24 }
 0x28d   :  { %1855 = vadd.xlane.f32.xlu1 %v1854_v18 }
 0x28f   :  { %v3257_v47 = vpop.f32.mrb[96].mxu1 }
 0x290   :  { %v1513_v17 = vadd.f32 %v3257_v47, %v4040_v43  ;;  %v1504_v56 = vpop.f32.mrb[97].mxu1 }
 0x291   :  { %v1505_v37 = vadd.f32 %v4040_v43, %v1504_v56  ;;  %v3258_v41 = vpop.f32.mrb[98].mxu1 }
 0x292   :  { %v1665_v5 = vmax.f32 %v1513_v17, 0.0  ;;  %v1516_v7 = vadd.f32 %v3258_v41, %v4040_v43  ;;  %v1507_v21 = vpop.f32.mrb[99].mxu1 }
 0x293   :  { %v1663_v50 = vmax.f32 %v1505_v37, 0.0  ;;  %v1508_v46 = vadd.f32 %v4040_v43, %v1507_v21 }
 0x294   :  { %v1666_v26 = vmax.f32 %v1516_v7, 0.0  ;;  %v1737_v22 = vmul.f32 %v4048_v10, %v1665_v5 }
 0x295   :  { %v1664_v9 = vmax.f32 %v1508_v46, 0.0  ;;  %v1735_v15 = vmul.f32 %v4048_v10, %v1663_v50 }
 0x296   :  { %v1869_v57 = vsel %vm1245_vm0, %v1737_v22, 0.0  ;;  %v1738_v33 = vmul.f32 %v4048_v10, %v1666_v26 }
 0x297   :  { %1870 = vadd.xlane.f32.xlu0 %v1869_v57  ;;  %v1736_v52 = vmul.f32 %v4048_v10, %v1664_v9  ;;  %v1863_v38 = vsel %vm1245_vm0, %v1735_v15, 0.0 }
 0x298   :  { %v1872_v2 = vsel %vm1245_vm0, %v1738_v33, 0.0 }
 0x299   :  { %1873 = vadd.xlane.f32.xlu1 %v1872_v2  ;;  %v1866_v25 = vsel %vm1245_vm0, %v1736_v52, 0.0 }
 0x29b   :  { %1864 = vadd.xlane.f32.xlu0 %v1863_v38 }
 0x29d   :  { %1867 = vadd.xlane.f32.xlu1 %v1866_v25 }
 0x29f   :  { %v3261_v31 = vpop.f32.mrb[100].mxu1 }
 0x2a0   :  { %v1529_v42 = vadd.f32 %v3261_v31, %v4040_v43  ;;  %v1520_v19 = vpop.f32.mrb[101].mxu1 }
 0x2a1   :  { %v1521_v51 = vadd.f32 %v4040_v43, %v1520_v19  ;;  %v3262_v53 = vpop.f32.mrb[102].mxu1 }
 0x2a2   :  { %v1669_v48 = vmax.f32 %v1529_v42, 0.0  ;;  %v1532_v13 = vadd.f32 %v3262_v53, %v4040_v43  ;;  %v1523_v14 = vpop.f32.mrb[103].mxu1 }
 0x2a3   :  { %v1667_v29 = vmax.f32 %v1521_v51, 0.0  ;;  %v1524_v62 = vadd.f32 %v4040_v43, %v1523_v14 }
 0x2a4   :  { %v1670_v59 = vmax.f32 %v1532_v13, 0.0  ;;  %v1775_v55 = vpop.xlane.xlu1 %1774  ;;  %v1741_v60 = vmul.f32 %v4048_v10, %v1669_v48 }
 0x2a5   :  { %v1668_v35 = vmax.f32 %v1524_v62, 0.0  ;;  %v4180_v20 = vadd.f32 %v4175_v54, %v1775_v55  ;;  %v1769_v32 = vpop.xlane.xlu0 %1768  ;;  %v1739_v49 = vmul.f32 %v4048_v10, %v1667_v29 }
 0x2a6   :  { %v4183_v8 = vadd.f32 %v4175_v54, %v1769_v32  ;;  %v1881_v58 = vsel %vm1245_vm0, %v1741_v60, 0.0  ;;  %v1742_v61 = vmul.f32 %v4048_v10, %v1670_v59 }
 0x2a7   :  { %v2095_v28 = vmin.f32 %v4180_v20, 20.0  ;;  %1882 = vadd.xlane.f32.xlu0 %v1881_v58  ;;  %v1740_v63 = vmul.f32 %v4048_v10, %v1668_v35  ;;  %v1875_v12 = vsel %vm1245_vm0, %v1739_v49, 0.0  ;;  %vm2031_vm3 = vcmp.gt.f32.partialorder %v4180_v20, 20.0 }
 0x2a8   :  { %v2093_v0 = vmin.f32 %v4183_v8, 20.0  ;;  %v1778_v11 = vpop.xlane.xlu1 %1777  ;;  %v1884_v45 = vsel %vm1245_vm0, %v1742_v61, 0.0  ;;  %vm2029_vm5 = vcmp.gt.f32.partialorder %v4183_v8, 20.0 }
 0x2a9   :  { %v2161_v23 = vmul.f32 1.442695, %v2095_v28  ;;  %v4193_v39 = vadd.f32 %v4175_v54, %v1778_v11  ;;  %1885 = vadd.xlane.f32.xlu1 %v1884_v45  ;;  %v1772_v40 = vpop.xlane.xlu0 %1771  ;;  %v1878_v6 = vsel %vm1245_vm0, %v1740_v63, 0.0 }
 0x2aa   :  { %v2157_v27 = vmul.f32 1.442695, %v2093_v0  ;;  %v4196_v34 = vadd.f32 %v4175_v54, %v1772_v40 }
 0x2ab   :  { %3319 = vpow2.f32 %v2161_v23  ;;  %v2096_v1 = vmin.f32 %v4193_v39, 20.0  ;;  %1876 = vadd.xlane.f32.xlu0 %v1875_v12  ;;  %vm2032_vm7 = vcmp.gt.f32.partialorder %v4193_v39, 20.0 }
 0x2ac   :  { %3321 = vpow2.f32 %v2157_v27  ;;  %v2094_v4 = vmin.f32 %v4196_v34, 20.0  ;;  %vm2030_vm9 = vcmp.gt.f32.partialorder %v4196_v34, 20.0 }
 0x2ad   :  { %v2163_v36 = vmul.f32 1.442695, %v2096_v1  ;;  %1879 = vadd.xlane.f32.xlu1 %v1878_v6 }
 0x2ae   :  { %v2159_v30 = vmul.f32 1.442695, %v2094_v4 }
 0x2af   :  { %3323 = vpow2.f32 %v2163_v36  ;;  %v3265_v44 = vpop.f32.mrb[104].mxu1 }
 0x2b0   :  { %3325 = vpow2.f32 %v2159_v30  ;;  %v1545_v16 = vadd.f32 %v3265_v44, %v4040_v43  ;;  %v1536_v3 = vpop.f32.mrb[105].mxu1 }
 0x2b1   :  { %v3266_v24 = vpop.f32.mrb[106].mxu1  ;;  %v1537_v17 = vadd.f32 %v4040_v43, %v1536_v3 }
 0x2b2   :  { %v1673_v18 = vmax.f32 %v1545_v16, 0.0  ;;  %v1539_v47 = vpop.f32.mrb[107].mxu1  ;;  %v1548_v57 = vadd.f32 %v3266_v24, %v4040_v43 }
 0x2b3   :  { %v1671_v9 = vmax.f32 %v1537_v17, 0.0  ;;  %v1540_v33 = vadd.f32 %v4040_v43, %v1539_v47 }
 0x2b4   :  { %v1787_v56 = vpop.xlane.xlu0 %1786  ;;  %v1745_v37 = vmul.f32 %v4048_v10, %v1673_v18  ;;  %v1674_v48 = vmax.f32 %v1548_v57, 0.0 }
 0x2b5   :  { %v3320_v41 = vpop.eup %3319  ;;  %v4206_v5 = vadd.f32 %v4175_v54, %v1787_v56  ;;  %v1672_v13 = vmax.f32 %v1540_v33, 0.0  ;;  %v1743_v29 = vmul.f32 %v4048_v10, %v1671_v9 }
 0x2b6   :  { %v3322_v7 = vpop.eup %3321  ;;  %v2303_v21 = vadd.f32 1.0, %v3320_v41  ;;  %v2306_v50 = vmul.f32 -0.5, %v3320_v41  ;;  %v1790_v46 = vpop.xlane.xlu1 %1789  ;;  %v1893_v26 = vsel %vm1245_vm0, %v1745_v37, 0.0  ;;  %v2309_v15 = vand.u32 2147483647, %v3320_v41 }
 0x2b7   :  { %v2285_v22 = vadd.f32 1.0, %v3322_v7  ;;  %1894 = vadd.xlane.f32.xlu0 %v1893_v26  ;;  %v2288_v2 = vmul.f32 -0.5, %v3322_v7  ;;  %v2099_v52 = vmin.f32 %v4206_v5, 20.0  ;;  %v2291_v31 = vand.u32 2147483647, %v3322_v7 }
 0x2b8   :  { %3327 = vlog2.f32 %v2303_v21  ;;  %v2307_v25 = vadd.f32 1.0, %v2306_v50  ;;  %v4218_v51 = vadd.f32 %v4175_v54, %v1790_v46  ;;  %v1781_v14 = vpop.xlane.xlu0 %1780  ;;  %vm4222_vm2 = vcmp.lt.f32.partialorder %v2309_v15, 0.0004427343 }
 0x2b9   :  { %v4212_v38 = vpop.eup %3323  ;;  %3329 = vlog2.f32 %v2285_v22  ;;  %v2289_v59 = vadd.f32 1.0, %v2288_v2  ;;  %v2169_v55 = vmul.f32 1.442695, %v2099_v52  ;;  %vm4227_vm4 = vcmp.lt.f32.partialorder %v2291_v31, 0.0004427343 }
 0x2ba   :  { %v4214_v42 = vpop.eup %3325  ;;  %v2312_v19 = vadd.f32 1.0, %v4212_v38  ;;  %v1784_v60 = vpop.xlane.xlu1 %1783  ;;  %v2308_v35 = vmul.f32 %v3320_v41, %v2307_v25  ;;  %v2315_v58 = vmul.f32 -0.5, %v4212_v38  ;;  %v2100_v49 = vmin.f32 %v4218_v51, 20.0 }
 0x2bb   :  { %v2294_v53 = vadd.f32 1.0, %v4214_v42  ;;  %v2297_v61 = vmul.f32 -0.5, %v4214_v42  ;;  %v4236_v28 = vadd.f32 %v4175_v54, %v1781_v14  ;;  %v2318_v0 = vand.u32 2147483647, %v4212_v38 }
 0x2bc   :  { %3331 = vlog2.f32 %v2312_v19  ;;  %v1746_v11 = vmul.f32 %v4048_v10, %v1674_v48  ;;  %v4241_v45 = vadd.f32 %v4175_v54, %v1784_v60  ;;  %v1887_v63 = vsel %vm1245_vm0, %v1743_v29, 0.0 }
 0x2bd   :  { %3333 = vlog2.f32 %v2294_v53  ;;  %v2290_v40 = vmul.f32 %v3322_v7, %v2289_v59  ;;  %v2171_v27 = vmul.f32 1.442695, %v2100_v49  ;;  %v2097_v12 = vmin.f32 %v4236_v28, 20.0  ;;  %1888 = vadd.xlane.f32.xlu0 %v1887_v63 }
 0x2be   :  { %3335 = vpow2.f32 %v2169_v55  ;;  %v1744_v1 = vmul.f32 %v4048_v10, %v1672_v13  ;;  %v2300_v6 = vand.u32 2147483647, %v4214_v42  ;;  %v1896_v36 = vsel %vm1245_vm0, %v1746_v11, 0.0 }
 0x2bf   :  { %v3269_v23 = vpop.f32.mrb[108].mxu1  ;;  %v2098_v30 = vmin.f32 %v4241_v45, 20.0  ;;  %v2316_v24 = vadd.f32 1.0, %v2315_v58  ;;  %v2298_v18 = vadd.f32 1.0, %v2297_v61  ;;  %3337 = vpow2.f32 %v2171_v27  ;;  %1897 = vadd.xlane.f32.xlu1 %v1896_v36 }
 0x2c0   :  { %v1552_v4 = vpop.f32.mrb[109].mxu1  ;;  %v1561_v44 = vadd.f32 %v3269_v23, %v4040_v43  ;;  %v2165_v47 = vmul.f32 1.442695, %v2097_v12  ;;  %vm4251_vm6 = vcmp.lt.f32.partialorder %v2318_v0, 0.0004427343  ;;  %v1890_v26 = vsel %vm1245_vm0, %v1744_v1, 0.0 }
 0x2c1   :  { %v3270_v16 = vpop.f32.mrb[110].mxu1  ;;  %v2167_v41 = vmul.f32 1.442695, %v2098_v30  ;;  %v2317_v25 = vmul.f32 %v4212_v38, %v2316_v24  ;;  %v2299_v13 = vmul.f32 %v4214_v42, %v2298_v18  ;;  %vm2301_vm8 = vcmp.lt.f32.partialorder %v2300_v6, 0.0004427343 }
 0x2c2   :  { %v3328_v3 = vpop.eup %3327  ;;  %v1555_v17 = vpop.f32.mrb[111].mxu1  ;;  %v1677_v7 = vmax.f32 %v1561_v44, 0.0  ;;  %v1564_v21 = vadd.f32 %v3270_v16, %v4040_v43  ;;  %3339 = vpow2.f32 %v2165_v47  ;;  %v1553_v49 = vadd.f32 %v4040_v43, %v1552_v4 }
 0x2c3   :  { %v3330_v56 = vpop.eup %3329  ;;  %v2305_v37 = vmul.f32 0.6931472, %v3328_v3  ;;  %3341 = vpow2.f32 %v2167_v41  ;;  %1891 = vadd.xlane.f32.xlu1 %v1890_v26  ;;  %vm2035_vm10 = vcmp.gt.f32.partialorder %v4206_v5, 20.0  ;;  %vm2036_vm12 = vcmp.gt.f32.partialorder %v4218_v51, 20.0 }
 0x2c4   :  { %v2287_v50 = vmul.f32 0.6931472, %v3330_v56  ;;  %v1799_v22 = vpop.xlane.xlu0 %1798  ;;  %v1678_v57 = vmax.f32 %v1564_v21, 0.0  ;;  %v1749_v19 = vmul.f32 %v4048_v10, %v1677_v7  ;;  %v1675_v24 = vmax.f32 %v1553_v49, 0.0 }
 0x2c5   :  { %v2311_v9 = vsel %vm4222_vm2, %v2308_v35, %v2305_v37  ;;  %v4259_v33 = vadd.f32 %v4175_v54, %v1799_v22  ;;  %vm2033_vm13 = vcmp.gt.f32.partialorder %v4236_v28, 20.0  ;;  %vm2034_vm15 = vcmp.gt.f32.partialorder %v4241_v45, 20.0 }
 0x2c6   :  { %v3332_v15 = vpop.eup %3331  ;;  %v2863_v2 = vsel %vm2031_vm3, %v4180_v20, %v2311_v9  ;;  %v2293_v52 = vsel %vm4227_vm4, %v2290_v40, %v2287_v50  ;;  %v1802_v31 = vpop.xlane.xlu1 %1801  ;;  %v1905_v59 = vsel %vm1245_vm0, %v1749_v19, 0.0  ;;  %v1556_v40 = vadd.f32 %v4040_v43, %v1555_v17 }
 0x2c7   :  { %v3334_v53 = vpop.eup %3333  ;;  %2928 = vst.msk [vmem:[%s5459_s8 + $0x10] sm:$0xff] %vm2925_vm1, %v2863_v2  ;;  %v2861_v48 = vsel %vm2029_vm5, %v4183_v8, %v2293_v52  ;;  %v2314_v20 = vmul.f32 0.6931472, %v3332_v15  ;;  %v2103_v14 = vmin.f32 %v4259_v33, 20.0  ;;  %v4284_v62 = vadd.f32 %v4175_v54, %v1802_v31  ;;  %1906 = vadd.xlane.f32.xlu0 %v1905_v59 }
 0x2c8   :  { %v4277_v38 = vpop.eup %3335  ;;  %2926 = vst.msk [vmem:[%s5459_s8] sm:$0xff] %vm2925_vm1, %v2861_v48  ;;  %v2296_v29 = vmul.f32 0.6931472, %v3334_v53  ;;  %v1750_v8 = vmul.f32 %v4048_v10, %v1678_v57  ;;  %v1793_v60 = vpop.xlane.xlu0 %1792  ;;  %v1676_v17 = vmax.f32 %v1556_v40, 0.0  ;;  %v1747_v9 = vmul.f32 %v4048_v10, %v1675_v24 }
 0x2c9   :  { %v2320_v42 = vsel %vm4251_vm6, %v2317_v25, %v2314_v20  ;;  %v2339_v55 = vadd.f32 1.0, %v4277_v38  ;;  %v2177_v58 = vmul.f32 1.442695, %v2103_v14  ;;  %v4300_v0 = vpop.eup %3337  ;;  %v4308_v11 = vadd.f32 %v4175_v54, %v1793_v60 }
 0x2ca   :  { %v2864_v35 = vsel %vm2032_vm7, %v4193_v39, %v2320_v42  ;;  %v2302_v32 = vsel %vm2301_vm8, %v2299_v13, %v2296_v29  ;;  %v2104_v39 = vmin.f32 %v4284_v62, 20.0  ;;  %v1908_v63 = vsel %vm1245_vm0, %v1750_v8, 0.0  ;;  %v1796_v23 = vpop.xlane.xlu1 %1795 }
 0x2cb   :  { %2929 = vst.msk [vmem:[%s5459_s8 + $0x18] sm:$0xff] %vm2925_vm1, %v2864_v35  ;;  %v2862_v61 = vsel %vm2030_vm9, %v4196_v34, %v2302_v32  ;;  %3343 = vlog2.f32 %v2339_v55  ;;  %v2348_v34 = vadd.f32 1.0, %v4300_v0  ;;  %1909 = vadd.xlane.f32.xlu1 %v1908_v63  ;;  %v2342_v12 = vmul.f32 -0.5, %v4277_v38 }
 0x2cc   :  { %2927 = vst.msk [vmem:[%s5459_s8 + $0x8] sm:$0xff] %vm2925_vm1, %v2862_v61  ;;  %3345 = vpow2.f32 %v2177_v58  ;;  %v4313_v27 = vpop.eup %3339  ;;  %v2101_v1 = vmin.f32 %v4308_v11, 20.0  ;;  %v2179_v36 = vmul.f32 1.442695, %v2104_v39  ;;  %v4321_v30 = vadd.f32 %v4175_v54, %v1796_v23 }
 0x2cd   :  { %v4317_v4 = vpop.eup %3341  ;;  %3347 = vlog2.f32 %v2348_v34  ;;  %v2321_v6 = vadd.f32 1.0, %v4313_v27  ;;  %v2345_v16 = vand.u32 2147483647, %v4277_v38  ;;  %v2351_v47 = vmul.f32 -0.5, %v4300_v0 }
 0x2ce   :  { %v2330_v3 = vadd.f32 1.0, %v4317_v4  ;;  %v2173_v56 = vmul.f32 1.442695, %v2101_v1  ;;  %v2343_v41 = vadd.f32 1.0, %v2342_v12  ;;  %v2324_v21 = vmul.f32 -0.5, %v4313_v27 }
 0x2cf   :  { %v3273_v44 = vpop.f32.mrb[112].mxu1  ;;  %3349 = vlog2.f32 %v2321_v6  ;;  %v2333_v50 = vmul.f32 -0.5, %v4317_v4  ;;  %v2102_v46 = vmin.f32 %v4321_v30, 20.0  ;;  %vm4332_vm11 = vcmp.lt.f32.partialorder %v2345_v16, 0.0004427343 }
 0x2d0   :  { %v1568_v18 = vpop.f32.mrb[113].mxu1  ;;  %3351 = vlog2.f32 %v2330_v3  ;;  %v2354_v22 = vand.u32 2147483647, %v4300_v0  ;;  %v2352_v15 = vadd.f32 1.0, %v2351_v47  ;;  %v2327_v2 = vand.u32 2147483647, %v4313_v27 }
 0x2d1   :  { %v3274_v37 = vpop.f32.mrb[114].mxu1  ;;  %3353 = vpow2.f32 %v2179_v36  ;;  %v2175_v52 = vmul.f32 1.442695, %v2102_v46  ;;  %v1748_v25 = vmul.f32 %v4048_v10, %v1676_v17  ;;  %v2344_v53 = vmul.f32 %v4277_v38, %v2343_v41  ;;  %v4408_v47 = vld [vmem:[%s5456_s5] ss:$0 sm:$0xff] }
 0x2d2   :  { %v4327_v7 = vpop.f32.mrb[115].mxu1  ;;  %3355 = vpow2.f32 %v2173_v56  ;;  %v2336_v48 = vand.u32 2147483647, %v4317_v4  ;;  %v1899_v20 = vsel %vm1245_vm0, %v1747_v9, 0.0  ;;  %v2325_v13 = vadd.f32 1.0, %v2324_v21 }
 0x2d3   :  { %v2334_v14 = vadd.f32 1.0, %v2333_v50  ;;  %3357 = vpow2.f32 %v2175_v52  ;;  %1900 = vadd.xlane.f32.xlu0 %v1899_v20  ;;  %vm4350_vm14 = vcmp.lt.f32.partialorder %v2354_v22, 0.0004427343  ;;  %v1902_v38 = vsel %vm1245_vm0, %v1748_v25, 0.0 }
 0x2d4   :  { %v1811_v59 = vpop.xlane.xlu0 %1810  ;;  %v2353_v35 = vmul.f32 %v4300_v0, %v2352_v15  ;;  %1903 = vadd.xlane.f32.xlu1 %v1902_v38  ;;  %v1577_v32 = vadd.f32 %v3273_v44, %v4040_v43  ;;  %vm4365_vm2 = vcmp.lt.f32.partialorder %v2327_v2, 0.0004427343  ;;  %vm4369_vm3 = vcmp.lt.f32.partialorder %v2336_v48, 0.0004427343  ;;  %v4438_v15 = vld [vmem:[%s5457_s6] ss:$0 sm:$0xff] }
 0x2d5   :  { %v3344_v57 = vpop.eup %3343  ;;  %v2326_v39 = vmul.f32 %v4313_v27, %v2325_v13  ;;  %v2335_v63 = vmul.f32 %v4317_v4, %v2334_v14  ;;  %v4379_v23 = vadd.f32 %v4040_v43, %v1568_v18  ;;  %v1580_v36 = vadd.f32 %v3274_v37, %v4040_v43 }
 0x2d6   :  { %v4341_v31 = vpop.eup %3345  ;;  %v2341_v19 = vmul.f32 0.6931472, %v3344_v57  ;;  %v1814_v42 = vpop.xlane.xlu1 %1813  ;;  %v1681_v16 = vmax.f32 %v1577_v32, 0.0  ;;  %vm2039_vm4 = vcmp.gt.f32.partialorder %v4259_v33, 20.0  ;;  %v1572_v17 = vadd.f32 %v4408_v47, %v4327_v7 }
 0x2d7   :  { %v2375_v29 = vadd.f32 1.0, %v4341_v31  ;;  %v3348_v55 = vpop.eup %3347  ;;  %v4382_v34 = vadd.f32 %v4175_v54, %v1814_v42  ;;  %v2378_v6 = vmul.f32 -0.5, %v4341_v31  ;;  %v2381_v18 = vand.u32 2147483647, %v4341_v31 }
 0x2d8   :  { %v2347_v10 = vsel %vm4332_vm11, %v2344_v53, %v2341_v19  ;;  %v2350_v58 = vmul.f32 0.6931472, %v3348_v55  ;;  %v1805_v56 = vpop.xlane.xlu0 %1804  ;;  %v1682_v48 = vmax.f32 %v1580_v36, 0.0  ;;  %vm2040_vm6 = vcmp.gt.f32.partialorder %v4284_v62, 20.0 }
 0x2d9   :  { %v2867_v60 = vsel %vm2035_vm10, %v4206_v5, %v2347_v10  ;;  %3359 = vlog2.f32 %v2375_v29  ;;  %v4374_v5 = vadd.f32 %v4175_v54, %v1811_v59  ;;  %v3350_v0 = vpop.eup %3349  ;;  %v2108_v50 = vmin.f32 %v4382_v34, 20.0 }
 0x2da   :  { %2932 = vst.msk [vmem:[%s5459_s8 + $0x30] sm:$0xff] %vm2925_vm1, %v2867_v60  ;;  %v3352_v40 = vpop.eup %3351  ;;  %v2356_v12 = vsel %vm4350_vm14, %v2353_v35, %v2350_v58  ;;  %v2323_v1 = vmul.f32 0.6931472, %v3350_v0  ;;  %v2379_v26 = vadd.f32 1.0, %v2378_v6  ;;  %v4442_v2 = vadd.f32 %v4175_v54, %v1805_v56  ;;  %v1808_v10 = vpop.xlane.xlu1 %1807 }
 0x2db   :  { %v4388_v44 = vpop.eup %3353  ;;  %v2868_v27 = vsel %vm2036_vm12, %v4218_v51, %v2356_v12  ;;  %v2332_v4 = vmul.f32 0.6931472, %v3352_v40  ;;  %v2107_v3 = vmin.f32 %v4374_v5, 20.0  ;;  %vm4446_vm5 = vcmp.lt.f32.partialorder %v2381_v18, 0.0004427343 }
 0x2dc   :  { %v4394_v24 = vpop.eup %3355  ;;  %2933 = vst.msk [vmem:[%s5459_s8 + $0x38] sm:$0xff] %vm2925_vm1, %v2868_v27  ;;  %v2329_v43 = vsel %vm4365_vm2, %v2326_v39, %v2323_v1  ;;  %v2384_v51 = vadd.f32 1.0, %v4388_v44  ;;  %v2387_v19 = vmul.f32 -0.5, %v4388_v44  ;;  %v1680_v29 = vmax.f32 %v1572_v17, 0.0 }
 0x2dd   :  { %v2865_v37 = vsel %vm2033_vm13, %v4236_v28, %v2329_v43  ;;  %v2338_v41 = vsel %vm4369_vm3, %v2335_v63, %v2332_v4  ;;  %v2357_v21 = vadd.f32 1.0, %v4394_v24  ;;  %v1679_v28 = vmax.f32 %v4379_v23, 0.0  ;;  %v4429_v9 = vpop.eup %3357 }
 0x2de   :  { %2930 = vst.msk [vmem:[%s5459_s8 + $0x20] sm:$0xff] %vm2925_vm1, %v2865_v37  ;;  %v2866_v7 = vsel %vm2034_vm15, %v4241_v45, %v2338_v41  ;;  %3361 = vlog2.f32 %v2384_v51  ;;  %v2185_v57 = vmul.f32 1.442695, %v2107_v3  ;;  %v1753_v45 = vmul.f32 %v4438_v15, %v1681_v16 }
 0x2df   :  { %v3277_v46 = vpop.f32.mrb[116].mxu1  ;;  %2931 = vst.msk [vmem:[%s5459_s8 + $0x28] sm:$0xff] %vm2925_vm1, %v2866_v7  ;;  %3363 = vlog2.f32 %v2357_v21  ;;  %v2366_v53 = vadd.f32 1.0, %v4429_v9  ;;  %v2360_v14 = vmul.f32 -0.5, %v4394_v24  ;;  %v2187_v59 = vmul.f32 1.442695, %v2108_v50 }
 0x2e0   :  { %v4427_v22 = vpop.f32.mrb[117].mxu1  ;;  %3365 = vpow2.f32 %v2185_v57  ;;  %v2380_v38 = vmul.f32 %v4341_v31, %v2379_v26  ;;  %v2390_v42 = vand.u32 2147483647, %v4388_v44  ;;  %v2369_v55 = vmul.f32 -0.5, %v4429_v9 }
 0x2e1   :  { %v4444_v52 = vpop.f32.mrb[118].mxu1  ;;  %3367 = vlog2.f32 %v2366_v53  ;;  %v1917_v60 = vsel %vm1245_vm0, %v1753_v45, 0.0  ;;  %v2105_v35 = vmin.f32 %v4442_v2, 20.0  ;;  %v2388_v58 = vadd.f32 1.0, %v2387_v19 }
 0x2e2   :  { %v4452_v20 = vpop.f32.mrb[119].mxu1  ;;  %3369 = vpow2.f32 %v2187_v59  ;;  %1918 = vadd.xlane.f32.xlu0 %v1917_v60  ;;  %v1754_v61 = vmul.f32 %v4438_v15, %v1682_v48  ;;  %v4465_v31 = vadd.f32 %v4175_v54, %v1808_v10  ;;  %v2361_v0 = vadd.f32 1.0, %v2360_v14 }
 0x2e3   :  { %v3360_v13 = vpop.eup %3359  ;;  %v2181_v39 = vmul.f32 1.442695, %v2105_v35  ;;  %v1751_v63 = vmul.f32 %v4438_v15, %v1679_v28  ;;  %v2363_v23 = vand.u32 2147483647, %v4394_v24  ;;  %v1752_v1 = vmul.f32 %v4438_v15, %v1680_v29 }
 0x2e4   :  { %v2377_v8 = vmul.f32 0.6931472, %v3360_v13  ;;  %v1920_v40 = vsel %vm1245_vm0, %v1754_v61, 0.0  ;;  %v2106_v12 = vmin.f32 %v4465_v31, 20.0  ;;  %v1823_v6 = vpop.xlane.xlu0 %1822  ;;  %v2370_v36 = vadd.f32 1.0, %v2369_v55 }
 0x2e5   :  { %3371 = vpow2.f32 %v2181_v39  ;;  %1921 = vadd.xlane.f32.xlu1 %v1920_v40  ;;  %v1593_v27 = vadd.f32 %v4408_v47, %v3277_v46  ;;  %v2389_v16 = vmul.f32 %v4388_v44, %v2388_v58  ;;  %vm4482_vm7 = vcmp.lt.f32.partialorder %v2390_v42, 0.0004427343 }
 0x2e6   :  { %v2383_v32 = vsel %vm4446_vm5, %v2380_v38, %v2377_v8  ;;  %vm2037_vm8 = vcmp.gt.f32.partialorder %v4308_v11, 20.0  ;;  %v2183_v43 = vmul.f32 1.442695, %v2106_v12  ;;  %v2362_v17 = vmul.f32 %v4394_v24, %v2361_v0  ;;  %v1826_v50 = vpop.xlane.xlu1 %1825 }
 0x2e7   :  { %v2871_v49 = vsel %vm2039_vm4, %v4259_v33, %v2383_v32  ;;  %v1911_v33 = vsel %vm1245_vm0, %v1751_v63, 0.0  ;;  %v2372_v56 = vand.u32 2147483647, %v4429_v9  ;;  %v4490_v37 = vadd.f32 %v4175_v54, %v1823_v6 }
 0x2e8   :  { %2936 = vst.msk [vmem:[%s5459_s8 + $0x50] sm:$0xff] %vm2925_vm1, %v2871_v49  ;;  %v3362_v4 = vpop.eup %3361  ;;  %1912 = vadd.xlane.f32.xlu0 %v1911_v33  ;;  %vm4492_vm9 = vcmp.lt.f32.partialorder %v2363_v23, 0.0004427343  ;;  %3373 = vpow2.f32 %v2183_v43  ;;  %v1914_v21 = vsel %vm1245_vm0, %v1752_v1, 0.0  ;;  %v2371_v24 = vmul.f32 %v4429_v9, %v2370_v36  ;;  %v1817_v59 = vpop.xlane.xlu0 %1816 }
 0x2e9   :  { %v3364_v18 = vpop.eup %3363  ;;  %v2386_v51 = vmul.f32 0.6931472, %v3362_v4  ;;  %1915 = vadd.xlane.f32.xlu1 %v1914_v21  ;;  %v1685_v26 = vmax.f32 %v1593_v27, 0.0  ;;  %v2111_v28 = vmin.f32 %v4490_v37, 20.0  ;;  %v1596_v53 = vadd.f32 %v4408_v47, %v4444_v52 }
 0x2ea   :  { %v2359_v41 = vmul.f32 0.6931472, %v3364_v18  ;;  %v4497_v46 = vpop.eup %3365  ;;  %v4521_v14 = vadd.f32 %v4175_v54, %v1826_v50  ;;  %vm2373_vm10 = vcmp.lt.f32.partialorder %v2372_v56, 0.0004427343  ;;  %v1585_v29 = vadd.f32 %v4408_v47, %v4427_v22  ;;  %v1820_v12 = vpop.xlane.xlu1 %1819 }
 0x2eb   :  { %v2392_v7 = vsel %vm4482_vm7, %v2389_v16, %v2386_v51  ;;  %v3368_v57 = vpop.eup %3367  ;;  %v2411_v19 = vadd.f32 1.0, %v4497_v46  ;;  %v2193_v13 = vmul.f32 1.442695, %v2111_v28  ;;  %vm2038_vm11 = vcmp.gt.f32.partialorder %v4321_v30, 20.0 }
 0x2ec   :  { %v2872_v45 = vsel %vm2040_vm6, %v4284_v62, %v2392_v7  ;;  %v2365_v25 = vsel %vm4492_vm9, %v2362_v17, %v2359_v41  ;;  %v4511_v48 = vpop.eup %3369  ;;  %v2368_v62 = vmul.f32 0.6931472, %v3368_v57  ;;  %v1686_v42 = vmax.f32 %v1596_v53, 0.0 }
 0x2ed   :  { %2937 = vst.msk [vmem:[%s5459_s8 + $0x58] sm:$0xff] %vm2925_vm1, %v2872_v45  ;;  %v2869_v9 = vsel %vm2037_vm8, %v4308_v11, %v2365_v25  ;;  %3375 = vlog2.f32 %v2411_v19  ;;  %v2420_v52 = vadd.f32 1.0, %v4511_v48  ;;  %v1588_v55 = vadd.f32 %v4408_v47, %v4452_v20 }
 0x2ee   :  { %2934 = vst.msk [vmem:[%s5459_s8 + $0x40] sm:$0xff] %vm2925_vm1, %v2869_v9  ;;  %v2374_v11 = vsel %vm2373_vm10, %v2371_v24, %v2368_v62  ;;  %3377 = vpow2.f32 %v2193_v13  ;;  %v2414_v22 = vmul.f32 -0.5, %v4497_v46  ;;  %v2112_v32 = vmin.f32 %v4521_v14, 20.0 }
 0x2ef   :  { %v4530_v10 = vpop.f32.mrb[120].mxu1  ;;  %v2870_v38 = vsel %vm2038_vm11, %v4321_v30, %v2374_v11  ;;  %3379 = vlog2.f32 %v2420_v52  ;;  %v4540_v35 = vpop.eup %3371  ;;  %v1757_v30 = vmul.f32 %v4438_v15, %v1685_v26  ;;  %v4550_v58 = vadd.f32 %v4175_v54, %v1817_v59 }
 0x2f0   :  { %v4533_v8 = vpop.f32.mrb[121].mxu1  ;;  %2935 = vst.msk [vmem:[%s5459_s8 + $0x48] sm:$0xff] %vm2925_vm1, %v2870_v38  ;;  %v2423_v20 = vmul.f32 -0.5, %v4511_v48  ;;  %v2393_v49 = vadd.f32 1.0, %v4540_v35  ;;  %v1683_v0 = vmax.f32 %v1585_v29, 0.0  ;;  %vm2043_vm12 = vcmp.gt.f32.partialorder %v4374_v5, 20.0 }
 0x2f1   :  { %v4538_v60 = vpop.f32.mrb[122].mxu1  ;;  %v2417_v39 = vand.u32 2147483647, %v4497_v46  ;;  %v2195_v63 = vmul.f32 1.442695, %v2112_v32  ;;  %v1929_v23 = vsel %vm1245_vm0, %v1757_v30, 0.0  ;;  %v1758_v36 = vmul.f32 %v4438_v15, %v1686_v42 }
 0x2f2   :  { %v4552_v61 = vpop.f32.mrb[123].mxu1  ;;  %v2109_v40 = vmin.f32 %v4550_v58, 20.0  ;;  %v4559_v1 = vpop.eup %3373  ;;  %3381 = vlog2.f32 %v2393_v49  ;;  %v1684_v6 = vmax.f32 %v1588_v55, 0.0  ;;  %1930 = vadd.xlane.f32.xlu0 %v1929_v23  ;;  %v2415_v33 = vadd.f32 1.0, %v2414_v22 }
 0x2f3   :  { %vm2044_vm13 = vcmp.gt.f32.partialorder %v4382_v34, 20.0  ;;  %v2426_v27 = vand.u32 2147483647, %v4511_v48  ;;  %v2402_v4 = vadd.f32 1.0, %v4559_v1  ;;  %3383 = vpow2.f32 %v2195_v63 }
 0x2f4   :  { %v2424_v16 = vadd.f32 1.0, %v2423_v20  ;;  %v2189_v3 = vmul.f32 1.442695, %v2109_v40  ;;  %v1932_v43 = vsel %vm1245_vm0, %v1758_v36, 0.0  ;;  %v4568_v18 = vadd.f32 %v4175_v54, %v1820_v12  ;;  %v1835_v29 = vpop.xlane.xlu0 %1834 }
 0x2f5   :  { %vm4570_vm14 = vcmp.lt.f32.partialorder %v2417_v39, 0.0004427343  ;;  %v2396_v17 = vmul.f32 -0.5, %v4540_v35  ;;  %3385 = vlog2.f32 %v2402_v4  ;;  %1933 = vadd.xlane.f32.xlu1 %v1932_v43  ;;  %v1755_v56 = vmul.f32 %v4438_v15, %v1683_v0 }
 0x2f6   :  { %v2405_v44 = vmul.f32 -0.5, %v4559_v1  ;;  %3387 = vpow2.f32 %v2189_v3  ;;  %v2110_v21 = vmin.f32 %v4568_v18, 20.0  ;;  %v1756_v50 = vmul.f32 %v4438_v15, %v1684_v6 }
 0x2f7   :  { %v3376_v41 = vpop.eup %3375  ;;  %v2416_v26 = vmul.f32 %v4497_v46, %v2415_v33  ;;  %vm4582_vm15 = vcmp.lt.f32.partialorder %v2426_v27, 0.0004427343  ;;  %vm2041_vm2 = vcmp.gt.f32.partialorder %v4442_v2, 20.0  ;;  %v1923_v57 = vsel %vm1245_vm0, %v1755_v56, 0.0 }
 0x2f8   :  { %v4579_v7 = vpop.eup %3377  ;;  %v2413_v24 = vmul.f32 0.6931472, %v3376_v41  ;;  %v2425_v25 = vmul.f32 %v4511_v48, %v2424_v16  ;;  %v2399_v19 = vand.u32 2147483647, %v4540_v35  ;;  %v2191_v9 = vmul.f32 1.442695, %v2110_v21  ;;  %1924 = vadd.xlane.f32.xlu0 %v1923_v57 }
 0x2f9   :  { %v3380_v45 = vpop.eup %3379  ;;  %v2447_v53 = vadd.f32 1.0, %v4579_v7  ;;  %v2397_v13 = vadd.f32 1.0, %v2396_v17  ;;  %v1926_v52 = vsel %vm1245_vm0, %v1756_v50, 0.0  ;;  %v2406_v11 = vadd.f32 1.0, %v2405_v44  ;;  %v1829_v44 = vpop.xlane.xlu0 %1828 }
 0x2fa   :  { %v2419_v46 = vsel %vm4570_vm14, %v2416_v26, %v2413_v24  ;;  %v2422_v62 = vmul.f32 0.6931472, %v3380_v45  ;;  %v2408_v48 = vand.u32 2147483647, %v4559_v1  ;;  %1927 = vadd.xlane.f32.xlu1 %v1926_v52  ;;  %v2450_v42 = vmul.f32 -0.5, %v4579_v7 }
 0x2fb   :  { %v2875_v59 = vsel %vm2043_vm12, %v4374_v5, %v2419_v46  ;;  %3389 = vlog2.f32 %v2447_v53  ;;  %v1609_v55 = vadd.f32 %v4408_v47, %v4530_v10  ;;  %v1838_v5 = vpop.xlane.xlu1 %1837  ;;  %vm2042_vm3 = vcmp.gt.f32.partialorder %v4465_v31, 20.0 }
 0x2fc   :  { %2940 = vst.msk [vmem:[%s5459_s8 + $0x70] sm:$0xff] %vm2925_vm1, %v2875_v59  ;;  %v2428_v38 = vsel %vm4582_vm15, %v2425_v25, %v2422_v62  ;;  %3391 = vpow2.f32 %v2191_v9  ;;  %v3382_v32 = vpop.eup %3381  ;;  %v2453_v20 = vand.u32 2147483647, %v4579_v7  ;;  %v4615_v49 = vadd.f32 %v4175_v54, %v1835_v29 }
 0x2fd   :  { %v2876_v30 = vsel %vm2044_vm13, %v4382_v34, %v2428_v38  ;;  %v4619_v39 = vpop.eup %3383  ;;  %v2395_v10 = vmul.f32 0.6931472, %v3382_v32  ;;  %v2398_v63 = vmul.f32 %v4540_v35, %v2397_v13  ;;  %vm2400_vm4 = vcmp.lt.f32.partialorder %v2399_v19, 0.0004427343 }
 0x2fe   :  { %2941 = vst.msk [vmem:[%s5459_s8 + $0x78] sm:$0xff] %vm2925_vm1, %v2876_v30  ;;  %v1612_v34 = vadd.f32 %v4408_v47, %v4538_v60  ;;  %v2407_v40 = vmul.f32 %v4559_v1, %v2406_v11  ;;  %vm4631_vm5 = vcmp.lt.f32.partialorder %v2408_v48, 0.0004427343  ;;  %v2456_v6 = vadd.f32 1.0, %v4619_v39 }
 0x2ff   :  { %v4607_v22 = vpop.f32.mrb[124].mxu1  ;;  %v4637_v36 = vadd.f32 %v4175_v54, %v1838_v5  ;;  %v3386_v35 = vpop.eup %3385  ;;  %v2401_v27 = vsel %vm2400_vm4, %v2398_v63, %v2395_v10  ;;  %v2451_v4 = vadd.f32 1.0, %v2450_v42  ;;  %v1689_v16 = vmax.f32 %v1609_v55, 0.0 }
 0x300   :  { %v4617_v0 = vpop.f32.mrb[125].mxu1  ;;  %v2115_v60 = vmin.f32 %v4615_v49, 20.0  ;;  %v4642_v3 = vpop.eup %3387  ;;  %v2873_v1 = vsel %vm2041_vm2, %v4442_v2, %v2401_v27  ;;  %v2404_v43 = vmul.f32 0.6931472, %v3386_v35  ;;  %vm4647_vm6 = vcmp.lt.f32.partialorder %v2453_v20, 0.0004427343 }
 0x301   :  { %v4628_v23 = vpop.f32.mrb[126].mxu1  ;;  %3393 = vlog2.f32 %v2456_v6  ;;  %2938 = vst.msk [vmem:[%s5459_s8 + $0x60] sm:$0xff] %vm2925_vm1, %v2873_v1  ;;  %v2429_v17 = vadd.f32 1.0, %v4642_v3  ;;  %v1601_v56 = vadd.f32 %v4408_v47, %v4533_v8  ;;  %v1690_v41 = vmax.f32 %v1612_v34, 0.0  ;;  %v1832_v28 = vpop.xlane.xlu1 %1831 }
 0x302   :  { %v4639_v33 = vpop.f32.mrb[127].mxu1  ;;  %v1604_v2 = vadd.f32 %v4408_v47, %v4552_v61  ;;  %v2410_v21 = vsel %vm4631_vm5, %v2407_v40, %v2404_v43  ;;  %v2459_v50 = vmul.f32 -0.5, %v4619_v39  ;;  %v2201_v24 = vmul.f32 1.442695, %v2115_v60 }
 0x303   :  { %v2116_v26 = vmin.f32 %v4637_v36, 20.0  ;;  %v2874_v57 = vsel %vm2042_vm3, %v4465_v31, %v2410_v21  ;;  %v2452_v8 = vmul.f32 %v4579_v7, %v2451_v4  ;;  %3395 = vlog2.f32 %v2429_v17 }
 0x304   :  { %v2432_v45 = vmul.f32 -0.5, %v4642_v3  ;;  %2939 = vst.msk [vmem:[%s5459_s8 + $0x68] sm:$0xff] %vm2925_vm1, %v2874_v57  ;;  %3397 = vpow2.f32 %v2201_v24  ;;  %v1761_v19 = vmul.f32 %v4438_v15, %v1689_v16  ;;  %v4675_v53 = vadd.f32 %v4175_v54, %v1829_v44  ;;  %v1847_v35 = vpop.xlane.xlu0 %1846 }
 0x305   :  { %v3390_v61 = vpop.eup %3389  ;;  %v2203_v25 = vmul.f32 1.442695, %v2116_v26  ;;  %v1687_v7 = vmax.f32 %v1601_v56, 0.0  ;;  %v1762_v46 = vmul.f32 %v4438_v15, %v1690_v41  ;;  %v4681_v62 = vadd.f32 %v4175_v54, %v1832_v28  ;;  %v4710_v41 = vld [vmem:[#allocation4] ss:$0 sm:$0xff] }
 0x306   :  { %v4677_v9 = vpop.eup %3391  ;;  %v2449_v31 = vmul.f32 0.6931472, %v3390_v61  ;;  %v2460_v13 = vadd.f32 1.0, %v2459_v50  ;;  %v1688_v29 = vmax.f32 %v1604_v2, 0.0  ;;  %vm2047_vm7 = vcmp.gt.f32.partialorder %v4490_v37, 20.0  ;;  %v1850_v43 = vpop.xlane.xlu1 %1849 }
 0x307   :  { %v2438_v52 = vadd.f32 1.0, %v4677_v9  ;;  %3399 = vpow2.f32 %v2203_v25  ;;  %v1941_v11 = vsel %vm1245_vm0, %v1761_v19, 0.0  ;;  %v2113_v48 = vmin.f32 %v4675_v53, 20.0 }
 0x308   :  { %v2455_v59 = vsel %vm4647_vm6, %v2452_v8, %v2449_v31  ;;  %v2462_v42 = vand.u32 2147483647, %v4619_v39  ;;  %v2433_v54 = vadd.f32 1.0, %v2432_v45  ;;  %1942 = vadd.xlane.f32.xlu0 %v1941_v11  ;;  %v2435_v55 = vand.u32 2147483647, %v4642_v3 }
 0x309   :  { %v2879_v38 = vsel %vm2047_vm7, %v4490_v37, %v2455_v59  ;;  %3401 = vlog2.f32 %v2438_v52  ;;  %v2197_v5 = vmul.f32 1.442695, %v2113_v48  ;;  %v1944_v32 = vsel %vm1245_vm0, %v1762_v46, 0.0 }
 0x30a   :  { %2944 = vst.msk [vmem:[%s5459_s8 + $0x90] sm:$0xff] %vm2925_vm1, %v2879_v38  ;;  %v2114_v30 = vmin.f32 %v4681_v62, 20.0  ;;  %v2461_v37 = vmul.f32 %v4619_v39, %v2460_v13  ;;  %v2441_v10 = vmul.f32 -0.5, %v4677_v9  ;;  %1945 = vadd.xlane.f32.xlu1 %v1944_v32  ;;  %v1759_v63 = vmul.f32 %v4438_v15, %v1687_v7 }
 0x30b   :  { %v3394_v20 = vpop.eup %3393  ;;  %v1760_v34 = vmul.f32 %v4438_v15, %v1688_v29  ;;  %3403 = vpow2.f32 %v2197_v5  ;;  %v1617_v6 = vadd.f32 %v4408_v47, %v4617_v0  ;;  %vm2048_vm8 = vcmp.gt.f32.partialorder %v4521_v14, 20.0  ;;  %v1844_v5 = vpop.xlane.xlu1 %1843 }
 0x30c   :  { %v2458_v40 = vmul.f32 0.6931472, %v3394_v20  ;;  %v2199_v12 = vmul.f32 1.442695, %v2114_v30  ;;  %vm2463_vm9 = vcmp.lt.f32.partialorder %v2462_v42, 0.0004427343  ;;  %v2434_v27 = vmul.f32 %v4642_v3, %v2433_v54 }
 0x30d   :  { %v1935_v39 = vsel %vm1245_vm0, %v1759_v63, 0.0  ;;  %v3396_v4 = vpop.eup %3395  ;;  %v2444_v60 = vand.u32 2147483647, %v4677_v9  ;;  %v1938_v1 = vsel %vm1245_vm0, %v1760_v34, 0.0  ;;  %v2442_v56 = vadd.f32 1.0, %v2441_v10 }
 0x30e   :  { %v2464_v16 = vsel %vm2463_vm9, %v2461_v37, %v2458_v40  ;;  %3405 = vpow2.f32 %v2199_v12  ;;  %1936 = vadd.xlane.f32.xlu0 %v1935_v39  ;;  %v3398_v51 = vpop.eup %3397  ;;  %v2431_v17 = vmul.f32 0.6931472, %v3396_v4  ;;  %1939 = vadd.xlane.f32.xlu1 %v1938_v1  ;;  %v4713_v3 = vadd.f32 %v4710_v41, %v1847_v35 }
 0x30f   :  { %v2880_v0 = vsel %vm2048_vm8, %v4521_v14, %v2464_v16  ;;  %vm2045_vm10 = vcmp.gt.f32.partialorder %v4550_v58, 20.0  ;;  %vm2436_vm11 = vcmp.lt.f32.partialorder %v2435_v55, 0.0004427343  ;;  %v2483_v2 = vadd.f32 1.0, %v3398_v51 }
 0x310   :  { %2945 = vst.msk [vmem:[%s5459_s8 + $0x98] sm:$0xff] %vm2925_vm1, %v2880_v0  ;;  %v1691_v44 = vmax.f32 %v1617_v6, 0.0  ;;  %v2437_v14 = vsel %vm2436_vm11, %v2434_v27, %v2431_v17  ;;  %v1620_v50 = vadd.f32 %v4408_v47, %v4639_v33  ;;  %v2119_v24 = vmin.f32 %v4713_v3, 20.0 }
 0x311   :  { %v4720_v21 = vpop.eup %3399  ;;  %v4726_v26 = vadd.f32 %v4710_v41, %v1850_v43  ;;  %v2877_v28 = vsel %vm2045_vm10, %v4550_v58, %v2437_v14  ;;  %vm2046_vm12 = vcmp.gt.f32.partialorder %v4568_v18, 20.0  ;;  %vm4730_vm13 = vcmp.lt.f32.partialorder %v2444_v60, 0.0004427343  ;;  %v1841_v58 = vpop.xlane.xlu0 %1840 }
 0x312   :  { %3407 = vlog2.f32 %v2483_v2  ;;  %2942 = vst.msk [vmem:[%s5459_s8 + $0x80] sm:$0xff] %vm2925_vm1, %v2877_v28  ;;  %v2443_v33 = vmul.f32 %v4677_v9, %v2442_v56  ;;  %v2486_v45 = vmul.f32 -0.5, %v3398_v51  ;;  %v2492_v61 = vadd.f32 1.0, %v4720_v21 }
 0x313   :  { %v3402_v8 = vpop.eup %3401  ;;  %v2209_v25 = vmul.f32 1.442695, %v2119_v24  ;;  %v1625_v31 = vadd.f32 %v4408_v47, %v4607_v22  ;;  %v1628_v7 = vadd.f32 %v4408_v47, %v4628_v23  ;;  %v2120_v46 = vmin.f32 %v4726_v26, 20.0 }
 0x314   :  { %v2440_v19 = vmul.f32 0.6931472, %v3402_v8  ;;  %v2489_v13 = vand.u32 2147483647, %v3398_v51  ;;  %3409 = vlog2.f32 %v2492_v61  ;;  %v1692_v52 = vmax.f32 %v1620_v50, 0.0 }
 0x315   :  { %v1763_v29 = vmul.f32 %v4438_v15, %v1691_v44  ;;  %v4746_v9 = vpop.eup %3403  ;;  %3411 = vpow2.f32 %v2209_v25  ;;  %v2211_v11 = vmul.f32 1.442695, %v2120_v46  ;;  %v4751_v48 = vadd.f32 %v4710_v41, %v1841_v58  ;;  %v1859_v63 = vpop.xlane.xlu0 %1858 }
 0x316   :  { %v2446_v59 = vsel %vm4730_vm13, %v2443_v33, %v2440_v19  ;;  %v2487_v22 = vadd.f32 1.0, %v2486_v45  ;;  %v2495_v23 = vmul.f32 -0.5, %v4720_v21  ;;  %v2465_v38 = vadd.f32 1.0, %v4746_v9  ;;  %v1862_v16 = vpop.xlane.xlu1 %1861 }
 0x317   :  { %v2878_v47 = vsel %vm2046_vm12, %v4568_v18, %v2446_v59  ;;  %v1693_v54 = vmax.f32 %v1625_v31, 0.0  ;;  %3413 = vpow2.f32 %v2211_v11  ;;  %v1947_v55 = vsel %vm1245_vm0, %v1763_v29, 0.0 }
 0x318   :  { %v4758_v42 = vpop.eup %3405  ;;  %2943 = vst.msk [vmem:[%s5459_s8 + $0x88] sm:$0xff] %vm2925_vm1, %v2878_v47  ;;  %vm2051_vm14 = vcmp.gt.f32.partialorder %v4615_v49, 20.0  ;;  %v2498_v18 = vand.u32 2147483647, %v4720_v21  ;;  %3415 = vlog2.f32 %v2465_v38  ;;  %1948 = vadd.xlane.f32.xlu0 %v1947_v55  ;;  %vm4768_vm15 = vcmp.lt.f32.partialorder %v2489_v13, 0.0004427343 }
 0x319   :  { %v2474_v32 = vadd.f32 1.0, %v4758_v42  ;;  %vm2052_vm2 = vcmp.gt.f32.partialorder %v4637_v36, 20.0  ;;  %v1694_v20 = vmax.f32 %v1628_v7, 0.0  ;;  %v2117_v37 = vmin.f32 %v4751_v48, 20.0  ;;  %v1853_v45 = vpop.xlane.xlu0 %1852 }
 0x31a   :  { %v1764_v10 = vmul.f32 %v4438_v15, %v1692_v52  ;;  %v2488_v34 = vmul.f32 %v3398_v51, %v2487_v22  ;;  %v2496_v40 = vadd.f32 1.0, %v2495_v23  ;;  %v4776_v12 = vadd.f32 %v4710_v41, %v1844_v5  ;;  %v1856_v47 = vpop.xlane.xlu1 %1855 }
 0x31b   :  { %3417 = vlog2.f32 %v2474_v32  ;;  %v2468_v35 = vmul.f32 -0.5, %v4746_v9  ;;  %v2205_v27 = vmul.f32 1.442695, %v2117_v37  ;;  %v1765_v4 = vmul.f32 %v4438_v15, %v1693_v54 }
 0x31c   :  { %v3408_v6 = vpop.eup %3407  ;;  %v1950_v39 = vsel %vm1245_vm0, %v1764_v10, 0.0  ;;  %vm4781_vm3 = vcmp.lt.f32.partialorder %v2498_v18, 0.0004427343  ;;  %v2477_v43 = vmul.f32 -0.5, %v4758_v42  ;;  %v2118_v51 = vmin.f32 %v4776_v12, 20.0 }
 0x31d   :  { %v2485_v60 = vmul.f32 0.6931472, %v3408_v6  ;;  %1951 = vadd.xlane.f32.xlu1 %v1950_v39  ;;  %3419 = vpow2.f32 %v2205_v27  ;;  %v1953_v0 = vsel %vm1245_vm0, %v1765_v4, 0.0  ;;  %v1766_v17 = vmul.f32 %v4438_v15, %v1694_v20 }
 0x31e   :  { %v4790_v56 = vadd.f32 %v4710_v41, %v1859_v63  ;;  %v3410_v2 = vpop.eup %3409  ;;  %v2497_v14 = vmul.f32 %v4720_v21, %v2496_v40  ;;  %v2207_v50 = vmul.f32 1.442695, %v2118_v51  ;;  %1954 = vadd.xlane.f32.xlu0 %v1953_v0  ;;  %v4796_v24 = vadd.f32 %v4710_v41, %v1862_v16 }
 0x31f   :  { %v2491_v44 = vsel %vm4768_vm15, %v2488_v34, %v2485_v60  ;;  %v4798_v28 = vpop.eup %3411  ;;  %v2494_v57 = vmul.f32 0.6931472, %v3410_v2  ;;  %v2469_v8 = vadd.f32 1.0, %v2468_v35  ;;  %v1956_v33 = vsel %vm1245_vm0, %v1766_v17, 0.0 }
 0x320   :  { %v2883_v15 = vsel %vm2051_vm14, %v4615_v49, %v2491_v44  ;;  %v2471_v21 = vand.u32 2147483647, %v4746_v9  ;;  %v2478_v61 = vadd.f32 1.0, %v2477_v43  ;;  %v2519_v25 = vadd.f32 1.0, %v4798_v28 }
 0x321   :  { %2948 = vst.msk [vmem:[%s5459_s8 + $0xb0] sm:$0xff] %vm2925_vm1, %v2883_v15  ;;  %3421 = vpow2.f32 %v2207_v50  ;;  %1957 = vadd.xlane.f32.xlu1 %v1956_v33  ;;  %v4810_v58 = vpop.eup %3413  ;;  %v2500_v49 = vsel %vm4781_vm3, %v2497_v14, %v2494_v57  ;;  %vm2049_vm0 = vcmp.gt.f32.partialorder %v4675_v53, 20.0  ;;  %v2123_v19 = vmin.f32 %v4790_v56, 20.0 }
 0x322   :  { %v2124_v31 = vmin.f32 %v4796_v24, 20.0  ;;  %v3416_v7 = vpop.eup %3415  ;;  %v2884_v46 = vsel %vm2052_vm2, %v4637_v36, %v2500_v49  ;;  %v2480_v13 = vand.u32 2147483647, %v4758_v42  ;;  %3423 = vlog2.f32 %v2519_v25 }
 0x323   :  { %v4822_v52 = vadd.f32 %v4710_v41, %v1853_v45  ;;  %2949 = vst.msk [vmem:[%s5459_s8 + $0xb8] sm:$0xff] %vm2925_vm1, %v2884_v46  ;;  %v2467_v29 = vmul.f32 0.6931472, %v3416_v7  ;;  %v2470_v59 = vmul.f32 %v4746_v9, %v2469_v8  ;;  %vm2050_vm4 = vcmp.gt.f32.partialorder %v4681_v62, 20.0 }
 0x324   :  { %v2528_v11 = vadd.f32 1.0, %v4810_v58  ;;  %vm2472_vm5 = vcmp.lt.f32.partialorder %v2471_v21, 0.0004427343  ;;  %v2479_v22 = vmul.f32 %v4758_v42, %v2478_v61  ;;  %v2217_v23 = vmul.f32 1.442695, %v2123_v19  ;;  %v1871_v32 = vpop.xlane.xlu0 %1870 }
 0x325   :  { %v3418_v36 = vpop.eup %3417  ;;  %v2219_v38 = vmul.f32 1.442695, %v2124_v31  ;;  %v2473_v54 = vsel %vm2472_vm5, %v2470_v59, %v2467_v29  ;;  %v2522_v5 = vmul.f32 -0.5, %v4798_v28  ;;  %vm2481_vm6 = vcmp.lt.f32.partialorder %v2480_v13, 0.0004427343 }
 0x326   :  { %v2476_v55 = vmul.f32 0.6931472, %v3418_v36  ;;  %3425 = vlog2.f32 %v2528_v11  ;;  %v2881_v9 = vsel %vm2049_vm0, %v4675_v53, %v2473_v54  ;;  %v2121_v18 = vmin.f32 %v4822_v52, 20.0  ;;  %v1874_v53 = vpop.xlane.xlu1 %1873 }
 0x327   :  { %3427 = vpow2.f32 %v2217_v23  ;;  %v4837_v30 = vpop.eup %3419  ;;  %2946 = vst.msk [vmem:[%s5459_s8 + $0xa0] sm:$0xff] %vm2925_vm1, %v2881_v9  ;;  %v2531_v20 = vmul.f32 -0.5, %v4810_v58  ;;  %v4845_v37 = vadd.f32 %v4710_v41, %v1856_v47  ;;  %v2523_v34 = vadd.f32 1.0, %v2522_v5 }
 0x328   :  { %v2482_v42 = vsel %vm2481_vm6, %v2479_v22, %v2476_v55  ;;  %3429 = vpow2.f32 %v2219_v38  ;;  %v2501_v63 = vadd.f32 1.0, %v4837_v30  ;;  %v2213_v40 = vmul.f32 1.442695, %v2121_v18  ;;  %v1865_v44 = vpop.xlane.xlu0 %1864 }
 0x329   :  { %v2882_v10 = vsel %vm2050_vm4, %v4681_v62, %v2482_v42  ;;  %v2122_v6 = vmin.f32 %v4845_v37, 20.0  ;;  %v4857_v35 = vadd.f32 %v4710_v41, %v1871_v32  ;;  %v2525_v39 = vand.u32 2147483647, %v4798_v28 }
 0x32a   :  { %2947 = vst.msk [vmem:[%s5459_s8 + $0xa8] sm:$0xff] %vm2925_vm1, %v2882_v10  ;;  %3431 = vlog2.f32 %v2501_v63  ;;  %v4863_v62 = vadd.f32 %v4710_v41, %v1874_v53  ;;  %v2532_v4 = vadd.f32 1.0, %v2531_v20  ;;  %vm2055_vm7 = vcmp.gt.f32.partialorder %v4713_v3, 20.0  ;;  %v1868_v25 = vpop.xlane.xlu1 %1867 }
 0x32b   :  { %v4859_v27 = vpop.eup %3421  ;;  %3433 = vpow2.f32 %v2213_v40  ;;  %v2534_v1 = vand.u32 2147483647, %v4810_v58  ;;  %v2215_v43 = vmul.f32 1.442695, %v2122_v6  ;;  %v2127_v51 = vmin.f32 %v4857_v35, 20.0 }
 0x32c   :  { %v2510_v16 = vadd.f32 1.0, %v4859_v27  ;;  %v3424_v60 = vpop.eup %3423  ;;  %v2524_v17 = vmul.f32 %v4798_v28, %v2523_v34  ;;  %v2504_v2 = vmul.f32 -0.5, %v4837_v30  ;;  %vm2526_vm8 = vcmp.lt.f32.partialorder %v2525_v39, 0.0004427343 }
 0x32d   :  { %v2521_v0 = vmul.f32 0.6931472, %v3424_v60  ;;  %v2225_v14 = vmul.f32 1.442695, %v2127_v51  ;;  %v2128_v50 = vmin.f32 %v4863_v62, 20.0  ;;  %vm2056_vm9 = vcmp.gt.f32.partialorder %v4726_v26, 20.0 }
 0x32e   :  { %3435 = vlog2.f32 %v2510_v16  ;;  %v2533_v8 = vmul.f32 %v4810_v58, %v2532_v4  ;;  %v2513_v33 = vmul.f32 -0.5, %v4859_v27  ;;  %v4881_v61 = vadd.f32 %v4710_v41, %v1865_v44 }
 0x32f   :  { %3437 = vpow2.f32 %v2215_v43  ;;  %v2527_v57 = vsel %vm2526_vm8, %v2524_v17, %v2521_v0  ;;  %vm2535_vm10 = vcmp.lt.f32.partialorder %v2534_v1, 0.0004427343  ;;  %v2505_v58 = vadd.f32 1.0, %v2504_v2 }
 0x330   :  { %v3426_v15 = vpop.eup %3425  ;;  %v2887_v28 = vsel %vm2055_vm7, %v4713_v3, %v2527_v57  ;;  %3439 = vpow2.f32 %v2225_v14  ;;  %v2227_v31 = vmul.f32 1.442695, %v2128_v50  ;;  %v2507_v3 = vand.u32 2147483647, %v4837_v30 }
 0x331   :  { %v4875_v45 = vpop.eup %3427  ;;  %v2530_v21 = vmul.f32 0.6931472, %v3426_v15  ;;  %2952 = vst.msk [vmem:[%s5459_s8 + $0xd0] sm:$0xff] %vm2925_vm1, %v2887_v28  ;;  %v2516_v46 = vand.u32 2147483647, %v4859_v27  ;;  %v2514_v59 = vadd.f32 1.0, %v2513_v33  ;;  %v4897_v11 = vadd.f32 %v4710_v41, %v1868_v25 }
 0x332   :  { %v4883_v49 = vpop.eup %3429  ;;  %v2555_v19 = vadd.f32 1.0, %v4875_v45  ;;  %vm2053_vm11 = vcmp.gt.f32.partialorder %v4751_v48, 20.0  ;;  %vm2054_vm12 = vcmp.gt.f32.partialorder %v4776_v12, 20.0  ;;  %v2125_v36 = vmin.f32 %v4881_v61, 20.0 }
 0x333   :  { %v2536_v7 = vsel %vm2535_vm10, %v2533_v8, %v2530_v21  ;;  %v2564_v13 = vadd.f32 1.0, %v4883_v49  ;;  %v2506_v23 = vmul.f32 %v4837_v30, %v2505_v58  ;;  %v2558_v38 = vmul.f32 -0.5, %v4875_v45 }
 0x334   :  { %v2888_v29 = vsel %vm2056_vm9, %v4726_v26, %v2536_v7  ;;  %3441 = vlog2.f32 %v2555_v19  ;;  %v3432_v47 = vpop.eup %3431  ;;  %vm2508_vm13 = vcmp.lt.f32.partialorder %v2507_v3, 0.0004427343  ;;  %vm4910_vm14 = vcmp.lt.f32.partialorder %v2516_v46, 0.0004427343  ;;  %v1883_v9 = vpop.xlane.xlu0 %1882 }
 0x335   :  { %2953 = vst.msk [vmem:[%s5459_s8 + $0xd8] sm:$0xff] %vm2925_vm1, %v2888_v29  ;;  %3443 = vlog2.f32 %v2564_v13  ;;  %v4906_v22 = vpop.eup %3433  ;;  %v2503_v26 = vmul.f32 0.6931472, %v3432_v47  ;;  %v2567_v55 = vmul.f32 -0.5, %v4883_v49  ;;  %v2515_v42 = vmul.f32 %v4859_v27, %v2514_v59 }
 0x336   :  { %3445 = vpow2.f32 %v2227_v31  ;;  %v2537_v5 = vadd.f32 1.0, %v4906_v22  ;;  %v2221_v20 = vmul.f32 1.442695, %v2125_v36  ;;  %v2126_v30 = vmin.f32 %v4897_v11, 20.0  ;;  %v1886_v1 = vpop.xlane.xlu1 %1885 }
 0x337   :  { %v2509_v32 = vsel %vm2508_vm13, %v2506_v23, %v2503_v26  ;;  %v2561_v34 = vand.u32 2147483647, %v4875_v45  ;;  %v2559_v40 = vadd.f32 1.0, %v2558_v38  ;;  %v2570_v6 = vand.u32 2147483647, %v4883_v49 }
 0x338   :  { %v3436_v18 = vpop.eup %3435  ;;  %v2885_v10 = vsel %vm2053_vm11, %v4751_v48, %v2509_v32  ;;  %3447 = vlog2.f32 %v2537_v5  ;;  %v4931_v39 = vadd.f32 %v4710_v41, %v1883_v9  ;;  %v2568_v16 = vadd.f32 1.0, %v2567_v55  ;;  %v1877_v3 = vpop.xlane.xlu0 %1876 }
 0x339   :  { %v4918_v53 = vpop.eup %3437  ;;  %v2512_v63 = vmul.f32 0.6931472, %v3436_v18  ;;  %2950 = vst.msk [vmem:[%s5459_s8 + $0xc0] sm:$0xff] %vm2925_vm1, %v2885_v10  ;;  %3449 = vpow2.f32 %v2221_v20  ;;  %v2223_v60 = vmul.f32 1.442695, %v2126_v30  ;;  %vm2059_vm15 = vcmp.gt.f32.partialorder %v4790_v56, 20.0 }
 0x33a   :  { %v2546_v27 = vadd.f32 1.0, %v4918_v53  ;;  %v4933_v4 = vpop.eup %3439  ;;  %v2540_v51 = vmul.f32 -0.5, %v4906_v22  ;;  %vm4946_vm2 = vcmp.lt.f32.partialorder %v2561_v34, 0.0004427343  ;;  %vm2060_vm3 = vcmp.gt.f32.partialorder %v4796_v24, 20.0  ;;  %v1880_v5 = vpop.xlane.xlu1 %1879 }
 0x33b   :  { %v2518_v48 = vsel %vm4910_vm14, %v2515_v42, %v2512_v63  ;;  %v2591_v17 = vadd.f32 1.0, %v4933_v4  ;;  %v2560_v2 = vmul.f32 %v4875_v45, %v2559_v40  ;;  %vm4953_vm0 = vcmp.lt.f32.partialorder %v2570_v6, 0.0004427343 }
 0x33c   :  { %v2886_v43 = vsel %vm2054_vm12, %v4776_v12, %v2518_v48  ;;  %3451 = vlog2.f32 %v2546_v27  ;;  %vm2057_vm4 = vcmp.gt.f32.partialorder %v4822_v52, 20.0  ;;  %v2131_v14 = vmin.f32 %v4931_v39, 20.0 }
 0x33d   :  { %2951 = vst.msk [vmem:[%s5459_s8 + $0xc8] sm:$0xff] %vm2925_vm1, %v2886_v43  ;;  %3453 = vpow2.f32 %v2223_v60  ;;  %v4960_v50 = vadd.f32 %v4710_v41, %v1886_v1  ;;  %v2569_v8 = vmul.f32 %v4883_v49, %v2568_v16  ;;  %v2549_v33 = vmul.f32 -0.5, %v4918_v53 }
 0x33e   :  { %v3442_v12 = vpop.eup %3441  ;;  %3455 = vlog2.f32 %v2591_v17  ;;  %v2541_v21 = vadd.f32 1.0, %v2540_v51  ;;  %v2233_v25 = vmul.f32 1.442695, %v2131_v14  ;;  %v2543_v31 = vand.u32 2147483647, %v4906_v22 }
 0x33f   :  { %v3444_v15 = vpop.eup %3443  ;;  %v2557_v57 = vmul.f32 0.6931472, %v3442_v12  ;;  %v2132_v58 = vmin.f32 %v4960_v50, 20.0  ;;  %vm2058_vm5 = vcmp.gt.f32.partialorder %v4845_v37, 20.0  ;;  %v2552_v7 = vand.u32 2147483647, %v4918_v53 }
 0x340   :  { %v4964_v28 = vpop.eup %3445  ;;  %v2566_v45 = vmul.f32 0.6931472, %v3444_v15  ;;  %v2594_v29 = vmul.f32 -0.5, %v4933_v4  ;;  %3457 = vpow2.f32 %v2233_v25  ;;  %v2550_v36 = vadd.f32 1.0, %v2549_v33 }
 0x341   :  { %v2563_v19 = vsel %vm4946_vm2, %v2560_v2, %v2557_v57  ;;  %v2600_v49 = vadd.f32 1.0, %v4964_v28  ;;  %v2235_v26 = vmul.f32 1.442695, %v2132_v58  ;;  %v2542_v23 = vmul.f32 %v4906_v22, %v2541_v21 }
 0x342   :  { %v2891_v46 = vsel %vm2059_vm15, %v4790_v56, %v2563_v19  ;;  %v2572_v13 = vsel %vm4953_vm0, %v2569_v8, %v2566_v45  ;;  %v3448_v59 = vpop.eup %3447  ;;  %vm2063_vm6 = vcmp.gt.f32.partialorder %v4857_v35, 20.0  ;;  %v4993_v38 = vadd.f32 %v4710_v41, %v1877_v3 }
 0x343   :  { %2956 = vst.msk [vmem:[%s5459_s8 + $0xf0] sm:$0xff] %vm2925_vm1, %v2891_v46  ;;  %v2892_v47 = vsel %vm2060_vm3, %v4796_v24, %v2572_v13  ;;  %3459 = vlog2.f32 %v2600_v49  ;;  %v2539_v56 = vmul.f32 0.6931472, %v3448_v59  ;;  %v4995_v54 = vpop.eup %3449  ;;  %vm2544_vm7 = vcmp.lt.f32.partialorder %v2543_v31, 0.0004427343 }
 0x344   :  { %2957 = vst.msk [vmem:[%s5459_s8 + $0xf8] sm:$0xff] %vm2925_vm1, %v2892_v47  ;;  %vm4997_vm8 = vcmp.lt.f32.partialorder %v2552_v7, 0.0004427343  ;;  %v2603_v55 = vmul.f32 -0.5, %v4964_v28  ;;  %3461 = vpow2.f32 %v2235_v26  ;;  %v1895_v9 = vpop.xlane.xlu0 %1894  ;;  %v2595_v22 = vadd.f32 1.0, %v2594_v29 }
 0x345   :  { %v2545_v32 = vsel %vm2544_vm7, %v2542_v23, %v2539_v56  ;;  %v2597_v42 = vand.u32 2147483647, %v4933_v4  ;;  %v2573_v20 = vadd.f32 1.0, %v4995_v54  ;;  %v2551_v34 = vmul.f32 %v4918_v53, %v2550_v36 }
 0x346   :  { %v3452_v18 = vpop.eup %3451  ;;  %v2889_v10 = vsel %vm2057_vm4, %v4822_v52, %v2545_v32  ;;  %v2129_v40 = vmin.f32 %v4993_v38, 20.0  ;;  %v5017_v27 = vadd.f32 %v4710_v41, %v1880_v5  ;;  %v5020_v48 = vadd.f32 %v4710_v41, %v1895_v9 }
 0x347   :  { %v5004_v30 = vpop.eup %3453  ;;  %v2548_v63 = vmul.f32 0.6931472, %v3452_v18  ;;  %2954 = vst.msk [vmem:[%s5459_s8 + $0xe0] sm:$0xff] %vm2925_vm1, %v2889_v10  ;;  %3463 = vlog2.f32 %v2573_v20  ;;  %v2604_v16 = vadd.f32 1.0, %v2603_v55  ;;  %v2606_v60 = vand.u32 2147483647, %v4964_v28 }
 0x348   :  { %v2582_v6 = vadd.f32 1.0, %v5004_v30  ;;  %v3456_v52 = vpop.eup %3455  ;;  %v2229_v1 = vmul.f32 1.442695, %v2129_v40  ;;  %v2596_v0 = vmul.f32 %v4933_v4, %v2595_v22  ;;  %vm2598_vm9 = vcmp.lt.f32.partialorder %v2597_v42, 0.0004427343 }
 0x349   :  { %v2554_v53 = vsel %vm4997_vm8, %v2551_v34, %v2548_v63  ;;  %v2593_v51 = vmul.f32 0.6931472, %v3456_v52  ;;  %vm2064_vm10 = vcmp.gt.f32.partialorder %v4863_v62, 20.0  ;;  %v2576_v17 = vmul.f32 -0.5, %v4995_v54 }
 0x34a   :  { %v2890_v43 = vsel %vm2058_vm5, %v4845_v37, %v2554_v53  ;;  %3465 = vlog2.f32 %v2582_v6  ;;  %v5035_v12 = vpop.eup %3457  ;;  %v2585_v37 = vmul.f32 -0.5, %v5004_v30  ;;  %v2130_v44 = vmin.f32 %v5017_v27, 20.0  ;;  %v1889_v21 = vpop.xlane.xlu0 %1888 }
 0x34b   :  { %2955 = vst.msk [vmem:[%s5459_s8 + $0xe8] sm:$0xff] %vm2925_vm1, %v2890_v43  ;;  %3467 = vpow2.f32 %v2229_v1  ;;  %v2599_v2 = vsel %vm2598_vm9, %v2596_v0, %v2593_v51  ;;  %v2135_v4 = vmin.f32 %v5020_v48, 20.0  ;;  %v2605_v8 = vmul.f32 %v4964_v28, %v2604_v16 }
 0x34c   :  { %v1898_v14 = vpop.xlane.xlu1 %1897  ;;  %v2895_v57 = vsel %vm2063_vm6, %v4857_v35, %v2599_v2  ;;  %vm5044_vm11 = vcmp.lt.f32.partialorder %v2606_v60, 0.0004427343  ;;  %v2627_v45 = vadd.f32 1.0, %v5035_v12  ;;  %v2579_v58 = vand.u32 2147483647, %v4995_v54 }
 0x34d   :  { %v3460_v15 = vpop.eup %3459  ;;  %2960 = vst.msk [vmem:[%s5459_s8 + $0x110] sm:$0xff] %vm2925_vm1, %v2895_v57  ;;  %v2231_v19 = vmul.f32 1.442695, %v2130_v44  ;;  %v5055_v35 = vadd.f32 %v4710_v41, %v1898_v14  ;;  %v2577_v31 = vadd.f32 1.0, %v2576_v17  ;;  %v2588_v7 = vand.u32 2147483647, %v5004_v30 }
 0x34e   :  { %v2602_v25 = vmul.f32 0.6931472, %v3460_v15  ;;  %v5057_v28 = vpop.eup %3461  ;;  %3469 = vlog2.f32 %v2627_v45  ;;  %v2241_v49 = vmul.f32 1.442695, %v2135_v4  ;;  %v2586_v46 = vadd.f32 1.0, %v2585_v37 }
 0x34f   :  { %v2636_v13 = vadd.f32 1.0, %v5057_v28  ;;  %v5064_v29 = vadd.f32 %v4710_v41, %v1889_v21  ;;  %vm2061_vm12 = vcmp.gt.f32.partialorder %v4881_v61, 20.0  ;;  %3471 = vpow2.f32 %v2231_v19 }
 0x350   :  { %v2608_v3 = vsel %vm5044_vm11, %v2605_v8, %v2602_v25  ;;  %vm5074_vm13 = vcmp.lt.f32.partialorder %v2579_v58, 0.0004427343  ;;  %v2630_v26 = vmul.f32 -0.5, %v5035_v12  ;;  %v2136_v56 = vmin.f32 %v5055_v35, 20.0  ;;  %v1892_v23 = vpop.xlane.xlu1 %1891 }
 0x351   :  { %v2896_v59 = vsel %vm2064_vm10, %v4863_v62, %v2608_v3  ;;  %v3464_v47 = vpop.eup %3463  ;;  %3473 = vlog2.f32 %v2636_v13  ;;  %v2578_v24 = vmul.f32 %v4995_v54, %v2577_v31  ;;  %vm5081_vm14 = vcmp.lt.f32.partialorder %v2588_v7, 0.0004427343 }
 0x352   :  { %2961 = vst.msk [vmem:[%s5459_s8 + $0x118] sm:$0xff] %vm2925_vm1, %v2896_v59  ;;  %v2575_v62 = vmul.f32 0.6931472, %v3464_v47  ;;  %3475 = vpow2.f32 %v2241_v49  ;;  %v2587_v18 = vmul.f32 %v5004_v30, %v2586_v46  ;;  %v2639_v32 = vmul.f32 -0.5, %v5057_v28 }
 0x353   :  { %v2243_v22 = vmul.f32 1.442695, %v2136_v56  ;;  %v2133_v42 = vmin.f32 %v5064_v29, 20.0  ;;  %v5093_v63 = vadd.f32 %v4710_v41, %v1892_v23  ;;  %v2631_v40 = vadd.f32 1.0, %v2630_v26 }
 0x354   :  { %v1907_v5 = vpop.xlane.xlu0 %1906  ;;  %v3466_v9 = vpop.eup %3465  ;;  %v2581_v10 = vsel %vm5074_vm13, %v2578_v24, %v2575_v62  ;;  %v2633_v6 = vand.u32 2147483647, %v5035_v12  ;;  %vm2062_vm15 = vcmp.gt.f32.partialorder %v4897_v11, 20.0  ;;  %v2640_v1 = vadd.f32 1.0, %v2639_v32 }
 0x355   :  { %v5088_v20 = vpop.eup %3467  ;;  %v2584_v54 = vmul.f32 0.6931472, %v3466_v9  ;;  %v5096_v34 = vadd.f32 %v4710_v41, %v1907_v5  ;;  %v2893_v30 = vsel %vm2061_vm12, %v4881_v61, %v2581_v10  ;;  %3477 = vpow2.f32 %v2243_v22 }
 0x356   :  { %v2609_v52 = vadd.f32 1.0, %v5088_v20  ;;  %2958 = vst.msk [vmem:[%s5459_s8 + $0x100] sm:$0xff] %vm2925_vm1, %v2893_v30  ;;  %v2237_v16 = vmul.f32 1.442695, %v2133_v42  ;;  %v2134_v43 = vmin.f32 %v5093_v63, 20.0  ;;  %v2632_v2 = vmul.f32 %v5035_v12, %v2631_v40 }
 0x357   :  { %v2590_v53 = vsel %vm5081_vm14, %v2587_v18, %v2584_v54  ;;  %v2139_v51 = vmin.f32 %v5096_v34, 20.0  ;;  %vm2634_vm2 = vcmp.lt.f32.partialorder %v2633_v6, 0.0004427343  ;;  %v2612_v44 = vmul.f32 -0.5, %v5088_v20 }
 0x358   :  { %v2894_v60 = vsel %vm2062_vm15, %v4897_v11, %v2590_v53  ;;  %3479 = vlog2.f32 %v2609_v52  ;;  %v3470_v61 = vpop.eup %3469  ;;  %v1910_v0 = vpop.xlane.xlu1 %1909  ;;  %v2642_v11 = vand.u32 2147483647, %v5057_v28  ;;  %v2239_v4 = vmul.f32 1.442695, %v2134_v43 }
 0x359   :  { %2959 = vst.msk [vmem:[%s5459_s8 + $0x108] sm:$0xff] %vm2925_vm1, %v2894_v60  ;;  %3481 = vpow2.f32 %v2237_v16  ;;  %v2629_v17 = vmul.f32 0.6931472, %v3470_v61  ;;  %v5119_v37 = vpop.eup %3471  ;;  %v2249_v14 = vmul.f32 1.442695, %v2139_v51  ;;  %vm2067_vm3 = vcmp.gt.f32.partialorder %v4931_v39, 20.0 }
 0x35a   :  { %v2618_v8 = vadd.f32 1.0, %v5119_v37  ;;  %v5125_v33 = vadd.f32 %v4710_v41, %v1910_v0  ;;  %v2641_v25 = vmul.f32 %v5057_v28, %v2640_v1  ;;  %3483 = vpow2.f32 %v2239_v4 }
 0x35b   :  { %v3474_v15 = vpop.eup %3473  ;;  %v2635_v57 = vsel %vm2634_vm2, %v2632_v2, %v2629_v17  ;;  %vm2643_vm0 = vcmp.lt.f32.partialorder %v2642_v11, 0.0004427343  ;;  %vm2068_vm4 = vcmp.gt.f32.partialorder %v4960_v50, 20.0  ;;  %v2613_v31 = vadd.f32 1.0, %v2612_v44 }
 0x35c   :  { %v5127_v45 = vpop.eup %3475  ;;  %v2899_v12 = vsel %vm2067_vm3, %v4931_v39, %v2635_v57  ;;  %v2638_v21 = vmul.f32 0.6931472, %v3474_v15  ;;  %3485 = vlog2.f32 %v2618_v8  ;;  %v2615_v7 = vand.u32 2147483647, %v5088_v20 }
 0x35d   :  { %2964 = vst.msk [vmem:[%s5459_s8 + $0x130] sm:$0xff] %vm2925_vm1, %v2899_v12  ;;  %v2663_v58 = vadd.f32 1.0, %v5127_v45  ;;  %3487 = vpow2.f32 %v2249_v14  ;;  %v2140_v28 = vmin.f32 %v5125_v33, 20.0  ;;  %v2621_v3 = vmul.f32 -0.5, %v5119_v37 }
 0x35e   :  { %v2644_v19 = vsel %vm2643_vm0, %v2641_v25, %v2638_v21  ;;  %v2614_v26 = vmul.f32 %v5088_v20, %v2613_v31  ;;  %v2666_v56 = vmul.f32 -0.5, %v5127_v45  ;;  %vm2065_vm5 = vcmp.gt.f32.partialorder %v4993_v38, 20.0 }
 0x35f   :  { %v2900_v39 = vsel %vm2068_vm4, %v4960_v50, %v2644_v19  ;;  %3489 = vlog2.f32 %v2663_v58  ;;  %v5140_v49 = vpop.eup %3477  ;;  %v2251_v47 = vmul.f32 1.442695, %v2140_v28  ;;  %vm2616_vm6 = vcmp.lt.f32.partialorder %v2615_v7, 0.0004427343 }
 0x360   :  { %2965 = vst.msk [vmem:[%s5459_s8 + $0x138] sm:$0xff] %vm2925_vm1, %v2900_v39  ;;  %v1901_v46 = vpop.xlane.xlu0 %1900  ;;  %v2672_v59 = vadd.f32 1.0, %v5140_v49  ;;  %v2622_v55 = vadd.f32 1.0, %v2621_v3  ;;  %v2624_v5 = vand.u32 2147483647, %v5119_v37  ;;  %v2667_v42 = vadd.f32 1.0, %v2666_v56 }
 0x361   :  { %v5153_v23 = vadd.f32 %v4710_v41, %v1901_v46  ;;  %v1904_v9 = vpop.xlane.xlu1 %1903  ;;  %v2669_v32 = vand.u32 2147483647, %v5127_v45  ;;  %v2675_v20 = vmul.f32 -0.5, %v5140_v49  ;;  %vm2066_vm7 = vcmp.gt.f32.partialorder %v5017_v27, 20.0 }
 0x362   :  { %v3480_v13 = vpop.eup %3479  ;;  %3491 = vlog2.f32 %v2672_v59  ;;  %v5172_v40 = vadd.f32 %v4710_v41, %v1904_v9  ;;  %v2623_v53 = vmul.f32 %v5119_v37, %v2622_v55  ;;  %vm2625_vm8 = vcmp.lt.f32.partialorder %v2624_v5, 0.0004427343 }
 0x363   :  { %v5148_v50 = vpop.eup %3481  ;;  %v2611_v36 = vmul.f32 0.6931472, %v3480_v13  ;;  %3493 = vpow2.f32 %v2251_v47  ;;  %v2137_v10 = vmin.f32 %v5153_v23, 20.0  ;;  %vm5177_vm9 = vcmp.lt.f32.partialorder %v2669_v32, 0.0004427343 }
 0x364   :  { %v2645_v62 = vadd.f32 1.0, %v5148_v50  ;;  %v5160_v22 = vpop.eup %3483  ;;  %v2678_v1 = vand.u32 2147483647, %v5140_v49  ;;  %v2668_v17 = vmul.f32 %v5127_v45, %v2667_v42  ;;  %v2676_v2 = vadd.f32 1.0, %v2675_v20 }
 0x365   :  { %v2617_v24 = vsel %vm2616_vm6, %v2614_v26, %v2611_v36  ;;  %v2654_v30 = vadd.f32 1.0, %v5160_v22  ;;  %v2245_v16 = vmul.f32 1.442695, %v2137_v10  ;;  %v2138_v44 = vmin.f32 %v5172_v40, 20.0 }
 0x366   :  { %v2897_v18 = vsel %vm2065_vm5, %v4993_v38, %v2617_v24  ;;  %3495 = vlog2.f32 %v2645_v62  ;;  %v3486_v54 = vpop.eup %3485  ;;  %v2648_v38 = vmul.f32 -0.5, %v5148_v50  ;;  %vm2071_vm10 = vcmp.gt.f32.partialorder %v5020_v48, 20.0 }
 0x367   :  { %2962 = vst.msk [vmem:[%s5459_s8 + $0x120] sm:$0xff] %vm2925_vm1, %v2897_v18  ;;  %v5174_v6 = vpop.eup %3487  ;;  %v2620_v52 = vmul.f32 0.6931472, %v3486_v54  ;;  %3497 = vlog2.f32 %v2654_v30  ;;  %v2657_v14 = vmul.f32 -0.5, %v5160_v22  ;;  %v2651_v57 = vand.u32 2147483647, %v5148_v50 }
 0x368   :  { %v2699_v43 = vadd.f32 1.0, %v5174_v6  ;;  %v2649_v37 = vadd.f32 1.0, %v2648_v38  ;;  %v2247_v8 = vmul.f32 1.442695, %v2138_v44  ;;  %vm2072_vm11 = vcmp.gt.f32.partialorder %v5055_v35, 20.0 }
 0x369   :  { %v3490_v60 = vpop.eup %3489  ;;  %v2626_v51 = vsel %vm2625_vm8, %v2623_v53, %v2620_v52  ;;  %v2677_v21 = vmul.f32 %v5140_v49, %v2676_v2  ;;  %v2702_v25 = vmul.f32 -0.5, %v5174_v6  ;;  %vm2679_vm12 = vcmp.lt.f32.partialorder %v2678_v1, 0.0004427343 }
 0x36a   :  { %v2665_v0 = vmul.f32 0.6931472, %v3490_v60  ;;  %v2898_v11 = vsel %vm2066_vm7, %v5017_v27, %v2626_v51  ;;  %3499 = vlog2.f32 %v2699_v43  ;;  %v2658_v28 = vadd.f32 1.0, %v2657_v14  ;;  %v5244_v60 = vld [vmem:[#allocation4] ss:$0 sm:$0xff] }
 0x36b   :  { %2963 = vst.msk [vmem:[%s5459_s8 + $0x128] sm:$0xff] %vm2925_vm1, %v2898_v11  ;;  %3501 = vpow2.f32 %v2245_v16  ;;  %vm2652_vm13 = vcmp.lt.f32.partialorder %v2651_v57, 0.0004427343  ;;  %v2660_v49 = vand.u32 2147483647, %v5160_v22  ;;  %vm2069_vm14 = vcmp.gt.f32.partialorder %v5064_v29, 20.0 }
 0x36c   :  { %v2671_v4 = vsel %vm5177_vm9, %v2668_v17, %v2665_v0  ;;  %v3492_v15 = vpop.eup %3491  ;;  %3503 = vpow2.f32 %v2247_v8  ;;  %v2703_v59 = vadd.f32 1.0, %v2702_v25  ;;  %v2659_v5 = vmul.f32 %v5160_v22, %v2658_v28 }
 0x36d   :  { %v2903_v27 = vsel %vm2071_vm10, %v5020_v48, %v2671_v4  ;;  %v5198_v45 = vpop.eup %3493  ;;  %v2674_v12 = vmul.f32 0.6931472, %v3492_v15  ;;  %v2650_v48 = vmul.f32 %v5148_v50, %v2649_v37  ;;  %vm2070_vm15 = vcmp.gt.f32.partialorder %v5093_v63, 20.0 }
 0x36e   :  { %2968 = vst.msk [vmem:[%s5459_s8 + $0x150] sm:$0xff] %vm2925_vm1, %v2903_v27  ;;  %v2708_v19 = vadd.f32 1.0, %v5198_v45  ;;  %v2711_v56 = vmul.f32 -0.5, %v5198_v45  ;;  %vm2661_vm2 = vcmp.lt.f32.partialorder %v2660_v49, 0.0004427343  ;;  %vm2075_vm3 = vcmp.gt.f32.partialorder %v5096_v34, 20.0 }
 0x36f   :  { %v1919_v31 = vpop.xlane.xlu0 %1918  ;;  %v2680_v39 = vsel %vm2679_vm12, %v2677_v21, %v2674_v12  ;;  %v2704_v54 = vmul.f32 %v5174_v6, %v2703_v59  ;;  %v2714_v1 = vand.u32 2147483647, %v5198_v45  ;;  %vm2076_vm5 = vcmp.gt.f32.partialorder %v5125_v33, 20.0 }
 0x370   :  { %v3496_v58 = vpop.eup %3495  ;;  %v5210_v3 = vadd.f32 %v4710_v41, %v1919_v31  ;;  %v2904_v46 = vsel %vm2072_vm11, %v5055_v35, %v2680_v39  ;;  %3505 = vlog2.f32 %v2708_v19  ;;  %v2705_v35 = vand.u32 2147483647, %v5174_v6 }
 0x371   :  { %v2647_v7 = vmul.f32 0.6931472, %v3496_v58  ;;  %2969 = vst.msk [vmem:[%s5459_s8 + $0x158] sm:$0xff] %vm2925_vm1, %v2904_v46  ;;  %v3498_v36 = vpop.eup %3497  ;;  %vm2715_vm4 = vcmp.lt.f32.partialorder %v2714_v1, 0.0004427343  ;;  %vm2073_vm7 = vcmp.gt.f32.partialorder %v5153_v23, 20.0 }
 0x372   :  { %v2143_v47 = vmin.f32 %v5210_v3, 20.0  ;;  %v1922_v50 = vpop.xlane.xlu1 %1921  ;;  %v2656_v55 = vmul.f32 0.6931472, %v3498_v36  ;;  %vm2706_vm0 = vcmp.lt.f32.partialorder %v2705_v35, 0.0004427343  ;;  %vm2074_vm8 = vcmp.gt.f32.partialorder %v5172_v40, 20.0 }
 0x373   :  { %v2653_v13 = vsel %vm2652_vm13, %v2650_v48, %v2647_v7  ;;  %v5224_v62 = vadd.f32 %v4710_v41, %v1922_v50  ;;  %vm2079_vm10 = vcmp.gt.f32.partialorder %v5210_v3, 20.0 }
 0x374   :  { %v2901_v26 = vsel %vm2069_vm14, %v5064_v29, %v2653_v13  ;;  %v2257_v9 = vmul.f32 1.442695, %v2143_v47  ;;  %v3500_v29 = vpop.eup %3499  ;;  %v2662_v20 = vsel %vm2661_vm2, %v2659_v5, %v2656_v55 }
 0x375   :  { %v1913_v24 = vpop.xlane.xlu0 %1912  ;;  %2966 = vst.msk [vmem:[%s5459_s8 + $0x140] sm:$0xff] %vm2925_vm1, %v2901_v26  ;;  %v2144_v32 = vmin.f32 %v5224_v62, 20.0  ;;  %v3502_v42 = vpop.eup %3501  ;;  %v2701_v10 = vmul.f32 0.6931472, %v3500_v29  ;;  %v2902_v22 = vsel %vm2070_vm15, %v5093_v63, %v2662_v20  ;;  %vm2080_vm13 = vcmp.gt.f32.partialorder %v5224_v62, 20.0 }
 0x376   :  { %v5232_v18 = vadd.f32 %v4710_v41, %v1913_v24  ;;  %3507 = vpow2.f32 %v2257_v9  ;;  %v1916_v38 = vpop.xlane.xlu1 %1915  ;;  %v2712_v41 = vadd.f32 1.0, %v2711_v56  ;;  %v2681_v30 = vadd.f32 1.0, %v3502_v42  ;;  %2967 = vst.msk [vmem:[%s5459_s8 + $0x148] sm:$0xff] %vm2925_vm1, %v2902_v22  ;;  %v3504_v61 = vpop.eup %3503 }
 0x377   :  { %v2707_v52 = vsel %vm2706_vm0, %v2704_v54, %v2701_v10  ;;  %v2259_v53 = vmul.f32 1.442695, %v2144_v32  ;;  %v5247_v6 = vadd.f32 %v5244_v60, %v1916_v38  ;;  %v2690_v43 = vadd.f32 1.0, %v3504_v61 }
 0x378   :  { %v2141_v16 = vmin.f32 %v5232_v18, 20.0  ;;  %v2907_v63 = vsel %vm2075_vm3, %v5096_v34, %v2707_v52  ;;  %3509 = vlog2.f32 %v2681_v30  ;;  %v2713_v11 = vmul.f32 %v5198_v45, %v2712_v41 }
 0x379   :  { %2972 = vst.msk [vmem:[%s5459_s8 + $0x170] sm:$0xff] %vm2925_vm1, %v2907_v63  ;;  %3511 = vpow2.f32 %v2259_v53  ;;  %v2142_v17 = vmin.f32 %v5247_v6, 20.0  ;;  %v2684_v37 = vmul.f32 -0.5, %v3502_v42  ;;  %v2693_v14 = vmul.f32 -0.5, %v3504_v61 }
 0x37a   :  { %v3506_v51 = vpop.eup %3505  ;;  %v2253_v0 = vmul.f32 1.442695, %v2141_v16  ;;  %3513 = vlog2.f32 %v2690_v43  ;;  %v2687_v45 = vand.u32 2147483647, %v3502_v42  ;;  %v2696_v7 = vand.u32 2147483647, %v3504_v61 }
 0x37b   :  { %v2710_v2 = vmul.f32 0.6931472, %v3506_v51  ;;  %v2255_v34 = vmul.f32 1.442695, %v2142_v17  ;;  %v2685_v57 = vadd.f32 1.0, %v2684_v37  ;;  %vm2077_vm15 = vcmp.gt.f32.partialorder %v5232_v18, 20.0 }
 0x37c   :  { %3515 = vpow2.f32 %v2253_v0  ;;  %vm2688_vm6 = vcmp.lt.f32.partialorder %v2687_v45, 0.0004427343  ;;  %vm2697_vm9 = vcmp.lt.f32.partialorder %v2696_v7, 0.0004427343  ;;  %vm2078_vm3 = vcmp.gt.f32.partialorder %v5247_v6, 20.0 }
 0x37d   :  { %v2716_v44 = vsel %vm2715_vm4, %v2713_v11, %v2710_v2  ;;  %3517 = vpow2.f32 %v2255_v34  ;;  %v2686_v39 = vmul.f32 %v3502_v42, %v2685_v57 }
 0x37e   :  { %v2908_v4 = vsel %vm2076_vm5, %v5125_v33, %v2716_v44  ;;  %v2694_v33 = vadd.f32 1.0, %v2693_v14 }
 0x37f   :  { %v1931_v15 = vpop.xlane.xlu0 %1930  ;;  %2973 = vst.msk [vmem:[%s5459_s8 + $0x178] sm:$0xff] %vm2925_vm1, %v2908_v4 }
 0x380   :  { %v3508_v27 = vpop.eup %3507  ;;  %v5266_v8 = vadd.f32 %v5244_v60, %v1931_v15  ;;  %v2695_v56 = vmul.f32 %v3504_v61, %v2694_v33 }
 0x381   :  { %v2735_v12 = vadd.f32 1.0, %v3508_v27  ;;  %v2738_v46 = vmul.f32 -0.5, %v3508_v27  ;;  %v2741_v10 = vand.u32 2147483647, %v3508_v27 }
 0x382   :  { %v2147_v21 = vmin.f32 %v5266_v8, 20.0  ;;  %v1934_v25 = vpop.xlane.xlu1 %1933  ;;  %v3510_v58 = vpop.eup %3509  ;;  %vm2083_vm0 = vcmp.gt.f32.partialorder %v5266_v8, 20.0 }
 0x383   :  { %3519 = vlog2.f32 %v2735_v12  ;;  %v5270_v48 = vadd.f32 %v5244_v60, %v1934_v25  ;;  %v5272_v19 = vpop.eup %3511  ;;  %v2683_v31 = vmul.f32 0.6931472, %v3510_v58  ;;  %v2739_v9 = vadd.f32 1.0, %v2738_v46 }
 0x384   :  { %v2265_v28 = vmul.f32 1.442695, %v2147_v21  ;;  %v2744_v49 = vadd.f32 1.0, %v5272_v19  ;;  %v3514_v13 = vpop.eup %3513  ;;  %v2747_v20 = vmul.f32 -0.5, %v5272_v19  ;;  %vm2742_vm11 = vcmp.lt.f32.partialorder %v2741_v10, 0.0004427343 }
 0x385   :  { %v2689_v59 = vsel %vm2688_vm6, %v2686_v39, %v2683_v31  ;;  %v2148_v47 = vmin.f32 %v5270_v48, 20.0  ;;  %v1925_v50 = vpop.xlane.xlu0 %1924  ;;  %v2692_v35 = vmul.f32 0.6931472, %v3514_v13  ;;  %v2740_v30 = vmul.f32 %v3508_v27, %v2739_v9 }
 0x386   :  { %3521 = vpow2.f32 %v2265_v28  ;;  %v3516_v36 = vpop.eup %3515  ;;  %v2905_v26 = vsel %vm2073_vm7, %v5153_v23, %v2689_v59  ;;  %v5286_v32 = vadd.f32 %v5244_v60, %v1925_v50  ;;  %v2748_v53 = vadd.f32 1.0, %v2747_v20 }
 0x387   :  { %3523 = vlog2.f32 %v2744_v49  ;;  %2970 = vst.msk [vmem:[%s5459_s8 + $0x160] sm:$0xff] %vm2925_vm1, %v2905_v26  ;;  %v2717_v24 = vadd.f32 1.0, %v3516_v36  ;;  %v5283_v55 = vpop.eup %3517  ;;  %v2698_v5 = vsel %vm2697_vm9, %v2695_v56, %v2692_v35  ;;  %v2267_v29 = vmul.f32 1.442695, %v2148_v47  ;;  %v1928_v23 = vpop.xlane.xlu1 %1927 }
 0x388   :  { %v2906_v42 = vsel %vm2074_vm8, %v5172_v40, %v2698_v5  ;;  %v2726_v54 = vadd.f32 1.0, %v5283_v55  ;;  %v2145_v38 = vmin.f32 %v5286_v32, 20.0  ;;  %v5297_v22 = vadd.f32 %v5244_v60, %v1928_v23 }
 0x389   :  { %3525 = vlog2.f32 %v2717_v24  ;;  %2971 = vst.msk [vmem:[%s5459_s8 + $0x168] sm:$0xff] %vm2925_vm1, %v2906_v42  ;;  %v2720_v40 = vmul.f32 -0.5, %v3516_v36  ;;  %v2750_v63 = vand.u32 2147483647, %v5272_v19  ;;  %v2729_v51 = vmul.f32 -0.5, %v5283_v55 }
 0x38a   :  { %3527 = vpow2.f32 %v2267_v29  ;;  %v2261_v16 = vmul.f32 1.442695, %v2145_v38  ;;  %v2146_v61 = vmin.f32 %v5297_v22, 20.0  ;;  %v2749_v44 = vmul.f32 %v5272_v19, %v2748_v53 }
 0x38b   :  { %3529 = vlog2.f32 %v2726_v54  ;;  %v2721_v11 = vadd.f32 1.0, %v2720_v40  ;;  %v2723_v4 = vand.u32 2147483647, %v3516_v36  ;;  %vm2751_vm12 = vcmp.lt.f32.partialorder %v2750_v63, 0.0004427343 }
 0x38c   :  { %3531 = vpow2.f32 %v2261_v16  ;;  %v2263_v0 = vmul.f32 1.442695, %v2146_v61  ;;  %v2732_v21 = vand.u32 2147483647, %v5283_v55  ;;  %vm2084_vm5 = vcmp.gt.f32.partialorder %v5270_v48, 20.0 }
 0x38d   :  { %v3520_v41 = vpop.eup %3519  ;;  %v2722_v12 = vmul.f32 %v3516_v36, %v2721_v11  ;;  %vm2724_vm14 = vcmp.lt.f32.partialorder %v2723_v4, 0.0004427343  ;;  %vm2081_vm7 = vcmp.gt.f32.partialorder %v5286_v32, 20.0 }
 0x38e   :  { %v2737_v52 = vmul.f32 0.6931472, %v3520_v41  ;;  %3533 = vpow2.f32 %v2263_v0  ;;  %vm2733_vm2 = vcmp.lt.f32.partialorder %v2732_v21, 0.0004427343 }
 0x390   :  { %v5302_v1 = vpop.eup %3521  ;;  %v2743_v43 = vsel %vm2742_vm11, %v2740_v30, %v2737_v52 }
 0x391   :  { %v3524_v17 = vpop.eup %3523  ;;  %v2911_v2 = vsel %vm2079_vm10, %v5210_v3, %v2743_v43  ;;  %v2771_v37 = vadd.f32 1.0, %v5302_v1  ;;  %v2730_v3 = vadd.f32 1.0, %v2729_v51  ;;  %v2774_v58 = vmul.f32 -0.5, %v5302_v1 }
 0x392   :  { %2976 = vst.msk [vmem:[%s5459_s8 + $0x190] sm:$0xff] %vm2925_vm1, %v2911_v2  ;;  %v2746_v34 = vmul.f32 0.6931472, %v3524_v17  ;;  %v2777_v26 = vand.u32 2147483647, %v5302_v1  ;;  %vm2082_vm10 = vcmp.gt.f32.partialorder %v5297_v22, 20.0 }
 0x393   :  { %3535 = vlog2.f32 %v2771_v37  ;;  %v3526_v14 = vpop.eup %3525  ;;  %v2731_v46 = vmul.f32 %v5283_v55, %v2730_v3 }
 0x394   :  { %v2752_v15 = vsel %vm2751_vm12, %v2749_v44, %v2746_v34  ;;  %v5313_v27 = vpop.eup %3527  ;;  %v2719_v45 = vmul.f32 0.6931472, %v3526_v14  ;;  %vm2778_vm4 = vcmp.lt.f32.partialorder %v2777_v26, 0.0004427343 }
 0x395   :  { %v2912_v57 = vsel %vm2080_vm13, %v5224_v62, %v2752_v15  ;;  %v1943_v25 = vpop.xlane.xlu0 %1942  ;;  %v2780_v33 = vadd.f32 1.0, %v5313_v27  ;;  %v3530_v31 = vpop.eup %3529  ;;  %v2783_v35 = vmul.f32 -0.5, %v5313_v27  ;;  %v2786_v41 = vand.u32 2147483647, %v5313_v27 }
 0x396   :  { %2977 = vst.msk [vmem:[%s5459_s8 + $0x198] sm:$0xff] %vm2925_vm1, %v2912_v57  ;;  %v5324_v19 = vadd.f32 %v5244_v60, %v1943_v25  ;;  %v2725_v62 = vsel %vm2724_vm14, %v2722_v12, %v2719_v45  ;;  %v2728_v28 = vmul.f32 0.6931472, %v3530_v31  ;;  %v3532_v59 = vpop.eup %3531 }
 0x397   :  { %v1946_v39 = vpop.xlane.xlu1 %1945  ;;  %v2909_v7 = vsel %vm2077_vm15, %v5232_v18, %v2725_v62  ;;  %3537 = vlog2.f32 %v2780_v33  ;;  %v2775_v18 = vadd.f32 1.0, %v2774_v58  ;;  %v2753_v56 = vadd.f32 1.0, %v3532_v59 }
 0x398   :  { %2974 = vst.msk [vmem:[%s5459_s8 + $0x180] sm:$0xff] %vm2925_vm1, %v2909_v7  ;;  %v2151_v49 = vmin.f32 %v5324_v19, 20.0  ;;  %v5335_v13 = vadd.f32 %v5244_v60, %v1946_v39  ;;  %v2734_v47 = vsel %vm2733_vm2, %v2731_v46, %v2728_v28  ;;  %v5341_v24 = vpop.eup %3533  ;;  %v2784_v10 = vadd.f32 1.0, %v2783_v35 }
 0x399   :  { %v2910_v36 = vsel %vm2078_vm3, %v5247_v6, %v2734_v47  ;;  %3539 = vlog2.f32 %v2753_v56  ;;  %v2762_v6 = vadd.f32 1.0, %v5341_v24  ;;  %v2776_v42 = vmul.f32 %v5302_v1, %v2775_v18 }
 0x39a   :  { %2975 = vst.msk [vmem:[%s5459_s8 + $0x188] sm:$0xff] %vm2925_vm1, %v2910_v36  ;;  %v2273_v55 = vmul.f32 1.442695, %v2151_v49  ;;  %v2152_v5 = vmin.f32 %v5335_v13, 20.0  ;;  %v2756_v30 = vmul.f32 -0.5, %v3532_v59  ;;  %v2765_v53 = vmul.f32 -0.5, %v5341_v24 }
 0x39b   :  { %v1937_v50 = vpop.xlane.xlu0 %1936  ;;  %v1940_v20 = vpop.xlane.xlu1 %1939  ;;  %v2785_v43 = vmul.f32 %v5313_v27, %v2784_v10  ;;  %vm2787_vm6 = vcmp.lt.f32.partialorder %v2786_v41, 0.0004427343  ;;  %v2759_v17 = vand.u32 2147483647, %v3532_v59  ;;  %v2768_v14 = vand.u32 2147483647, %v5341_v24 }
 0x39c   :  { %v5349_v9 = vadd.f32 %v5244_v60, %v1937_v50  ;;  %3541 = vpow2.f32 %v2273_v55  ;;  %v2275_v54 = vmul.f32 1.442695, %v2152_v5  ;;  %v5359_v16 = vadd.f32 %v5244_v60, %v1940_v20 }
 0x39d   :  { %v3536_v29 = vpop.eup %3535  ;;  %3543 = vlog2.f32 %v2762_v6  ;;  %v2766_v2 = vadd.f32 1.0, %v2765_v53  ;;  %vm2760_vm8 = vcmp.lt.f32.partialorder %v2759_v17, 0.0004427343  ;;  %vm2769_vm9 = vcmp.lt.f32.partialorder %v2768_v14, 0.0004427343 }
 0x39e   :  { %v2773_v23 = vmul.f32 0.6931472, %v3536_v29  ;;  %v2149_v40 = vmin.f32 %v5349_v9, 20.0  ;;  %3545 = vpow2.f32 %v2275_v54  ;;  %v2150_v51 = vmin.f32 %v5359_v16, 20.0 }
 0x39f   :  { %vm2087_vm11 = vcmp.gt.f32.partialorder %v5324_v19, 20.0  ;;  %vm2088_vm14 = vcmp.gt.f32.partialorder %v5335_v13, 20.0  ;;  %vm2085_vm2 = vcmp.gt.f32.partialorder %v5349_v9, 20.0 }
 0x3a0   :  { %v2779_v38 = vsel %vm2778_vm4, %v2776_v42, %v2773_v23  ;;  %v2269_v63 = vmul.f32 1.442695, %v2149_v40  ;;  %v2271_v11 = vmul.f32 1.442695, %v2150_v51 }
 0x3a1   :  { %v2915_v52 = vsel %vm2083_vm0, %v5266_v8, %v2779_v38  ;;  %v3538_v61 = vpop.eup %3537  ;;  %v2757_v8 = vadd.f32 1.0, %v2756_v30  ;;  %vm2086_vm0 = vcmp.gt.f32.partialorder %v5359_v16, 20.0 }
 0x3a2   :  { %2980 = vst.msk [vmem:[%s5459_s8 + $0x1b0] sm:$0xff] %vm2925_vm1, %v2915_v52  ;;  %v2782_v1 = vmul.f32 0.6931472, %v3538_v61  ;;  %3547 = vpow2.f32 %v2269_v63 }
 0x3a3   :  { %v3540_v4 = vpop.eup %3539  ;;  %3549 = vpow2.f32 %v2271_v11  ;;  %v2758_v27 = vmul.f32 %v3532_v59, %v2757_v8 }
 0x3a4   :  { %v2788_v0 = vsel %vm2787_vm6, %v2785_v43, %v2782_v1  ;;  %v2755_v3 = vmul.f32 0.6931472, %v3540_v4 }
 0x3a5   :  { %v1949_v37 = vpop.xlane.xlu0 %1948  ;;  %v2916_v34 = vsel %vm2084_vm5, %v5270_v48, %v2788_v0  ;;  %v2767_v48 = vmul.f32 %v5341_v24, %v2766_v2 }
 0x3a6   :  { %v5370_v44 = vadd.f32 %v5244_v60, %v1949_v37  ;;  %2981 = vst.msk [vmem:[%s5459_s8 + $0x1b8] sm:$0xff] %vm2925_vm1, %v2916_v34  ;;  %v3542_v15 = vpop.eup %3541  ;;  %v2761_v25 = vsel %vm2760_vm8, %v2758_v27, %v2755_v3 }
 0x3a7   :  { %v3544_v45 = vpop.eup %3543  ;;  %v2807_v12 = vadd.f32 1.0, %v3542_v15  ;;  %v2913_v39 = vsel %vm2081_vm7, %v5286_v32, %v2761_v25  ;;  %v2810_v32 = vmul.f32 -0.5, %v3542_v15  ;;  %v2813_v5 = vand.u32 2147483647, %v3542_v15 }
 0x3a8   :  { %v2153_v57 = vmin.f32 %v5370_v44, 20.0  ;;  %v2764_v58 = vmul.f32 0.6931472, %v3544_v45  ;;  %v3546_v62 = vpop.eup %3545  ;;  %2978 = vst.msk [vmem:[%s5459_s8 + $0x1a0] sm:$0xff] %vm2925_vm1, %v2913_v39  ;;  %vm2089_vm5 = vcmp.gt.f32.partialorder %v5370_v44, 20.0 }
 0x3a9   :  { %3551 = vlog2.f32 %v2807_v12  ;;  %v2816_v28 = vadd.f32 1.0, %v3546_v62  ;;  %v2819_v56 = vmul.f32 -0.5, %v3546_v62  ;;  %v2811_v24 = vadd.f32 1.0, %v2810_v32 }
 0x3aa   :  { %v1952_v21 = vpop.xlane.xlu1 %1951  ;;  %v2277_v33 = vmul.f32 1.442695, %v2153_v57  ;;  %v2770_v7 = vsel %vm2769_vm9, %v2767_v48, %v2764_v58  ;;  %v2822_v41 = vand.u32 2147483647, %v3546_v62  ;;  %vm2814_vm12 = vcmp.lt.f32.partialorder %v2813_v5, 0.0004427343 }
 0x3ab   :  { %v5381_v31 = vadd.f32 %v5244_v60, %v1952_v21  ;;  %v1955_v46 = vpop.xlane.xlu0 %1954  ;;  %v2914_v49 = vsel %vm2082_vm10, %v5297_v22, %v2770_v7  ;;  %v2820_v20 = vadd.f32 1.0, %v2819_v56 }
 0x3ac   :  { %3553 = vpow2.f32 %v2277_v33  ;;  %v3548_v47 = vpop.eup %3547  ;;  %2979 = vst.msk [vmem:[%s5459_s8 + $0x1a8] sm:$0xff] %vm2925_vm1, %v2914_v49  ;;  %v5396_v36 = vadd.f32 %v5244_v60, %v1955_v46  ;;  %vm2823_vm13 = vcmp.lt.f32.partialorder %v2822_v41, 0.0004427343 }
 0x3ad   :  { %3555 = vlog2.f32 %v2816_v28  ;;  %v2154_v18 = vmin.f32 %v5381_v31, 20.0  ;;  %v2789_v50 = vadd.f32 1.0, %v3548_v47  ;;  %v3550_v22 = vpop.eup %3549  ;;  %v2792_v23 = vmul.f32 -0.5, %v3548_v47 }
 0x3ae   :  { %v1958_v59 = vpop.xlane.xlu1 %1957  ;;  %v2798_v55 = vadd.f32 1.0, %v3550_v22  ;;  %v2155_v29 = vmin.f32 %v5396_v36, 20.0  ;;  %v2801_v40 = vmul.f32 -0.5, %v3550_v22  ;;  %v2795_v63 = vand.u32 2147483647, %v3548_v47 }
 0x3af   :  { %v2279_v26 = vmul.f32 1.442695, %v2154_v18  ;;  %v5399_v35 = vadd.f32 %v5244_v60, %v1958_v59  ;;  %3557 = vlog2.f32 %v2789_v50  ;;  %v2812_v60 = vmul.f32 %v3542_v15, %v2811_v24 }
 0x3b0   :  { %v2281_v10 = vmul.f32 1.442695, %v2155_v29  ;;  %v2793_v61 = vadd.f32 1.0, %v2792_v23  ;;  %v2821_v8 = vmul.f32 %v3546_v62, %v2820_v20  ;;  %v2802_v2 = vadd.f32 1.0, %v2801_v40 }
 0x3b1   :  { %3559 = vpow2.f32 %v2279_v26  ;;  %v2156_v6 = vmin.f32 %v5399_v35, 20.0  ;;  %v2804_v4 = vand.u32 2147483647, %v3550_v22  ;;  %vm2796_vm15 = vcmp.lt.f32.partialorder %v2795_v63, 0.0004427343 }
 0x3b2   :  { %3561 = vlog2.f32 %v2798_v55  ;;  %v2803_v48 = vmul.f32 %v3550_v22, %v2802_v2  ;;  %vm2090_vm7 = vcmp.gt.f32.partialorder %v5381_v31, 20.0  ;;  %vm2091_vm9 = vcmp.gt.f32.partialorder %v5396_v36, 20.0 }
 0x3b3   :  { %v3552_v42 = vpop.eup %3551  ;;  %v2283_v54 = vmul.f32 1.442695, %v2156_v6  ;;  %3563 = vpow2.f32 %v2281_v10  ;;  %vm2805_vm3 = vcmp.lt.f32.partialorder %v2804_v4, 0.0004427343 }
 0x3b4   :  { %v2809_v38 = vmul.f32 0.6931472, %v3552_v42 }
 0x3b5   :  { %3565 = vpow2.f32 %v2283_v54 }
 0x3b6   :  { %v3554_v30 = vpop.eup %3553  ;;  %v2815_v53 = vsel %vm2814_vm12, %v2812_v60, %v2809_v38 }
 0x3b7   :  { %v3556_v52 = vpop.eup %3555  ;;  %v2825_v1 = vadd.f32 1.0, %v3554_v30  ;;  %v2919_v43 = vsel %vm2087_vm11, %v5324_v19, %v2815_v53  ;;  %v2794_v19 = vmul.f32 %v3548_v47, %v2793_v61  ;;  %v2828_v14 = vmul.f32 -0.5, %v3554_v30 }
 0x3b8   :  { %v2818_v51 = vmul.f32 0.6931472, %v3556_v52  ;;  %2984 = vst.msk [vmem:[%s5459_s8 + $0x1d0] sm:$0xff] %vm2925_vm1, %v2919_v43  ;;  %v2831_v58 = vand.u32 2147483647, %v3554_v30  ;;  %vm2092_vm11 = vcmp.gt.f32.partialorder %v5399_v35, 20.0 }
 0x3b9   :  { %3567 = vlog2.f32 %v2825_v1  ;;  %v3558_v0 = vpop.eup %3557  ;;  %v2829_v21 = vadd.f32 1.0, %v2828_v14 }
 0x3ba   :  { %v2824_v17 = vsel %vm2823_vm13, %v2821_v8, %v2818_v51  ;;  %v2791_v34 = vmul.f32 0.6931472, %v3558_v0  ;;  %vm2832_vm4 = vcmp.lt.f32.partialorder %v2831_v58, 0.0004427343 }
 0x3bb   :  { %v3560_v11 = vpop.eup %3559  ;;  %v2920_v37 = vsel %vm2088_vm14, %v5335_v13, %v2824_v17  ;;  %v2830_v46 = vmul.f32 %v3554_v30, %v2829_v21 }
 0x3bc   :  { %2985 = vst.msk [vmem:[%s5459_s8 + $0x1d8] sm:$0xff] %vm2925_vm1, %v2920_v37  ;;  %v2834_v15 = vadd.f32 1.0, %v3560_v11  ;;  %v3562_v3 = vpop.eup %3561  ;;  %v2797_v27 = vsel %vm2796_vm15, %v2794_v19, %v2791_v34  ;;  %v2837_v33 = vmul.f32 -0.5, %v3560_v11  ;;  %v2840_v59 = vand.u32 2147483647, %v3560_v11 }
 0x3bd   :  { %v2917_v57 = vsel %vm2085_vm2, %v5349_v9, %v2797_v27  ;;  %v2800_v45 = vmul.f32 0.6931472, %v3562_v3  ;;  %v3564_v13 = vpop.eup %3563 }
 0x3be   :  { %3569 = vlog2.f32 %v2834_v15  ;;  %2982 = vst.msk [vmem:[%s5459_s8 + $0x1c0] sm:$0xff] %vm2925_vm1, %v2917_v57  ;;  %v2843_v62 = vadd.f32 1.0, %v3564_v13  ;;  %v2838_v49 = vadd.f32 1.0, %v2837_v33  ;;  %v2846_v47 = vmul.f32 -0.5, %v3564_v13 }
 0x3bf   :  { %v2806_v12 = vsel %vm2805_vm3, %v2803_v48, %v2800_v45  ;;  %v3566_v9 = vpop.eup %3565  ;;  %vm2841_vm6 = vcmp.lt.f32.partialorder %v2840_v59, 0.0004427343  ;;  %v2849_v55 = vand.u32 2147483647, %v3564_v13 }
 0x3c0   :  { %v2918_v25 = vsel %vm2086_vm0, %v5359_v16, %v2806_v12  ;;  %3571 = vlog2.f32 %v2843_v62  ;;  %v2852_v7 = vadd.f32 1.0, %v3566_v9  ;;  %v2855_v50 = vmul.f32 -0.5, %v3566_v9 }
 0x3c1   :  { %2983 = vst.msk [vmem:[%s5459_s8 + $0x1c8] sm:$0xff] %vm2925_vm1, %v2918_v25  ;;  %v2839_v22 = vmul.f32 %v3560_v11, %v2838_v49  ;;  %v2847_v56 = vadd.f32 1.0, %v2846_v47  ;;  %vm2850_vm8 = vcmp.lt.f32.partialorder %v2849_v55, 0.0004427343 }
 0x3c2   :  { %3573 = vlog2.f32 %v2852_v7  ;;  %v2856_v29 = vadd.f32 1.0, %v2855_v50 }
 0x3c3   :  { %v3568_v39 = vpop.eup %3567  ;;  %v2848_v42 = vmul.f32 %v3564_v13, %v2847_v56 }
 0x3c4   :  { %v2827_v28 = vmul.f32 0.6931472, %v3568_v39  ;;  %v2857_v38 = vmul.f32 %v3566_v9, %v2856_v29 }
 0x3c6   :  { %v2833_v16 = vsel %vm2832_vm4, %v2830_v46, %v2827_v28 }
 0x3c7   :  { %v2921_v32 = vsel %vm2089_vm5, %v5370_v44, %v2833_v16  ;;  %v2858_v44 = vand.u32 2147483647, %v3566_v9 }
 0x3c8   :  { %v3570_v18 = vpop.eup %3569  ;;  %2986 = vst.msk [vmem:[%s5459_s8 + $0x1e0] sm:$0xff] %vm2925_vm1, %v2921_v32 }
 0x3c9   :  { %v2836_v26 = vmul.f32 0.6931472, %v3570_v18  ;;  %vm2859_vm10 = vcmp.lt.f32.partialorder %v2858_v44, 0.0004427343 }
 0x3ca   :  { %v3572_v6 = vpop.eup %3571 }
 0x3cb   :  { %v2842_v24 = vsel %vm2841_vm6, %v2839_v22, %v2836_v26  ;;  %v2845_v23 = vmul.f32 0.6931472, %v3572_v6 }
 0x3cc   :  { %v2922_v5 = vsel %vm2090_vm7, %v5381_v31, %v2842_v24  ;;  %v3574_v20 = vpop.eup %3573 }
 0x3cd   :  { %2987 = vst.msk [vmem:[%s5459_s8 + $0x1e8] sm:$0xff] %vm2925_vm1, %v2922_v5  ;;  %v2851_v10 = vsel %vm2850_vm8, %v2848_v42, %v2845_v23  ;;  %v2854_v54 = vmul.f32 0.6931472, %v3574_v20 }
 0x3ce   :  { %v2923_v60 = vsel %vm2091_vm9, %v5396_v36, %v2851_v10 }
 0x3cf   :  { %2988 = vst.msk [vmem:[%s5459_s8 + $0x1f0] sm:$0xff] %vm2925_vm1, %v2923_v60  ;;  %v2860_v31 = vsel %vm2859_vm10, %v2857_v38, %v2854_v54 }
 0x3d0   :  { %v2924_v41 = vsel %vm2092_vm11, %v5399_v35, %v2860_v31 }
 0x3d1   :  { %2989 = vst.msk [vmem:[%s5459_s8 + $0x1f8] sm:$0xff] %vm2925_vm1, %v2924_v41 }
 0x3d2   :  { %2994 = vsyncpa [#allocation6], 1 }

</bundles_post_ra>
